<compile_context>
chip_gen: v7x
topology: tpu7x:2x2x1
jax: 0.10.0
libtpu: 0.0.40
codegen_flags: <defaults>
</compile_context>

<pallas_src>
import jax
import jax.numpy as jnp
from jax.experimental import pallas as pl
from jax.experimental.pallas import tpu as pltpu

NOISE_DIM = 96
EMB_DIM = 10
H = 1024
OUT = 784
OUT_PAD = 896  # 7 * 128: lane-dense output width (padded cols are sliced off)


def _generator_mlp_kernel(z_ref, c_ref, w1z_ref, w1c_ref, b1_ref,
                          w2_ref, b2_ref, w3_ref, b3_ref, o_ref):
    # Inputs arrive f32; cast to bf16 in-kernel (cheap VPU work, hides under MXU).
    z = z_ref[...].astype(jnp.bfloat16)
    c = c_ref[...].astype(jnp.bfloat16)
    # Layer 1: split matmul replaces concat([z, c], 1) @ W1.
    h1 = jnp.dot(z, w1z_ref[...], preferred_element_type=jnp.float32)
    h1 = h1 + jnp.dot(c, w1c_ref[...], preferred_element_type=jnp.float32)
    h1 = jnp.maximum(h1 + b1_ref[...], 0.0).astype(jnp.bfloat16)
    # Layer 2: (TB, 1024) @ (1024, 1024) + b -> ReLU
    h2 = jnp.dot(h1, w2_ref[...], preferred_element_type=jnp.float32)
    h2 = jnp.maximum(h2 + b2_ref[...], 0.0).astype(jnp.bfloat16)
    # Layer 3: (TB, 1024) @ (1024, 896) + b -> Tanh  (lane-dense, unmasked store)
    y = jnp.dot(h2, w3_ref[...], preferred_element_type=jnp.float32)
    o_ref[...] = jnp.tanh(y + b3_ref[...])


def _round_up(x, m):
    return -(-x // m) * m


def _tpu_vmem_bytes():
    try:
        return int(pltpu.get_tpu_info().vmem_capacity_bytes)
    except Exception:
        return 64 << 20  # conservative (v7x per-TC VMEM)


def _batch_tile_and_vmem_limit(B):
    """Batch tile + scoped-VMEM cap per TPU generation.

    v5e/v6e (128 MiB VMEM, 1 TC/chip): up to 1024-row tiles, 64 MiB cap.
    v7x     (64 MiB VMEM, 2 TCs/chip): cap the tile at ceil(B/2) (rounded to
        256) so the "parallel" batch axis always spans both TensorCores;
        48 MiB cap — enough for a 1024-row tile with single-buffered weights.
    """
    big_vmem = _tpu_vmem_bytes() >= (128 << 20)
    two_tc = not big_vmem                       # 64 MiB VMEM => v7x-class chip
    limit = (64 << 20) if big_vmem else (48 << 20)

    align = 256                                 # full MXU M-passes, packed bf16 casts
    cap = 1024
    if two_tc and B > align:
        # Guarantee >= 2 grid steps so both v7x TensorCores get work.
        cap = min(cap, max(align, _round_up(-(-B // 2), align)))

    if B <= align:
        tb = max(16, _round_up(B, 16))          # small batch: one bf16-packed tile
    else:
        n_tiles = -(-B // cap)
        tb = _round_up(-(-B // n_tiles), align)
    return tb, limit


def _resident_spec(shape):
    """Weights/biases: constant index_map -> fetched once, VMEM-resident.

    Single-buffered (pl.Buffered(1)); double-buffering a block whose index
    never changes only wastes VMEM."""
    rep = lambda i: (0, 0)
    try:
        return pl.BlockSpec(shape, rep, pipeline_mode=pl.Buffered(1))
    except TypeError:  # very old Pallas without pipeline_mode: fall back
        return pl.BlockSpec(shape, rep)


def generator_forward(z, labels, params):
    """z: (B, NOISE_DIM) f32, labels: (B,) int32 in [0, 10). Returns (B, 784) f32."""
    B = z.shape[0]
    TB, vmem_limit = _batch_tile_and_vmem_limit(B)

    # Glue: embedding gather stays in plain JAX (tiny, data-dependent).
    c = jnp.take(params["embedding"], labels, axis=0)        # (B, 10) f32

    Bp = _round_up(B, TB)
    if Bp != B:
        z = jnp.pad(z, ((0, Bp - B), (0, 0)))
        c = jnp.pad(c, ((0, Bp - B), (0, 0)))

    row = lambda i: (i, 0)                                    # batch-tiled operands

    out = pl.pallas_call(
        _generator_mlp_kernel,
        out_shape=jax.ShapeDtypeStruct((Bp, OUT_PAD), jnp.float32),
        grid=(Bp // TB,),
        in_specs=[
            pl.BlockSpec((TB, NOISE_DIM), row),    # z tile   f32 (cast in-kernel)
            pl.BlockSpec((TB, EMB_DIM), row),      # c tile   f32 (cast in-kernel)
            _resident_spec((NOISE_DIM, H)),        # w1[:96]  bf16
            _resident_spec((EMB_DIM, H)),          # w1[96:]  bf16
            _resident_spec((1, H)),                # b1       f32
            _resident_spec((H, H)),                # w2       bf16
            _resident_spec((1, H)),                # b2       f32
            _resident_spec((H, OUT_PAD)),          # w3       bf16 (lane-padded)
            _resident_spec((1, OUT_PAD)),          # b3       f32  (lane-padded)
        ],
        out_specs=pl.BlockSpec((TB, OUT_PAD), row),
        compiler_params=pltpu.CompilerParams(
            dimension_semantics=("parallel",),     # megacore split across TCs on v7x
            vmem_limit_bytes=vmem_limit,
        ),
    )(
        z, c,
        params["w1z"], params["w1c"], params["b1"],
        params["w2"], params["b2"],
        params["w3"], params["b3"],
    )
    out = out[:, :OUT]                             # drop the 784->896 lane padding
    return out[:B] if Bp != B else out


def init_params(key):
    """Init mirroring the PyTorch module's shapes.

    Linear weights use PyTorch-style U(-1/sqrt(fan_in), 1/sqrt(fan_in)),
    stored as (in_features, out_features) and cast to bf16 for streaming;
    W1 is stored pre-split into its z-rows and embedding-rows; W3/b3 are
    zero-padded 784 -> 896 lanes.  Biases stay f32 as (1, fan_out).
    Embedding ~ N(0, 1)."""
    k_emb, k1, kb1, k2, kb2, k3, kb3 = jax.random.split(key, 7)
    in1 = NOISE_DIM + EMB_DIM

    def lin_w(k, fan_in, fan_out):
        bound = 1.0 / jnp.sqrt(jnp.float32(fan_in))
        return jax.random.uniform(k, (fan_in, fan_out), jnp.float32, -bound, bound)

    def lin_b(k, fan_in, fan_out):
        bound = 1.0 / jnp.sqrt(jnp.float32(fan_in))
        return jax.random.uniform(k, (1, fan_out), jnp.float32, -bound, bound)

    w1 = lin_w(k1, in1, H)
    w3 = jnp.pad(lin_w(k3, H, OUT), ((0, 0), (0, OUT_PAD - OUT)))
    b3 = jnp.pad(lin_b(kb3, H, OUT), ((0, 0), (0, OUT_PAD - OUT)))
    return {
        "embedding": jax.random.normal(k_emb, (10, EMB_DIM), jnp.float32),
        "w1z": w1[:NOISE_DIM].astype(jnp.bfloat16),
        "w1c": w1[NOISE_DIM:].astype(jnp.bfloat16),
        "b1": lin_b(kb1, in1, H),
        "w2": lin_w(k2, H, H).astype(jnp.bfloat16),
        "b2": lin_b(kb2, H, H),
        "w3": w3.astype(jnp.bfloat16),
        "b3": b3,
    }


def _reference_forward(z, labels, params):
    f32 = lambda a: a.astype(jnp.float32)
    c = jnp.take(f32(params["embedding"]), labels, axis=0)
    h1 = jnp.maximum(z @ f32(params["w1z"]) + c @ f32(params["w1c"]) + params["b1"], 0.0)
    h2 = jnp.maximum(h1 @ f32(params["w2"]) + params["b2"], 0.0)
    y = jnp.tanh(h2 @ f32(params["w3"]) + params["b3"])
    return y[:, :OUT]


if __name__ == "__main__":
    key = jax.random.PRNGKey(0)
    k_params, k_z, k_lab = jax.random.split(key, 3)

    params = init_params(k_params)

    B = 4
    z = jax.random.normal(k_z, (B, NOISE_DIM), jnp.float32)
    labels = jax.random.randint(k_lab, (B,), 0, 10, jnp.int32)

    out = jax.jit(generator_forward)(z, labels, params)
    out = jax.block_until_ready(out)

    ref = _reference_forward(z, labels, params)
    assert out.shape == (B, OUT), out.shape
    # Intentional precision choice: weights AND h1/h2 activations are bf16
    # (f32 MXU accumulation), so tolerance vs. the f32 reference is relaxed.
    assert jnp.allclose(out, ref, atol=5e-2, rtol=5e-2), "mismatch vs JAX reference"

    print("KERNEL_OK")
</pallas_src>

<mosaic_0001>
module attributes {stable_mosaic.version = 11 : i64} {
  func.func @_generator_mlp_kernel(%arg0: i32, %arg1: memref<16x96xf32, #tpu.memory_space<vmem>>, %arg2: memref<16x10xf32, #tpu.memory_space<vmem>>, %arg3: memref<96x1024xbf16, #tpu.memory_space<vmem>>, %arg4: memref<10x1024xbf16, #tpu.memory_space<vmem>>, %arg5: memref<1x1024xf32, #tpu.memory_space<vmem>>, %arg6: memref<1024x1024xbf16, #tpu.memory_space<vmem>>, %arg7: memref<1x1024xf32, #tpu.memory_space<vmem>>, %arg8: memref<1024x896xbf16, #tpu.memory_space<vmem>>, %arg9: memref<1x896xf32, #tpu.memory_space<vmem>>, %arg10: memref<16x896xf32, #tpu.memory_space<vmem>>) attributes {dimension_semantics = [#tpu.dimension_semantics<parallel>], iteration_bounds = array<i64: 1>, scalar_prefetch = 0 : i64, scratch_operands = 0 : i64, tpu.core_type = #tpu.core_type<tc>, window_params = [{transform_indices = @transform_0, window_bounds = array<i64: 16, 96>}, {transform_indices = @transform_1, window_bounds = array<i64: 16, 10>}, {pipeline_mode = #tpu.pipeline_mode<synchronous>, transform_indices = @transform_2, window_bounds = array<i64: 96, 1024>}, {pipeline_mode = #tpu.pipeline_mode<synchronous>, transform_indices = @transform_3, window_bounds = array<i64: 10, 1024>}, {pipeline_mode = #tpu.pipeline_mode<synchronous>, transform_indices = @transform_4, window_bounds = array<i64: 1, 1024>}, {pipeline_mode = #tpu.pipeline_mode<synchronous>, transform_indices = @transform_5, window_bounds = array<i64: 1024, 1024>}, {pipeline_mode = #tpu.pipeline_mode<synchronous>, transform_indices = @transform_6, window_bounds = array<i64: 1, 1024>}, {pipeline_mode = #tpu.pipeline_mode<synchronous>, transform_indices = @transform_7, window_bounds = array<i64: 1024, 896>}, {pipeline_mode = #tpu.pipeline_mode<synchronous>, transform_indices = @transform_8, window_bounds = array<i64: 1, 896>}, {transform_indices = @transform_9, window_bounds = array<i64: 16, 896>}]} {
    %c0 = arith.constant 0 : index
    %c0_0 = arith.constant 0 : index
    %0 = vector.load %arg1[%c0, %c0_0] : memref<16x96xf32, #tpu.memory_space<vmem>>, vector<16x96xf32>
    %1 = arith.truncf %0 : vector<16x96xf32> to vector<16x96xbf16>
    %c0_1 = arith.constant 0 : index
    %c0_2 = arith.constant 0 : index
    %2 = vector.load %arg2[%c0_1, %c0_2] : memref<16x10xf32, #tpu.memory_space<vmem>>, vector<16x10xf32>
    %3 = arith.truncf %2 : vector<16x10xf32> to vector<16x10xbf16>
    %c0_3 = arith.constant 0 : index
    %c0_4 = arith.constant 0 : index
    %4 = vector.load %arg3[%c0_3, %c0_4] : memref<96x1024xbf16, #tpu.memory_space<vmem>>, vector<96x1024xbf16>
    %cst = arith.constant dense<0.000000e+00> : vector<16x1024xf32>
    %5 = tpu.matmul %1, %4, %cst {dimension_numbers = #tpu.dot_dimension_numbers<[1], [0], [0], [1], [0, 0, 1, 1], [], []>} : vector<16x96xbf16>, vector<96x1024xbf16>, vector<16x1024xf32> -> vector<16x1024xf32>
    %c0_5 = arith.constant 0 : index
    %c0_6 = arith.constant 0 : index
    %6 = vector.load %arg4[%c0_5, %c0_6] : memref<10x1024xbf16, #tpu.memory_space<vmem>>, vector<10x1024xbf16>
    %cst_7 = arith.constant dense<0.000000e+00> : vector<16x1024xf32>
    %7 = tpu.matmul %3, %6, %cst_7 {dimension_numbers = #tpu.dot_dimension_numbers<[1], [0], [0], [1], [0, 0, 1, 1], [], []>} : vector<16x10xbf16>, vector<10x1024xbf16>, vector<16x1024xf32> -> vector<16x1024xf32>
    %8 = arith.addf %5, %7 : vector<16x1024xf32>
    %c0_8 = arith.constant 0 : index
    %c0_9 = arith.constant 0 : index
    %9 = vector.load %arg5[%c0_8, %c0_9] : memref<1x1024xf32, #tpu.memory_space<vmem>>, vector<1x1024xf32>
    %10 = vector.broadcast %9 : vector<1x1024xf32> to vector<16x1024xf32>
    %11 = arith.addf %8, %10 : vector<16x1024xf32>
    %cst_10 = arith.constant 0.000000e+00 : f32
    %12 = vector.broadcast %cst_10 : f32 to vector<16x1024xf32>
    %13 = arith.maximumf %11, %12 : vector<16x1024xf32>
    %14 = arith.truncf %13 : vector<16x1024xf32> to vector<16x1024xbf16>
    %c0_11 = arith.constant 0 : index
    %c0_12 = arith.constant 0 : index
    %15 = vector.load %arg6[%c0_11, %c0_12] : memref<1024x1024xbf16, #tpu.memory_space<vmem>>, vector<1024x1024xbf16>
    %cst_13 = arith.constant dense<0.000000e+00> : vector<16x1024xf32>
    %16 = tpu.matmul %14, %15, %cst_13 {dimension_numbers = #tpu.dot_dimension_numbers<[1], [0], [0], [1], [0, 0, 1, 1], [], []>} : vector<16x1024xbf16>, vector<1024x1024xbf16>, vector<16x1024xf32> -> vector<16x1024xf32>
    %c0_14 = arith.constant 0 : index
    %c0_15 = arith.constant 0 : index
    %17 = vector.load %arg7[%c0_14, %c0_15] : memref<1x1024xf32, #tpu.memory_space<vmem>>, vector<1x1024xf32>
    %18 = vector.broadcast %17 : vector<1x1024xf32> to vector<16x1024xf32>
    %19 = arith.addf %16, %18 : vector<16x1024xf32>
    %cst_16 = arith.constant 0.000000e+00 : f32
    %20 = vector.broadcast %cst_16 : f32 to vector<16x1024xf32>
    %21 = arith.maximumf %19, %20 : vector<16x1024xf32>
    %22 = arith.truncf %21 : vector<16x1024xf32> to vector<16x1024xbf16>
    %c0_17 = arith.constant 0 : index
    %c0_18 = arith.constant 0 : index
    %23 = vector.load %arg8[%c0_17, %c0_18] : memref<1024x896xbf16, #tpu.memory_space<vmem>>, vector<1024x896xbf16>
    %cst_19 = arith.constant dense<0.000000e+00> : vector<16x896xf32>
    %24 = tpu.matmul %22, %23, %cst_19 {dimension_numbers = #tpu.dot_dimension_numbers<[1], [0], [0], [1], [0, 0, 1, 1], [], []>} : vector<16x1024xbf16>, vector<1024x896xbf16>, vector<16x896xf32> -> vector<16x896xf32>
    %c0_20 = arith.constant 0 : index
    %c0_21 = arith.constant 0 : index
    %25 = vector.load %arg9[%c0_20, %c0_21] : memref<1x896xf32, #tpu.memory_space<vmem>>, vector<1x896xf32>
    %26 = vector.broadcast %25 : vector<1x896xf32> to vector<16x896xf32>
    %27 = arith.addf %24, %26 : vector<16x896xf32>
    %28 = math.tanh %27 : vector<16x896xf32>
    %c0_22 = arith.constant 0 : index
    %c0_23 = arith.constant 0 : index
    %29 = vector.load %arg10[%c0_22, %c0_23] : memref<16x896xf32, #tpu.memory_space<vmem>>, vector<16x896xf32>
    tpu.vector_store %arg10[%c0_22, %c0_23], %28 {strides = array<i32>} : memref<16x896xf32, #tpu.memory_space<vmem>>, vector<16x896xf32>,
    return
  }
  func.func @transform_0(%arg0: i32) -> (i32, i32) {
    %c0_i32 = arith.constant 0 : i32
    %c0_i32_0 = arith.constant 0 : i32
    return %arg0, %c0_i32 : i32, i32
  }
  func.func @transform_1(%arg0: i32) -> (i32, i32) {
    %c0_i32 = arith.constant 0 : i32
    %c0_i32_0 = arith.constant 0 : i32
    return %arg0, %c0_i32 : i32, i32
  }
  func.func @transform_2(%arg0: i32) -> (i32, i32) {
    %c0_i32 = arith.constant 0 : i32
    %c0_i32_0 = arith.constant 0 : i32
    %c0_i32_1 = arith.constant 0 : i32
    return %c0_i32, %c0_i32_0 : i32, i32
  }
  func.func @transform_3(%arg0: i32) -> (i32, i32) {
    %c0_i32 = arith.constant 0 : i32
    %c0_i32_0 = arith.constant 0 : i32
    %c0_i32_1 = arith.constant 0 : i32
    return %c0_i32, %c0_i32_0 : i32, i32
  }
  func.func @transform_4(%arg0: i32) -> (i32, i32) {
    %c0_i32 = arith.constant 0 : i32
    %c0_i32_0 = arith.constant 0 : i32
    %c0_i32_1 = arith.constant 0 : i32
    return %c0_i32, %c0_i32_0 : i32, i32
  }
  func.func @transform_5(%arg0: i32) -> (i32, i32) {
    %c0_i32 = arith.constant 0 : i32
    %c0_i32_0 = arith.constant 0 : i32
    %c0_i32_1 = arith.constant 0 : i32
    return %c0_i32, %c0_i32_0 : i32, i32
  }
  func.func @transform_6(%arg0: i32) -> (i32, i32) {
    %c0_i32 = arith.constant 0 : i32
    %c0_i32_0 = arith.constant 0 : i32
    %c0_i32_1 = arith.constant 0 : i32
    return %c0_i32, %c0_i32_0 : i32, i32
  }
  func.func @transform_7(%arg0: i32) -> (i32, i32) {
    %c0_i32 = arith.constant 0 : i32
    %c0_i32_0 = arith.constant 0 : i32
    %c0_i32_1 = arith.constant 0 : i32
    return %c0_i32, %c0_i32_0 : i32, i32
  }
  func.func @transform_8(%arg0: i32) -> (i32, i32) {
    %c0_i32 = arith.constant 0 : i32
    %c0_i32_0 = arith.constant 0 : i32
    %c0_i32_1 = arith.constant 0 : i32
    return %c0_i32, %c0_i32_0 : i32, i32
  }
  func.func @transform_9(%arg0: i32) -> (i32, i32) {
    %c0_i32 = arith.constant 0 : i32
    %c0_i32_0 = arith.constant 0 : i32
    return %arg0, %c0_i32 : i32, i32
  }
}

</mosaic_0001>

<bundles_post_ra>
// kernel: generator_forward.1
= control target key start
LH: loop header
LB: loop body
LE: loop exit
PB: predicated region body
PF: predicated region fallthrough
CT: control target
= control target key end

     0   :  { %14 = vsyncpa [#allocation3], 0  ;;  %s10839_s0 = inlined_call_operand.vmem [shape: f32[16,96], index: 0, kind: input, shape index: {}]   ;;  %s10840_s1 = inlined_call_operand.vmem [shape: f32[16,10], index: 1, kind: input, shape index: {}]   ;;  %s10841_s2 = inlined_call_operand.hbm [shape: bf16[96,1024], index: 2, kind: input, shape index: {}]   ;;  %s10842_s3 = inlined_call_operand.hbm [shape: bf16[10,1024], index: 3, kind: input, shape index: {}]   ;;  %s10843_s4 = inlined_call_operand.hbm [shape: f32[1,1024], index: 4, kind: input, shape index: {}]   ;;  %s10844_s5 = inlined_call_operand.hbm [shape: bf16[1024,1024], index: 5, kind: input, shape index: {}]   ;;  %s10845_s6 = inlined_call_operand.hbm [shape: f32[1,1024], index: 6, kind: input, shape index: {}]   ;;  %s10846_s7 = inlined_call_operand.hbm [shape: bf16[1024,896], index: 7, kind: input, shape index: {}]   ;;  %s10847_s8 = inlined_call_operand.hbm [shape: f32[1,896], index: 8, kind: input, shape index: {}]   ;;  %s10848_s9 = inlined_call_operand.vmem [shape: f32[16,896], index: 9, kind: output, shape index: {}]  }
   0x1   :  { %15 = vsyncpa [#allocation5], 0 }
   0x2   :  { %16 = vsyncpa [#allocation8], 0 }
   0x3   :  { %17 = vsyncpa [#allocation11], 0  ;;  %s10397_s30 = smov [#allocation4]   ;;  %s10398_s11 = smov [#allocation7]  }
   0x4   :  { %s39_s10 = sshll.u32 %s10397_s30, 4  ;;  %s61_s12 = sshll.u32 %s10398_s11, 4  ;;  %s40_s10 = int_to_ptr.vmem [resolvable:$true] %s39_s10  ;;  %s10459_s12 = int_to_ptr.vmem [resolvable:$true] %s61_s12 }
   0x5   :  { %s10235_s15 = scalar_lea.hbm %s10842_s3, 1024 }
   0x6   :  { %p10236_p0 = scmp.ne.s32.totalorder %s10842_s3, %s10235_s15  ;;  %p10239_p1 = scmp.lt.u32.totalorder %s10235_s15, %s10842_s3 }
   0x8   :  { %p10241_p2 = pnand %p10239_p1, %p10236_p0 }
   0xa   :  { %10244 = shalt.err (!%p10241_p2)
}
   0xb   :  { %s10245_s20 = scalar_lea.vmem %s40_s10, 1024  ;;  %p10250_p4 = scmp.lt.s32.totalorder %s40_s10, %s40_s10 }
   0xc   :  { %p10246_p3 = scmp.ne.s32.totalorder %s40_s10, %s10245_s20  ;;  %p10251_p5 = scmp.lt.s32.totalorder %s10245_s20, %s10245_s20 }
   0xe   :  { %p10252_p6 = por %p10251_p5, %p10250_p4 }
  0x10   :  { %p10253_p7 = pnand %p10252_p6, %p10246_p3 }
  0x12   :  { %10256 = shalt.err (!%p10253_p7)
}
  0x13   :  { %s10399_s21 = smov 512   ;;  %s10400_s22 = smov 32  }
  0x14   :  { %45 = dma.hbm_to_vmem [thread:$0]  %s10842_s3, 1024, %s40_s10, [#allocation5], %s10399_s21, %s10399_s21, %s10400_s22  }
  0x15   :  { %s10257_s27 = scalar_lea.hbm %s10844_s5, 65536 }
  0x16   :  { %p10258_p8 = scmp.ne.s32.totalorder %s10844_s5, %s10257_s27  ;;  %p10261_p9 = scmp.lt.u32.totalorder %s10257_s27, %s10844_s5 }
  0x18   :  { %p10263_p10 = pnand %p10261_p9, %p10258_p8 }
  0x1a   :  { %10266 = shalt.err (!%p10263_p10)
}
  0x1b   :  { %s10267_s13 = scalar_lea.vmem %s10459_s12, 65536  ;;  %p10272_p12 = scmp.lt.s32.totalorder %s10459_s12, %s10459_s12 }
  0x1c   :  { %p10268_p11 = scmp.ne.s32.totalorder %s10459_s12, %s10267_s13  ;;  %p10273_p13 = scmp.lt.s32.totalorder %s10267_s13, %s10267_s13 }
  0x1e   :  { %p10274_p0 = por %p10273_p13, %p10272_p12 }
  0x20   :  { %p10275_p1 = pnand %p10274_p0, %p10268_p11 }
  0x22   :  { %10278 = shalt.err (!%p10275_p1)
}
  0x23   :  { %67 = dma.hbm_to_vmem [thread:$0]  %s10844_s5, 65536, %s10459_s12, [#allocation8], %s10399_s21, %s10399_s21, %s10400_s22  }
  0x24   :  { %s10401_s14 = smov [#allocation10]   ;;  %s10279_s18 = scalar_lea.hbm %s10846_s7, 57344 }
  0x25   :  { %s83_s15 = sshll.u32 %s10401_s14, 4  ;;  %p10280_p2 = scmp.ne.s32.totalorder %s10846_s7, %s10279_s18  ;;  %s84_s15 = int_to_ptr.vmem [resolvable:$true] %s83_s15 }
  0x26   :  { %p10283_p3 = scmp.lt.u32.totalorder %s10279_s18, %s10846_s7 }
  0x28   :  { %p10285_p4 = pnand %p10283_p3, %p10280_p2 }
  0x2a   :  { %10288 = shalt.err (!%p10285_p4)
}
  0x2b   :  { %s10289_s25 = scalar_lea.vmem %s84_s15, 57344  ;;  %p10294_p6 = scmp.lt.s32.totalorder %s84_s15, %s84_s15 }
  0x2c   :  { %p10290_p5 = scmp.ne.s32.totalorder %s84_s15, %s10289_s25  ;;  %p10295_p7 = scmp.lt.s32.totalorder %s10289_s25, %s10289_s25 }
  0x2e   :  { %p10296_p8 = por %p10295_p7, %p10294_p6 }
  0x30   :  { %p10297_p9 = pnand %p10296_p8, %p10290_p5 }
  0x32   :  { %10300 = shalt.err (!%p10297_p9)
}
  0x33   :  { %s10402_s5 = smov 448   ;;  %s10403_s12 = smov 28  }
  0x34   :  { %89 = dma.hbm_to_vmem [thread:$0]  %s10846_s7, 57344, %s84_s15, [#allocation11], %s10402_s5, %s10402_s5, %s10403_s12  }
  0x35   :  { %s10404_s28 = smov [#allocation2]   ;;  %s10405_s30 = smov [#allocation6]  }
  0x36   :  { %s27_s29 = sshll.u32 %s10404_s28, 4  ;;  %s52_s11 = sshll.u32 %s10405_s30, 4  ;;  %s28_s29 = int_to_ptr.vmem [resolvable:$true] %s27_s29  ;;  %s53_s11 = int_to_ptr.vmem [resolvable:$true] %s52_s11 }
  0x37   :  { %s10301_s10 = scalar_lea.hbm %s10841_s2, 6144 }
  0x38   :  { %p10302_p10 = scmp.ne.s32.totalorder %s10841_s2, %s10301_s10  ;;  %p10305_p11 = scmp.lt.u32.totalorder %s10301_s10, %s10841_s2 }
  0x3a   :  { %p10307_p12 = pnand %p10305_p11, %p10302_p10 }
  0x3c   :  { %10310 = shalt.err (!%p10307_p12)
}
  0x3d   :  { %s10311_s7 = scalar_lea.vmem %s28_s29, 6144  ;;  %p10316_p0 = scmp.lt.s32.totalorder %s28_s29, %s28_s29 }
  0x3e   :  { %p10312_p13 = scmp.ne.s32.totalorder %s28_s29, %s10311_s7  ;;  %p10317_p1 = scmp.lt.s32.totalorder %s10311_s7, %s10311_s7 }
  0x40   :  { %p10318_p2 = por %p10317_p1, %p10316_p0 }
  0x42   :  { %p10319_p3 = pnand %p10318_p2, %p10312_p13 }
  0x44   :  { %10322 = shalt.err (!%p10319_p3)
}
  0x45   :  { %33 = dma.hbm_to_vmem [thread:$0]  %s10841_s2, 6144, %s28_s29, [#allocation3], %s10399_s21, %s10399_s21, %s10400_s22  }
  0x46   :  { %s10323_s24 = scalar_lea.hbm %s10843_s4, 128 }
  0x47   :  { %p10324_p4 = scmp.ne.s32.totalorder %s10843_s4, %s10323_s24  ;;  %p10327_p5 = scmp.lt.u32.totalorder %s10323_s24, %s10843_s4 }
  0x49   :  { %p10329_p6 = pnand %p10327_p5, %p10324_p4 }
  0x4b   :  { %10332 = shalt.err (!%p10329_p6)
}
  0x4c   :  { %s10333_s27 = scalar_lea.vmem %s53_s11, 128  ;;  %p10338_p8 = scmp.lt.s32.totalorder %s53_s11, %s53_s11 }
  0x4d   :  { %p10334_p7 = scmp.ne.s32.totalorder %s53_s11, %s10333_s27  ;;  %p10339_p9 = scmp.lt.s32.totalorder %s10333_s27, %s10333_s27 }
  0x4f   :  { %p10340_p10 = por %p10339_p9, %p10338_p8 }
  0x51   :  { %p10341_p11 = pnand %p10340_p10, %p10334_p7 }
  0x53   :  { %10344 = shalt.err (!%p10341_p11)
}
  0x54   :  { %55 = dma.hbm_to_vmem [thread:$0]  %s10843_s4, 128, %s53_s11, [#allocation5]  }
  0x55   :  { %s10406_s22 = smov [#allocation9]   ;;  %s10407_s29 = smov [#allocation12]  }
  0x56   :  { %s74_s28 = sshll.u32 %s10406_s22, 4  ;;  %s96_s30 = sshll.u32 %s10407_s29, 4  ;;  %s75_s28 = int_to_ptr.vmem [resolvable:$true] %s74_s28  ;;  %s97_s30 = int_to_ptr.vmem [resolvable:$true] %s96_s30 }
  0x57   :  { %s10345_s10 = scalar_lea.hbm %s10845_s6, 128 }
  0x58   :  { %p10346_p12 = scmp.ne.s32.totalorder %s10845_s6, %s10345_s10  ;;  %p10349_p13 = scmp.lt.u32.totalorder %s10345_s10, %s10845_s6 }
  0x5a   :  { %p10351_p0 = pnand %p10349_p13, %p10346_p12 }
  0x5c   :  { %10354 = shalt.err (!%p10351_p0)
}
  0x5d   :  { %s10355_s4 = scalar_lea.vmem %s75_s28, 128  ;;  %p10360_p2 = scmp.lt.s32.totalorder %s75_s28, %s75_s28 }
  0x5e   :  { %p10356_p1 = scmp.ne.s32.totalorder %s75_s28, %s10355_s4  ;;  %p10361_p3 = scmp.lt.s32.totalorder %s10355_s4, %s10355_s4 }
  0x60   :  { %p10362_p4 = por %p10361_p3, %p10360_p2 }
  0x62   :  { %p10363_p5 = pnand %p10362_p4, %p10356_p1 }
  0x64   :  { %10366 = shalt.err (!%p10363_p5)
}
  0x65   :  { %77 = dma.hbm_to_vmem [thread:$0]  %s10845_s6, 128, %s75_s28, [#allocation8]  }
  0x66   :  { %s10367_s20 = scalar_lea.hbm %s10847_s8, 112 }
  0x67   :  { %p10368_p6 = scmp.ne.s32.totalorder %s10847_s8, %s10367_s20  ;;  %p10371_p7 = scmp.lt.u32.totalorder %s10367_s20, %s10847_s8 }
  0x69   :  { %p10373_p8 = pnand %p10371_p7, %p10368_p6 }
  0x6b   :  { %10376 = shalt.err (!%p10373_p8)
}
  0x6c   :  { %s10377_s12 = scalar_lea.vmem %s97_s30, 112  ;;  %s10381_s26 = scalar_lea.vmem %s97_s30, 128 }
  0x6d   :  { %p10378_p9 = scmp.ne.s32.totalorder %s97_s30, %s10377_s12  ;;  %p10382_p10 = scmp.lt.s32.totalorder %s97_s30, %s97_s30 }
  0x6e   :  { %p10383_p11 = scmp.lt.s32.totalorder %s10381_s26, %s10377_s12 }
  0x70   :  { %p10384_p12 = por %p10383_p11, %p10382_p10 }
  0x72   :  { %p10385_p13 = pnand %p10384_p12, %p10378_p9 }
  0x74   :  { %10388 = shalt.err (!%p10385_p13)
}
  0x75   :  { %99 = dma.hbm_to_vmem [thread:$0]  %s10847_s8, 112, %s97_s30, [#allocation11]  }
  0x76   :  { %10389 = dma.done.wait [#allocation3], 6144  }
  0x77   :  { %10390 = vsyncadd [#allocation3], 4294961152 }
  0x78   :  { %10391 = dma.done.wait [#allocation5], 1152  }
  0x79   :  { %10392 = vsyncadd [#allocation5], 4294966144 }
  0x7a   :  { %10393 = dma.done.wait [#allocation8], 65664  }
  0x7b   :  { %10394 = vsyncadd [#allocation8], 4294901632 }
  0x7c   :  { %10395 = dma.done.wait [#allocation11], 57456  }
  0x7d   :  { %10396 = vsyncadd [#allocation11], 4294909840  ;;  %v10408_v0 = vmov 0   ;;  %v176_v1 = vld [vmem:[#allocation4] sm:$0xff]  ;;  %vm220_vm0 = vcmask 1044480   ;;  %v177_v3 = vld [vmem:[#allocation4 + $0x8] sm:$0xff] }
  0x7e   :  { %277 = vmatprep.mubr.bf16.mxu0 %v10408_v0  ;;  %320 = vmatprep.mubr.bf16.mxu1 %v10408_v0  ;;  %v180_v2 = vld [vmem:[#allocation4 + $0x20] sm:$0x11]  ;;  %v181_v5 = vld [vmem:[#allocation4 + $0x28] sm:$0x11]  ;;  %v178_v11 = vld [vmem:[#allocation4 + $0x10] sm:$0xff]  ;;  %vm216_vm1 = vcmask 80896  }
  0x7f   :  { %v8311_v4 = vcombine.high %v176_v1, %v180_v2  ;;  %v8310_v6 = vcombine.low %v176_v1, %v180_v2  ;;  %v125_v7 = vld [vmem:[%s10840_s1] sm:$0xff]  ;;  %v126_v8 = vld [vmem:[%s10840_s1 + $0x8] sm:$0xff]  ;;  %v8313_v9 = vcombine.high %v177_v3, %v181_v5  ;;  %v8312_v10 = vcombine.low %v177_v3, %v181_v5  ;;  %v182_v12 = vld [vmem:[#allocation4 + $0x30] sm:$0x11] }
  0x80   :  { %v179_v13 = vld [vmem:[#allocation4 + $0x18] sm:$0xff]  ;;  %v127_v15 = vpack.c.bf16 %v126_v8, %v125_v7  ;;  %v8315_v16 = vcombine.high %v178_v11, %v182_v12  ;;  %v8314_v17 = vcombine.low %v178_v11, %v182_v12  ;;  %v128_v19 = vld [vmem:[#allocation2] sm:$0xff]  ;;  %v129_v24 = vld [vmem:[#allocation2 + $0x8] sm:$0xff]  ;;  %vm657_vm2 = vcmask 785408  }
  0x81   :  { %8318 = vmatprep.subr.msk.bf16.mxu0 %vm220_vm0, %v8311_v4  ;;  %v222_v14 = vsel %vm220_vm0, %v8310_v6, 0  ;;  %v183_v18 = vld [vmem:[#allocation4 + $0x38] sm:$0x11]  ;;  %v132_v20 = vld [vmem:[#allocation2 + $0x20] sm:$0xff]  ;;  %8320 = vmatprep.subr.msk.bf16.mxu1 %vm220_vm0, %v8313_v9  ;;  %v228_v21 = vsel %vm220_vm0, %v8312_v10, 0  ;;  %v133_v25 = vld [vmem:[#allocation2 + $0x28] sm:$0xff] }
  0x82   :  { %246 = vmatpush1.bf16.msra.mxu0 %v222_v14  ;;  %v8317_v22 = vcombine.high %v179_v13, %v183_v18  ;;  %v8316_v23 = vcombine.low %v179_v13, %v183_v18  ;;  %289 = vmatpush1.bf16.msra.mxu1 %v228_v21  ;;  %v234_v26 = vsel %vm220_vm0, %v8314_v17, 0  ;;  %v8327_v28 = vcombine.high %v128_v19, %v132_v20  ;;  %v136_v30 = vld [vmem:[#allocation2 + $0x40] sm:$0xff]  ;;  %v137_v32 = vld [vmem:[#allocation2 + $0x48] sm:$0xff]  ;;  %v130_v7 = vld [vmem:[#allocation2 + $0x10] sm:$0xff] }
  0x83   :  { %8322 = vmatprep.subr.msk.bf16.mxu0 %vm220_vm0, %v8315_v16  ;;  %v8329_v29 = vcombine.high %v129_v24, %v133_v25  ;;  %v140_v31 = vld [vmem:[#allocation2 + $0x60] sm:$0xff]  ;;  %v141_v33 = vld [vmem:[#allocation2 + $0x68] sm:$0xff]  ;;  %v8326_v34 = vcombine.low %v128_v19, %v132_v20  ;;  %v8328_v35 = vcombine.low %v129_v24, %v133_v25  ;;  %v134_v8 = vld [vmem:[#allocation2 + $0x30] sm:$0xff] }
  0x84   :  { %8324 = vmatprep.subr.msk.bf16.mxu1 %vm220_vm0, %v8317_v22  ;;  %v240_v27 = vsel %vm220_vm0, %v8316_v23, 0  ;;  %v8335_v36 = vcombine.high %v136_v30, %v140_v31  ;;  %v8337_v37 = vcombine.high %v137_v32, %v141_v33  ;;  %v144_v38 = vld [vmem:[#allocation2 + $0x80] sm:$0xff]  ;;  %v145_v40 = vld [vmem:[#allocation2 + $0x88] sm:$0xff]  ;;  %v8334_v42 = vcombine.low %v136_v30, %v140_v31  ;;  %v131_v9 = vld [vmem:[#allocation2 + $0x18] sm:$0xff] }
  0x85   :  { %8319 = vmatmul.mubr.msk.bf16.vlgmr.msra.gmra.mrb[0].mxu0 %vm216_vm1, %v127_v15  ;;  %8321 = vmatmul.mubr.msk.bf16.vlgmr.msra.gmra.mrb[0].mxu1 %vm216_vm1, %v127_v15  ;;  %v148_v39 = vld [vmem:[#allocation2 + $0xa0] sm:$0xff]  ;;  %v149_v41 = vld [vmem:[#allocation2 + $0xa8] sm:$0xff]  ;;  %v8336_v43 = vcombine.low %v137_v32, %v141_v33  ;;  %v135_v10 = vld [vmem:[#allocation2 + $0x38] sm:$0xff]  ;;  %v8330_v22 = vcombine.low %v130_v7, %v134_v8 }
  0x86   :  { %332 = vmatpush1.bf16.msra.mxu0 %v234_v26  ;;  %375 = vmatpush1.bf16.msra.mxu1 %v240_v27  ;;  %v8343_v44 = vcombine.high %v144_v38, %v148_v39  ;;  %v8345_v45 = vcombine.high %v145_v40, %v149_v41  ;;  %v152_v46 = vld [vmem:[#allocation2 + $0xc0] sm:$0xff]  ;;  %v153_v48 = vld [vmem:[#allocation2 + $0xc8] sm:$0xff]  ;;  %v8342_v50 = vcombine.low %v144_v38, %v148_v39  ;;  %v138_v16 = vld [vmem:[#allocation2 + $0x50] sm:$0xff] }
  0x87   :  { %363 = vmatprep.mubr.bf16.mxu0 %v10408_v0  ;;  %406 = vmatprep.mubr.bf16.mxu1 %v10408_v0  ;;  %v156_v47 = vld [vmem:[#allocation2 + $0xe0] sm:$0xff]  ;;  %v157_v49 = vld [vmem:[#allocation2 + $0xe8] sm:$0xff]  ;;  %v8344_v51 = vcombine.low %v145_v40, %v149_v41  ;;  %v142_v17 = vld [vmem:[#allocation2 + $0x70] sm:$0xff]  ;;  %v8333_v18 = vcombine.high %v131_v9, %v135_v10  ;;  %v8332_v26 = vcombine.low %v131_v9, %v135_v10 }
  0x88   :  { %661 = vmatprep.subr.bf16.mxu0 %v8327_v28  ;;  %704 = vmatprep.subr.bf16.mxu1 %v8329_v29  ;;  %v8351_v52 = vcombine.high %v152_v46, %v156_v47  ;;  %v8353_v53 = vcombine.high %v153_v48, %v157_v49  ;;  %v160_v54 = vld [vmem:[#allocation2 + $0x100] sm:$0xff]  ;;  %v161_v56 = vld [vmem:[#allocation2 + $0x108] sm:$0xff]  ;;  %v8350_v58 = vcombine.low %v152_v46, %v156_v47  ;;  %v139_v20 = vld [vmem:[#allocation2 + $0x58] sm:$0xff] }
  0x89   :  { %v164_v55 = vld [vmem:[#allocation2 + $0x120] sm:$0xff]  ;;  %v165_v57 = vld [vmem:[#allocation2 + $0x128] sm:$0xff]  ;;  %v8352_v59 = vcombine.low %v153_v48, %v157_v49  ;;  %v143_v21 = vld [vmem:[#allocation2 + $0x78] sm:$0xff]  ;;  %v8339_v23 = vcombine.high %v138_v16, %v142_v17  ;;  %v8338_v30 = vcombine.low %v138_v16, %v142_v17 }
  0x8a   :  { %v8359_v60 = vcombine.high %v160_v54, %v164_v55  ;;  %v8361_v61 = vcombine.high %v161_v56, %v165_v57  ;;  %v168_v62 = vld [vmem:[#allocation2 + $0x140] sm:$0xff]  ;;  %v169_v1 = vld [vmem:[#allocation2 + $0x148] sm:$0xff]  ;;  %v8358_v3 = vcombine.low %v160_v54, %v164_v55  ;;  %v8360_v4 = vcombine.low %v161_v56, %v165_v57  ;;  %v146_v24 = vld [vmem:[#allocation2 + $0x90] sm:$0xff] }
  0x8b   :  { %v172_v63 = vld [vmem:[#allocation2 + $0x160] sm:$0xff]  ;;  %v173_v2 = vld [vmem:[#allocation2 + $0x168] sm:$0xff]  ;;  %v150_v25 = vld [vmem:[#allocation2 + $0xb0] sm:$0xff]  ;;  %v8341_v27 = vcombine.high %v139_v20, %v143_v21 }
  0x8c   :  { %v8367_v5 = vcombine.high %v168_v62, %v172_v63  ;;  %v8369_v6 = vcombine.high %v169_v1, %v173_v2  ;;  %v8366_v11 = vcombine.low %v168_v62, %v172_v63  ;;  %v122_v12 = vld [vmem:[%s10839_s0] sm:$0xff]  ;;  %v123_v13 = vld [vmem:[%s10839_s0 + $0x8] sm:$0xff]  ;;  %v8368_v14 = vcombine.low %v169_v1, %v173_v2  ;;  %v147_v28 = vld [vmem:[#allocation2 + $0x98] sm:$0xff] }
  0x8d   :  { %8323 = vmatmul.mubr.msk.bf16.vlgmr.msra.gmra.mrb[4].mxu0 %vm216_vm1, %v127_v15  ;;  %8325 = vmatmul.mubr.msk.bf16.vlgmr.msra.gmra.mrb[4].mxu1 %vm216_vm1, %v127_v15  ;;  %v8331_v15 = vcombine.high %v130_v7, %v134_v8  ;;  %v10589_v19 = vpack.c.bf16 %v123_v13, %v122_v12  ;;  %v151_v29 = vld [vmem:[#allocation2 + $0xb8] sm:$0xff]  ;;  %v154_v31 = vld [vmem:[#allocation2 + $0xd0] sm:$0xff]  ;;  %v8347_v33 = vcombine.high %v146_v24, %v150_v25  ;;  %v1043_v54 = vld [vmem:[#allocation7 + $0x400] sm:$0xff] }
  0x8e   :  { %662 = vmatpush1.bf16.msra.mxu0 %v8326_v34  ;;  %705 = vmatpush1.bf16.msra.mxu1 %v8328_v35  ;;  %v158_v32 = vld [vmem:[#allocation2 + $0xf0] sm:$0xff]  ;;  %v8340_v34 = vcombine.low %v139_v20, %v143_v21  ;;  %v155_v35 = vld [vmem:[#allocation2 + $0xd8] sm:$0xff]  ;;  %v8346_v38 = vcombine.low %v146_v24, %v150_v25  ;;  %v1047_v55 = vld [vmem:[#allocation7 + $0x420] sm:$0xff] }
  0x8f   :  { %663 = vmatprep.subr.bf16.mxu0 %v8335_v36  ;;  %706 = vmatprep.subr.bf16.mxu1 %v8337_v37  ;;  %v159_v36 = vld [vmem:[#allocation2 + $0xf8] sm:$0xff]  ;;  %v8349_v37 = vcombine.high %v147_v28, %v151_v29  ;;  %v162_v39 = vld [vmem:[#allocation2 + $0x110] sm:$0xff]  ;;  %v8355_v41 = vcombine.high %v154_v31, %v158_v32  ;;  %v8354_v46 = vcombine.low %v154_v31, %v158_v32  ;;  %v1051_v62 = vld [vmem:[#allocation7 + $0x440] sm:$0xff] }
  0x90   :  { %693 = vmatprep.mubr.bf16.mxu0 %v10408_v0  ;;  %736 = vmatprep.mubr.bf16.mxu1 %v10408_v0  ;;  %v166_v40 = vld [vmem:[#allocation2 + $0x130] sm:$0xff]  ;;  %v1055_v63 = vld [vmem:[#allocation7 + $0x460] sm:$0xff]  ;;  %v8507_v2 = vcombine.high %v1043_v54, %v1047_v55 }
  0x91   :  { %v170_v47 = vld [vmem:[#allocation2 + $0x150] sm:$0xff]  ;;  %v8363_v49 = vcombine.high %v162_v39, %v166_v40  ;;  %v1059_v7 = vld [vmem:[#allocation7 + $0x480] sm:$0xff]  ;;  %v8515_v10 = vcombine.high %v1051_v62, %v1055_v63 }
  0x92   :  { %664 = vmatpush1.bf16.msra.mxu0 %v8334_v42  ;;  %707 = vmatpush1.bf16.msra.mxu1 %v8336_v43  ;;  %v8348_v42 = vcombine.low %v147_v28, %v151_v29  ;;  %v163_v43 = vld [vmem:[#allocation2 + $0x118] sm:$0xff]  ;;  %v174_v48 = vld [vmem:[#allocation2 + $0x170] sm:$0xff]  ;;  %v1063_v8 = vld [vmem:[#allocation7 + $0x4a0] sm:$0xff] }
  0x93   :  { %665 = vmatprep.subr.bf16.mxu0 %v8343_v44  ;;  %708 = vmatprep.subr.bf16.mxu1 %v8345_v45  ;;  %v167_v44 = vld [vmem:[#allocation2 + $0x138] sm:$0xff]  ;;  %v8357_v45 = vcombine.high %v155_v35, %v159_v36  ;;  %v8371_v56 = vcombine.high %v170_v47, %v174_v48  ;;  %v935_v12 = vld [vmem:[#allocation7 + $0xa0] sm:$0xff] }
  0x94   :  { %v8364_v57 = vcombine.low %v163_v43, %v167_v44  ;;  %v1071_v16 = vld [vmem:[#allocation7 + $0x4e0] sm:$0xff] }
  0x95   :  { %v939_v20 = vld [vmem:[#allocation7 + $0xc0] sm:$0xff] }
  0x96   :  { %666 = vmatpush1.bf16.msra.mxu0 %v8342_v50  ;;  %709 = vmatpush1.bf16.msra.mxu1 %v8344_v51  ;;  %v171_v50 = vld [vmem:[#allocation2 + $0x158] sm:$0xff]  ;;  %v943_v21 = vld [vmem:[#allocation7 + $0xe0] sm:$0xff] }
  0x97   :  { %667 = vmatprep.subr.bf16.mxu0 %v8351_v52  ;;  %710 = vmatprep.subr.bf16.mxu1 %v8353_v53  ;;  %v175_v51 = vld [vmem:[#allocation2 + $0x178] sm:$0xff]  ;;  %v8365_v52 = vcombine.high %v163_v43, %v167_v44  ;;  %v8362_v53 = vcombine.low %v162_v39, %v166_v40  ;;  %v1075_v24 = vld [vmem:[#allocation7 + $0x500] sm:$0xff]  ;;  %v8403_v29 = vcombine.high %v939_v20, %v943_v21 }
  0x98   :  { %v8372_v1 = vcombine.low %v171_v50, %v175_v51  ;;  %v1079_v25 = vld [vmem:[#allocation7 + $0x520] sm:$0xff] }
  0x99   :  { %v951_v28 = vld [vmem:[#allocation7 + $0x120] sm:$0xff] }
  0x9a   :  { %668 = vmatpush1.bf16.msra.mxu0 %v8350_v58  ;;  %711 = vmatpush1.bf16.msra.mxu1 %v8352_v59  ;;  %v915_v58 = vld [vmem:[#allocation7] sm:$0xff] }
  0x9b   :  { %669 = vmatprep.subr.bf16.mxu0 %v8359_v60  ;;  %712 = vmatprep.subr.bf16.mxu1 %v8361_v61  ;;  %v919_v59 = vld [vmem:[#allocation7 + $0x20] sm:$0xff]  ;;  %v8373_v60 = vcombine.high %v171_v50, %v175_v51  ;;  %v8370_v61 = vcombine.low %v170_v47, %v174_v48 }
  0x9c   :  { %v8378_v9 = vcombine.low %v915_v58, %v919_v59  ;;  %v1083_v31 = vld [vmem:[#allocation7 + $0x540] sm:$0xff] }
  0x9d   :  { %v1087_v32 = vld [vmem:[#allocation7 + $0x560] sm:$0xff] }
  0x9e   :  { %670 = vmatpush1.bf16.msra.mxu0 %v8358_v3  ;;  %713 = vmatpush1.bf16.msra.mxu1 %v8360_v4  ;;  %v923_v3 = vld [vmem:[#allocation7 + $0x40] sm:$0xff] }
  0x9f   :  { %671 = vmatprep.subr.bf16.mxu0 %v8367_v5  ;;  %714 = vmatprep.subr.bf16.mxu1 %v8369_v6  ;;  %v927_v4 = vld [vmem:[#allocation7 + $0x60] sm:$0xff]  ;;  %v8379_v5 = vcombine.high %v915_v58, %v919_v59  ;;  %v8506_v6 = vcombine.low %v1043_v54, %v1047_v55 }
  0xa0   :  { %v8387_v13 = vcombine.high %v923_v3, %v927_v4  ;;  %v8386_v17 = vcombine.low %v923_v3, %v927_v4  ;;  %v1091_v39 = vld [vmem:[#allocation7 + $0x580] sm:$0xff] }
  0xa1   :  { %v1095_v40 = vld [vmem:[#allocation7 + $0x5a0] sm:$0xff] }
  0xa2   :  { %672 = vmatpush1.bf16.msra.mxu0 %v8366_v11  ;;  %715 = vmatpush1.bf16.msra.mxu1 %v8368_v14  ;;  %v931_v11 = vld [vmem:[#allocation7 + $0x80] sm:$0xff]  ;;  %v8514_v14 = vcombine.low %v1051_v62, %v1055_v63 }
  0xa3   :  { %747 = vmatprep.subr.bf16.mxu0 %v8331_v15  ;;  %790 = vmatprep.subr.bf16.mxu1 %v8333_v18  ;;  %v1067_v15 = vld [vmem:[#allocation7 + $0x4c0] sm:$0xff]  ;;  %v8523_v18 = vcombine.high %v1059_v7, %v1063_v8 }
  0xa4   :  { %v963_v43 = vld [vmem:[#allocation7 + $0x180] sm:$0xff] }
  0xa5   :  { %8374 = vmatmul.mubr.msk.bf16.vlgmr.msra.gmra.mrb[0].mxu0 %vm657_vm2, %v10589_v19  ;;  %8375 = vmatmul.mubr.msk.bf16.vlgmr.msra.gmra.mrb[0].mxu1 %vm657_vm2, %v10589_v19  ;;  %v967_v44 = vld [vmem:[#allocation7 + $0x1a0] sm:$0xff] }
  0xa6   :  { %748 = vmatpush1.bf16.msra.mxu0 %v8330_v22  ;;  %791 = vmatpush1.bf16.msra.mxu1 %v8332_v26  ;;  %v8395_v22 = vcombine.high %v931_v11, %v935_v12  ;;  %v8394_v26 = vcombine.low %v931_v11, %v935_v12  ;;  %v1099_v47 = vld [vmem:[#allocation7 + $0x5c0] sm:$0xff] }
  0xa7   :  { %749 = vmatprep.subr.bf16.mxu0 %v8339_v23  ;;  %792 = vmatprep.subr.bf16.mxu1 %v8341_v27  ;;  %v8522_v23 = vcombine.low %v1059_v7, %v1063_v8  ;;  %v947_v27 = vld [vmem:[#allocation7 + $0x100] sm:$0xff] }
  0xa8   :  { %779 = vmatprep.mubr.bf16.mxu0 %v10408_v0  ;;  %822 = vmatprep.mubr.bf16.mxu1 %v10408_v0  ;;  %v8356_v0 = vcombine.low %v155_v35, %v159_v36  ;;  %v955_v35 = vld [vmem:[#allocation7 + $0x140] sm:$0xff] }
  0xa9   :  { %v959_v36 = vld [vmem:[#allocation7 + $0x160] sm:$0xff] }
  0xaa   :  { %750 = vmatpush1.bf16.msra.mxu0 %v8338_v30  ;;  %793 = vmatpush1.bf16.msra.mxu1 %v8340_v34  ;;  %v8530_v30 = vcombine.low %v1067_v15, %v1071_v16  ;;  %v8539_v34 = vcombine.high %v1075_v24, %v1079_v25  ;;  %v1103_v48 = vld [vmem:[#allocation7 + $0x5e0] sm:$0xff] }
  0xab   :  { %751 = vmatprep.subr.bf16.mxu0 %v8347_v33  ;;  %794 = vmatprep.subr.bf16.mxu1 %v8349_v37  ;;  %v8402_v33 = vcombine.low %v939_v20, %v943_v21  ;;  %v8411_v37 = vcombine.high %v947_v27, %v951_v28  ;;  %v971_v50 = vld [vmem:[#allocation7 + $0x1c0] sm:$0xff] }
  0xac   :  { %v975_v51 = vld [vmem:[#allocation7 + $0x1e0] sm:$0xff] }
  0xad   :  { %v1107_v54 = vld [vmem:[#allocation7 + $0x600] sm:$0xff] }
  0xae   :  { %752 = vmatpush1.bf16.msra.mxu0 %v8346_v38  ;;  %795 = vmatpush1.bf16.msra.mxu1 %v8348_v42  ;;  %v8538_v38 = vcombine.low %v1075_v24, %v1079_v25  ;;  %v8547_v42 = vcombine.high %v1083_v31, %v1087_v32  ;;  %v1111_v55 = vld [vmem:[#allocation7 + $0x620] sm:$0xff] }
  0xaf   :  { %753 = vmatprep.subr.bf16.mxu0 %v8355_v41  ;;  %796 = vmatprep.subr.bf16.mxu1 %v8357_v45  ;;  %v8410_v41 = vcombine.low %v947_v27, %v951_v28  ;;  %v8419_v45 = vcombine.high %v955_v35, %v959_v36  ;;  %v979_v58 = vld [vmem:[#allocation7 + $0x200] sm:$0xff] }
  0xb0   :  { %v983_v59 = vld [vmem:[#allocation7 + $0x220] sm:$0xff] }
  0xb1   :  { %v1115_v62 = vld [vmem:[#allocation7 + $0x640] sm:$0xff] }
  0xb2   :  { %754 = vmatpush1.bf16.msra.mxu0 %v8354_v46  ;;  %797 = vmatpush1.bf16.msra.mxu1 %v8356_v0  ;;  %v8546_v46 = vcombine.low %v1083_v31, %v1087_v32  ;;  %v8555_v0 = vcombine.high %v1091_v39, %v1095_v40  ;;  %v1119_v63 = vld [vmem:[#allocation7 + $0x660] sm:$0xff] }
  0xb3   :  { %755 = vmatprep.subr.bf16.mxu0 %v8363_v49  ;;  %798 = vmatprep.subr.bf16.mxu1 %v8365_v52  ;;  %v8418_v49 = vcombine.low %v955_v35, %v959_v36  ;;  %v8427_v52 = vcombine.high %v963_v43, %v967_v44  ;;  %v987_v3 = vld [vmem:[#allocation7 + $0x240] sm:$0xff] }
  0xb4   :  { %v991_v4 = vld [vmem:[#allocation7 + $0x260] sm:$0xff] }
  0xb5   :  { %v1123_v7 = vld [vmem:[#allocation7 + $0x680] sm:$0xff] }
  0xb6   :  { %756 = vmatpush1.bf16.msra.mxu0 %v8362_v53  ;;  %799 = vmatpush1.bf16.msra.mxu1 %v8364_v57  ;;  %v8554_v53 = vcombine.low %v1091_v39, %v1095_v40  ;;  %v8563_v57 = vcombine.high %v1099_v47, %v1103_v48  ;;  %v1127_v8 = vld [vmem:[#allocation7 + $0x6a0] sm:$0xff] }
  0xb7   :  { %757 = vmatprep.subr.bf16.mxu0 %v8371_v56  ;;  %800 = vmatprep.subr.bf16.mxu1 %v8373_v60  ;;  %v8426_v56 = vcombine.low %v963_v43, %v967_v44  ;;  %v8435_v60 = vcombine.high %v971_v50, %v975_v51  ;;  %v995_v11 = vld [vmem:[#allocation7 + $0x280] sm:$0xff] }
  0xb8   :  { %v999_v12 = vld [vmem:[#allocation7 + $0x2a0] sm:$0xff] }
  0xb9   :  { %v1003_v20 = vld [vmem:[#allocation7 + $0x2c0] sm:$0xff] }
  0xba   :  { %758 = vmatpush1.bf16.msra.mxu0 %v8370_v61  ;;  %801 = vmatpush1.bf16.msra.mxu1 %v8372_v1  ;;  %v8562_v61 = vcombine.low %v1099_v47, %v1103_v48  ;;  %v8434_v1 = vcombine.low %v971_v50, %v975_v51  ;;  %v1007_v21 = vld [vmem:[#allocation7 + $0x2e0] sm:$0xff] }
  0xbb   :  { %4072 = vmatprep.subr.bf16.mxu0 %v8507_v2  ;;  %4029 = vmatprep.subr.bf16.mxu1 %v8379_v5  ;;  %v8571_v2 = vcombine.high %v1107_v54, %v1111_v55  ;;  %v8443_v5 = vcombine.high %v979_v58, %v983_v59  ;;  %v1139_v24 = vld [vmem:[#allocation7 + $0x700] sm:$0xff] }
  0xbc   :  { %v1143_v25 = vld [vmem:[#allocation7 + $0x720] sm:$0xff] }
  0xbd   :  { %8376 = vmatmul.mubr.msk.bf16.vlgmr.msra.gmra.mrb[4].mxu0 %vm657_vm2, %v10589_v19  ;;  %8377 = vmatmul.mubr.msk.bf16.vlgmr.msra.gmra.mrb[4].mxu1 %vm657_vm2, %v10589_v19  ;;  %v8531_v19 = vcombine.high %v1067_v15, %v1071_v16  ;;  %v1131_v15 = vld [vmem:[#allocation7 + $0x6c0] sm:$0xff] }
  0xbe   :  { %4073 = vmatpush1.bf16.msra.mxu0 %v8506_v6  ;;  %4030 = vmatpush1.bf16.msra.mxu1 %v8378_v9  ;;  %v8570_v6 = vcombine.low %v1107_v54, %v1111_v55  ;;  %v8442_v9 = vcombine.low %v979_v58, %v983_v59  ;;  %v1135_v16 = vld [vmem:[#allocation7 + $0x6e0] sm:$0xff] }
  0xbf   :  { %4074 = vmatprep.subr.bf16.mxu0 %v8515_v10  ;;  %4031 = vmatprep.subr.bf16.mxu1 %v8387_v13  ;;  %v8579_v10 = vcombine.high %v1115_v62, %v1119_v63  ;;  %v8451_v13 = vcombine.high %v987_v3, %v991_v4  ;;  %v1011_v27 = vld [vmem:[#allocation7 + $0x300] sm:$0xff] }
  0xc0   :  { %v1015_v28 = vld [vmem:[#allocation7 + $0x320] sm:$0xff] }
  0xc1   :  { %v1147_v31 = vld [vmem:[#allocation7 + $0x740] sm:$0xff]  ;;  %v8474_v39 = vcombine.low %v1011_v27, %v1015_v28 }
  0xc2   :  { %4075 = vmatpush1.bf16.msra.mxu0 %v8514_v14  ;;  %4032 = vmatpush1.bf16.msra.mxu1 %v8386_v17  ;;  %v8578_v14 = vcombine.low %v1115_v62, %v1119_v63  ;;  %v8450_v17 = vcombine.low %v987_v3, %v991_v4  ;;  %v1151_v32 = vld [vmem:[#allocation7 + $0x760] sm:$0xff]  ;;  %v920_v63 = vld [vmem:[#allocation7 + $0x28] sm:$0xff]  ;;  %v835_v4 = vlaneseq }
  0xc3   :  { %4076 = vmatprep.subr.bf16.mxu0 %v8523_v18  ;;  %4033 = vmatprep.subr.bf16.mxu1 %v8395_v22  ;;  %v8587_v18 = vcombine.high %v1123_v7, %v1127_v8  ;;  %v8459_v22 = vcombine.high %v995_v11, %v999_v12  ;;  %v1019_v35 = vld [vmem:[#allocation7 + $0x340] sm:$0xff]  ;;  %v8611_v40 = vcombine.high %v1147_v31, %v1151_v32 }
  0xc4   :  { %v1023_v36 = vld [vmem:[#allocation7 + $0x360] sm:$0xff] }
  0xc5   :  { %v8482_v43 = vcombine.low %v1019_v35, %v1023_v36  ;;  %v1027_v44 = vld [vmem:[#allocation7 + $0x380] sm:$0xff] }
  0xc6   :  { %4077 = vmatpush1.bf16.msra.mxu0 %v8522_v23  ;;  %4034 = vmatpush1.bf16.msra.mxu1 %v8394_v26  ;;  %v8586_v23 = vcombine.low %v1123_v7, %v1127_v8  ;;  %v8458_v26 = vcombine.low %v995_v11, %v999_v12  ;;  %v1159_v48 = vld [vmem:[#allocation7 + $0x7a0] sm:$0xff]  ;;  %v10614_v7 = vld [vmem:[#allocation6] sm:$0xff] }
  0xc7   :  { %4078 = vmatprep.subr.bf16.mxu0 %v8531_v19  ;;  %4035 = vmatprep.subr.bf16.mxu1 %v8403_v29  ;;  %v8595_v19 = vcombine.high %v1131_v15, %v1135_v16  ;;  %v8467_v29 = vcombine.high %v1003_v20, %v1007_v21  ;;  %v1035_v51 = vld [vmem:[#allocation7 + $0x3c0] sm:$0xff] }
  0xc8   :  { %v1167_v55 = vld [vmem:[#allocation7 + $0x7e0] sm:$0xff] }
  0xc9   :  { %v10601_v59 = vld [vmem:[#allocation7 + $0x800] sm:$0xff] }
  0xca   :  { %4079 = vmatpush1.bf16.msra.mxu0 %v8530_v30  ;;  %4036 = vmatpush1.bf16.msra.mxu1 %v8402_v33  ;;  %v8594_v30 = vcombine.low %v1131_v15, %v1135_v16  ;;  %v8466_v33 = vcombine.low %v1003_v20, %v1007_v21 }
  0xcb   :  { %4080 = vmatprep.subr.bf16.mxu0 %v8539_v34  ;;  %4037 = vmatprep.subr.bf16.mxu1 %v8411_v37  ;;  %v8603_v34 = vcombine.high %v1139_v24, %v1143_v25  ;;  %v8475_v37 = vcombine.high %v1011_v27, %v1015_v28 }
  0xce   :  { %4081 = vmatpush1.bf16.msra.mxu0 %v8538_v38  ;;  %4038 = vmatpush1.bf16.msra.mxu1 %v8410_v41  ;;  %v8602_v38 = vcombine.low %v1139_v24, %v1143_v25  ;;  %v8483_v41 = vcombine.high %v1019_v35, %v1023_v36 }
  0xcf   :  { %4082 = vmatprep.subr.bf16.mxu0 %v8547_v42  ;;  %4039 = vmatprep.subr.bf16.mxu1 %v8419_v45  ;;  %v8610_v42 = vcombine.low %v1147_v31, %v1151_v32  ;;  %v1031_v45 = vld [vmem:[#allocation7 + $0x3a0] sm:$0xff] }
  0xd0   :  { %v8491_v47 = vcombine.high %v1027_v44, %v1031_v45 }
  0xd2   :  { %4083 = vmatpush1.bf16.msra.mxu0 %v8546_v46  ;;  %4040 = vmatpush1.bf16.msra.mxu1 %v8418_v49  ;;  %v1155_v46 = vld [vmem:[#allocation7 + $0x780] sm:$0xff]  ;;  %v8490_v49 = vcombine.low %v1027_v44, %v1031_v45 }
  0xd3   :  { %4084 = vmatprep.subr.bf16.mxu0 %v8555_v0  ;;  %4041 = vmatprep.subr.bf16.mxu1 %v8427_v52  ;;  %v8618_v0 = vcombine.low %v1155_v46, %v1159_v48  ;;  %v8619_v50 = vcombine.high %v1155_v46, %v1159_v48  ;;  %v1039_v52 = vld [vmem:[#allocation7 + $0x3e0] sm:$0xff] }
  0xd4   :  { %v8499_v54 = vcombine.high %v1035_v51, %v1039_v52 }
  0xd6   :  { %4085 = vmatpush1.bf16.msra.mxu0 %v8554_v53  ;;  %4042 = vmatpush1.bf16.msra.mxu1 %v8426_v56  ;;  %v1163_v53 = vld [vmem:[#allocation7 + $0x7c0] sm:$0xff]  ;;  %v8498_v56 = vcombine.low %v1035_v51, %v1039_v52 }
  0xd7   :  { %4086 = vmatprep.subr.bf16.mxu0 %v8563_v57  ;;  %4043 = vmatprep.subr.bf16.mxu1 %v8435_v60  ;;  %v8626_v57 = vcombine.low %v1163_v53, %v1167_v55  ;;  %v8627_v58 = vcombine.high %v1163_v53, %v1167_v55  ;;  %v10603_v60 = vld [vmem:[#allocation7 + $0x820] sm:$0xff] }
  0xd8   :  { %v8635_v62 = vcombine.high %v10601_v59, %v10603_v60  ;;  %v1191_v51 = vld [vmem:[#allocation7 + $0x8a0] sm:$0xff] }
  0xda   :  { %4087 = vmatpush1.bf16.msra.mxu0 %v8562_v61  ;;  %4044 = vmatpush1.bf16.msra.mxu1 %v8434_v1  ;;  %v916_v61 = vld [vmem:[#allocation7 + $0x8] sm:$0xff]  ;;  %v8634_v1 = vcombine.low %v10601_v59, %v10603_v60  ;;  %v1199_v59 = vld [vmem:[#allocation7 + $0x8e0] sm:$0xff] }
  0xdb   :  { %4088 = vmatprep.subr.bf16.mxu0 %v8571_v2  ;;  %4045 = vmatprep.subr.bf16.mxu1 %v8443_v5  ;;  %v8380_v2 = vcombine.low %v916_v61, %v920_v63  ;;  %v8381_v3 = vcombine.high %v916_v61, %v920_v63  ;;  %v10609_v5 = vshrl.u32 %v835_v4, 7  ;;  %v952_v4 = vld [vmem:[#allocation7 + $0x128] sm:$0xff] }
  0xdd   :  { %v10617_v8 = vsub.s32 2, %v10609_v5  ;;  %v10647_v63 = vsub.s32 4, %v10609_v5 }
  0xde   :  { %4089 = vmatpush1.bf16.msra.mxu0 %v8570_v6  ;;  %4046 = vmatpush1.bf16.msra.mxu1 %v8442_v9  ;;  %v10612_v6 = vsub.s32 0, %v10609_v5  ;;  %v10620_v9 = vsub.s32 1, %v10609_v5 }
  0xdf   :  { %4090 = vmatprep.subr.bf16.mxu0 %v8579_v10  ;;  %4047 = vmatprep.subr.bf16.mxu1 %v8451_v13  ;;  %v10623_v10 = vsub.s32 3, %v10609_v5  ;;  %v846_v12 = vrot.slane %v10614_v7, %v10617_v8 }
  0xe0   :  { %v838_v11 = vrot.slane %v10614_v7, %v10612_v6  ;;  %v842_v13 = vrot.slane %v10614_v7, %v10620_v9 }
  0xe2   :  { %4091 = vmatpush1.bf16.msra.mxu0 %v8578_v14  ;;  %4048 = vmatpush1.bf16.msra.mxu1 %v8450_v17  ;;  %v850_v14 = vrot.slane %v10614_v7, %v10623_v10 }
  0xe3   :  { %4092 = vmatprep.subr.bf16.mxu0 %v8587_v18  ;;  %4049 = vmatprep.subr.bf16.mxu1 %v8459_v22 }
  0xe6   :  { %4093 = vmatpush1.bf16.msra.mxu0 %v8586_v23  ;;  %4050 = vmatpush1.bf16.msra.mxu1 %v8458_v26 }
  0xe7   :  { %4094 = vmatprep.subr.bf16.mxu0 %v8595_v19  ;;  %4051 = vmatprep.subr.bf16.mxu1 %v8467_v29 }
  0xea   :  { %4095 = vmatpush1.bf16.msra.mxu0 %v8594_v30  ;;  %4052 = vmatpush1.bf16.msra.mxu1 %v8466_v33 }
  0xeb   :  { %4096 = vmatprep.subr.bf16.mxu0 %v8603_v34  ;;  %4053 = vmatprep.subr.bf16.mxu1 %v8475_v37 }
  0xee   :  { %4097 = vmatpush1.bf16.msra.mxu0 %v8602_v38  ;;  %4054 = vmatpush1.bf16.msra.mxu1 %v8474_v39  ;;  %v1179_v38 = vld [vmem:[#allocation7 + $0x840] sm:$0xff] }
  0xef   :  { %4098 = vmatprep.subr.bf16.mxu0 %v8611_v40  ;;  %4055 = vmatprep.subr.bf16.mxu1 %v8483_v41  ;;  %v1183_v41 = vld [vmem:[#allocation7 + $0x860] sm:$0xff] }
  0xf0   :  { %v8642_v53 = vcombine.low %v1179_v38, %v1183_v41 }
  0xf2   :  { %4099 = vmatpush1.bf16.msra.mxu0 %v8610_v42  ;;  %4056 = vmatpush1.bf16.msra.mxu1 %v8482_v43  ;;  %v924_v42 = vld [vmem:[#allocation7 + $0x48] sm:$0xff] }
  0xf3   :  { %4057 = vmatprep.subr.bf16.mxu1 %v8491_v47  ;;  %4100 = vmatprep.subr.bf16.mxu0 %v8619_v50  ;;  %v928_v43 = vld [vmem:[#allocation7 + $0x68] sm:$0xff]  ;;  %v8643_v47 = vcombine.high %v1179_v38, %v1183_v41  ;;  %v1187_v50 = vld [vmem:[#allocation7 + $0x880] sm:$0xff] }
  0xf4   :  { %v8389_v48 = vcombine.high %v924_v42, %v928_v43  ;;  %v8388_v52 = vcombine.low %v924_v42, %v928_v43  ;;  %v8651_v55 = vcombine.high %v1187_v50, %v1191_v51  ;;  %v8650_v61 = vcombine.low %v1187_v50, %v1191_v51 }
  0xf6   :  { %4058 = vmatpush1.bf16.msra.mxu1 %v8490_v49  ;;  %4101 = vmatpush1.bf16.msra.mxu0 %v8618_v0  ;;  %v932_v49 = vld [vmem:[#allocation7 + $0x88] sm:$0xff] }
  0xf7   :  { %4059 = vmatprep.subr.bf16.mxu1 %v8499_v54  ;;  %4102 = vmatprep.subr.bf16.mxu0 %v8627_v58  ;;  %v936_v0 = vld [vmem:[#allocation7 + $0xa8] sm:$0xff]  ;;  %v1195_v58 = vld [vmem:[#allocation7 + $0x8c0] sm:$0xff] }
  0xf8   :  { %v8397_v54 = vcombine.high %v932_v49, %v936_v0  ;;  %v8396_v60 = vcombine.low %v932_v49, %v936_v0  ;;  %v1223_v49 = vld [vmem:[#allocation7 + $0x9a0] sm:$0xff] }
  0xfa   :  { %4060 = vmatpush1.bf16.msra.mxu1 %v8498_v56  ;;  %4103 = vmatpush1.bf16.msra.mxu0 %v8626_v57  ;;  %v940_v56 = vld [vmem:[#allocation7 + $0xc8] sm:$0xff] }
  0xfb   :  { %4115 = vmatprep.subr.bf16.mxu0 %v8635_v62  ;;  %4201 = vmatprep.subr.bf16.mxu1 %v8381_v3  ;;  %v944_v57 = vld [vmem:[#allocation7 + $0xe8] sm:$0xff] }
  0xfc   :  { %v8405_v62 = vcombine.high %v940_v56, %v944_v57  ;;  %v948_v3 = vld [vmem:[#allocation7 + $0x108] sm:$0xff] }
 0x178   :  { %v695_v15 = vpop.f32.mrb[0].mxu0  ;;  %v738_v17 = vpop.f32.mrb[0].mxu1 }
 0x179   :  { %v875_v16 = vadd.f32 %v838_v11, %v695_v15  ;;  %v697_v18 = vpop.f32.mrb[1].mxu0  ;;  %v877_v20 = vadd.f32 %v846_v12, %v738_v17  ;;  %v740_v22 = vpop.f32.mrb[1].mxu1  ;;  %v8404_v15 = vcombine.low %v940_v56, %v944_v57  ;;  %v854_v17 = vrot.slane %v10614_v7, %v10647_v63 }
 0x17a   :  { %v876_v21 = vadd.f32 %v842_v13, %v697_v18  ;;  %v699_v23 = vpop.f32.mrb[2].mxu0  ;;  %v878_v24 = vadd.f32 %v850_v14, %v740_v22  ;;  %v742_v26 = vpop.f32.mrb[2].mxu1  ;;  %v8413_v18 = vcombine.high %v948_v3, %v952_v4  ;;  %v956_v22 = vld [vmem:[#allocation7 + $0x148] sm:$0xff] }
 0x17b   :  { %v883_v25 = vadd.f32 %v838_v11, %v699_v23  ;;  %v701_v19 = vpop.f32.mrb[3].mxu0  ;;  %v893_v27 = vmax.f32 %v877_v20, 0.0  ;;  %v885_v28 = vadd.f32 %v846_v12, %v742_v26  ;;  %v744_v30 = vpop.f32.mrb[3].mxu1  ;;  %v891_v31 = vmax.f32 %v875_v16, 0.0  ;;  %v1203_v12 = vld [vmem:[#allocation7 + $0x900] sm:$0xff]  ;;  %v960_v23 = vld [vmem:[#allocation7 + $0x168] sm:$0xff] }
 0x17c   :  { %v884_v29 = vadd.f32 %v842_v13, %v701_v19  ;;  %v894_v32 = vmax.f32 %v878_v24, 0.0  ;;  %v886_v34 = vadd.f32 %v850_v14, %v744_v30  ;;  %v892_v35 = vmax.f32 %v876_v21, 0.0  ;;  %v1207_v13 = vld [vmem:[#allocation7 + $0x920] sm:$0xff] }
 0x17d   :  { %v899_v33 = vmax.f32 %v883_v25, 0.0  ;;  %v901_v36 = vmax.f32 %v885_v28, 0.0  ;;  %v10653_v11 = vsub.s32 6, %v10609_v5  ;;  %v865_v14 = vsub.s32 7, %v10609_v5  ;;  %v1211_v25 = vld [vmem:[#allocation7 + $0x940] sm:$0xff] }
 0x17e   :  { %v900_v37 = vmax.f32 %v884_v29, 0.0  ;;  %v902_v40 = vmax.f32 %v886_v34, 0.0  ;;  %v8658_v16 = vcombine.low %v1195_v58, %v1199_v59  ;;  %v8667_v21 = vcombine.high %v1203_v12, %v1207_v13  ;;  %v1215_v26 = vld [vmem:[#allocation7 + $0x960] sm:$0xff]  ;;  %v968_v34 = vld [vmem:[#allocation7 + $0x1a8] sm:$0xff] }
 0x17f   :  { %v10633_v39 = vpack.c.bf16 %v899_v33, %v891_v31  ;;  %v10635_v44 = vpack.c.bf16 %v901_v36, %v893_v27  ;;  %v862_v24 = vrot.slane %v10614_v7, %v10653_v11  ;;  %v866_v19 = vrot.slane %v10614_v7, %v865_v14  ;;  %v964_v33 = vld [vmem:[#allocation7 + $0x188] sm:$0xff] }
 0x180   :  { %v10637_v45 = vpack.c.bf16 %v900_v37, %v892_v35  ;;  %v10639_v46 = vpack.c.bf16 %v902_v40, %v894_v32  ;;  %v8412_v28 = vcombine.low %v948_v3, %v952_v4  ;;  %v8666_v31 = vcombine.low %v1203_v12, %v1207_v13  ;;  %v976_v3 = vld [vmem:[#allocation7 + $0x1e8] sm:$0xff]  ;;  %v1227_v13 = vld [vmem:[#allocation7 + $0x9c0] sm:$0xff] }
 0x181   :  { %v8421_v32 = vcombine.high %v956_v22, %v960_v23  ;;  %v8675_v38 = vcombine.high %v1211_v25, %v1215_v26  ;;  %v8674_v43 = vcombine.low %v1211_v25, %v1215_v26  ;;  %v980_v25 = vld [vmem:[#allocation7 + $0x208] sm:$0xff] }
 0x182   :  { %4061 = vmatprep.mubr.bf16.mxu1 %v10637_v45  ;;  %4104 = vmatprep.mubr.bf16.mxu0 %v10639_v46  ;;  %v984_v26 = vld [vmem:[#allocation7 + $0x228] sm:$0xff] }
 0x183   :  { %4062 = vmatmul.mubr.bf16.vlgmr.msra.gmra.mrb[8].mxu1 %v10633_v39  ;;  %4105 = vmatmul.mubr.bf16.vlgmr.msra.gmra.mrb[8].mxu0 %v10635_v44 }
 0x184   :  { %4202 = vmatpush1.bf16.msra.mxu1 %v8380_v2  ;;  %4116 = vmatpush1.bf16.msra.mxu0 %v8634_v1  ;;  %v8659_v1 = vcombine.high %v1195_v58, %v1199_v59  ;;  %v10650_v2 = vsub.s32 5, %v10609_v5 }
 0x185   :  { %4233 = vmatprep.mubr.bf16.mxu1 %v10637_v45  ;;  %4117 = vmatprep.subr.bf16.mxu0 %v8643_v47  ;;  %v8420_v47 = vcombine.low %v956_v22, %v960_v23 }
 0x186   :  { %4203 = vmatprep.subr.bf16.mxu1 %v8389_v48  ;;  %v858_v20 = vrot.slane %v10614_v7, %v10650_v2  ;;  %v1219_v48 = vld [vmem:[#allocation7 + $0x980] sm:$0xff] }
 0x188   :  { %4204 = vmatpush1.bf16.msra.mxu1 %v8388_v52  ;;  %4118 = vmatpush1.bf16.msra.mxu0 %v8642_v53  ;;  %v8429_v52 = vcombine.high %v964_v33, %v968_v34 }
 0x189   :  { %4205 = vmatprep.subr.bf16.mxu1 %v8397_v54  ;;  %4119 = vmatprep.subr.bf16.mxu0 %v8651_v55 }
 0x18c   :  { %4206 = vmatpush1.bf16.msra.mxu1 %v8396_v60  ;;  %4120 = vmatpush1.bf16.msra.mxu0 %v8650_v61 }
 0x18d   :  { %4207 = vmatprep.subr.bf16.mxu1 %v8405_v62  ;;  %4121 = vmatprep.subr.bf16.mxu0 %v8659_v1  ;;  %v8683_v62 = vcombine.high %v1219_v48, %v1223_v49  ;;  %v972_v1 = vld [vmem:[#allocation7 + $0x1c8] sm:$0xff] }
 0x18e   :  { %v8437_v22 = vcombine.high %v972_v1, %v976_v3 }
 0x190   :  { %4208 = vmatpush1.bf16.msra.mxu1 %v8404_v15  ;;  %v781_v27 = vpop.f32.mrb[4].mxu0  ;;  %4122 = vmatpush1.bf16.msra.mxu0 %v8658_v16  ;;  %v824_v35 = vpop.f32.mrb[4].mxu1  ;;  %v1231_v15 = vld [vmem:[#allocation7 + $0x9e0] sm:$0xff] }
 0x191   :  { %v879_v29 = vadd.f32 %v854_v17, %v781_v27  ;;  %v783_v30 = vpop.f32.mrb[5].mxu0  ;;  %4209 = vmatprep.subr.bf16.mxu1 %v8413_v18  ;;  %4123 = vmatprep.subr.bf16.mxu0 %v8667_v21  ;;  %v881_v40 = vadd.f32 %v862_v24, %v824_v35  ;;  %v826_v41 = vpop.f32.mrb[5].mxu1  ;;  %v8428_v18 = vcombine.low %v964_v33, %v968_v34  ;;  %v1239_v27 = vld [vmem:[#allocation7 + $0xa20] sm:$0xff]  ;;  %v992_v33 = vld [vmem:[#allocation7 + $0x268] sm:$0xff] }
 0x192   :  { %v880_v36 = vadd.f32 %v858_v20, %v783_v30  ;;  %v785_v37 = vpop.f32.mrb[6].mxu0  ;;  %v882_v0 = vadd.f32 %v866_v19, %v826_v41  ;;  %v828_v50 = vpop.f32.mrb[6].mxu1  ;;  %v8682_v21 = vcombine.low %v1219_v48, %v1223_v49  ;;  %v8445_v30 = vcombine.high %v980_v25, %v984_v26  ;;  %v1243_v34 = vld [vmem:[#allocation7 + $0xa40] sm:$0xff]  ;;  %v996_v41 = vld [vmem:[#allocation7 + $0x288] sm:$0xff] }
 0x193   :  { %v887_v42 = vadd.f32 %v854_v17, %v785_v37  ;;  %v787_v7 = vpop.f32.mrb[7].mxu0  ;;  %v897_v53 = vmax.f32 %v881_v40, 0.0  ;;  %v889_v54 = vadd.f32 %v862_v24, %v828_v50  ;;  %v830_v55 = vpop.f32.mrb[7].mxu1  ;;  %v895_v56 = vmax.f32 %v879_v29, 0.0  ;;  %v1247_v35 = vld [vmem:[#allocation7 + $0xa60] sm:$0xff]  ;;  %v1004_v50 = vld [vmem:[#allocation7 + $0x2c8] sm:$0xff] }
 0x194   :  { %v888_v51 = vadd.f32 %v858_v20, %v787_v7  ;;  %4210 = vmatpush1.bf16.msra.mxu1 %v8412_v28  ;;  %4124 = vmatpush1.bf16.msra.mxu0 %v8666_v31  ;;  %v898_v58 = vmax.f32 %v882_v0, 0.0  ;;  %v890_v59 = vadd.f32 %v866_v19, %v830_v55  ;;  %v896_v60 = vmax.f32 %v880_v36, 0.0  ;;  %v1235_v19 = vld [vmem:[#allocation7 + $0xa00] sm:$0xff] }
 0x195   :  { %v903_v57 = vmax.f32 %v887_v42, 0.0  ;;  %4211 = vmatprep.subr.bf16.mxu1 %v8421_v32  ;;  %4125 = vmatprep.subr.bf16.mxu0 %v8675_v38  ;;  %v905_v4 = vmax.f32 %v889_v54, 0.0  ;;  %v8691_v24 = vcombine.high %v1227_v13, %v1231_v15  ;;  %v8436_v28 = vcombine.low %v972_v1, %v976_v3  ;;  %v988_v32 = vld [vmem:[#allocation7 + $0x248] sm:$0xff]  ;;  %v1251_v7 = vld [vmem:[#allocation7 + $0xa80] sm:$0xff] }
 0x196   :  { %v904_v61 = vmax.f32 %v888_v51, 0.0  ;;  %v906_v16 = vmax.f32 %v890_v59, 0.0  ;;  %v8690_v29 = vcombine.low %v1227_v13, %v1231_v15  ;;  %v8699_v31 = vcombine.high %v1235_v19, %v1239_v27  ;;  %v1000_v42 = vld [vmem:[#allocation7 + $0x2a8] sm:$0xff] }
 0x197   :  { %v10665_v12 = vpack.c.bf16 %v903_v57, %v895_v56  ;;  %v10669_v20 = vpack.c.bf16 %v905_v4, %v897_v53  ;;  %v8444_v36 = vcombine.low %v980_v25, %v984_v26  ;;  %v8698_v37 = vcombine.low %v1235_v19, %v1239_v27  ;;  %v1008_v51 = vld [vmem:[#allocation7 + $0x2e8] sm:$0xff]  ;;  %v1263_v53 = vld [vmem:[#allocation7 + $0xae0] sm:$0xff] }
 0x198   :  { %v10667_v17 = vpack.c.bf16 %v904_v61, %v896_v60  ;;  %4212 = vmatpush1.bf16.msra.mxu1 %v8420_v47  ;;  %4126 = vmatpush1.bf16.msra.mxu0 %v8674_v43  ;;  %v10671_v23 = vpack.c.bf16 %v906_v16, %v898_v58  ;;  %v8453_v38 = vcombine.high %v988_v32, %v992_v33  ;;  %v1255_v43 = vld [vmem:[#allocation7 + $0xaa0] sm:$0xff]  ;;  %v1012_v58 = vld [vmem:[#allocation7 + $0x308] sm:$0xff] }
 0x199   :  { %4213 = vmatprep.subr.bf16.mxu1 %v8429_v52  ;;  %4127 = vmatprep.subr.bf16.mxu0 %v8683_v62  ;;  %v8707_v40 = vcombine.high %v1243_v34, %v1247_v35  ;;  %v8452_v47 = vcombine.low %v988_v32, %v992_v33  ;;  %v8706_v48 = vcombine.low %v1243_v34, %v1247_v35  ;;  %v1259_v52 = vld [vmem:[#allocation7 + $0xac0] sm:$0xff]  ;;  %v1016_v59 = vld [vmem:[#allocation7 + $0x328] sm:$0xff] }
 0x19a   :  { %4147 = vmatprep.mubr.bf16.mxu0 %v10667_v17  ;;  %v8461_v49 = vcombine.high %v996_v41, %v1000_v42  ;;  %v8715_v0 = vcombine.high %v1251_v7, %v1255_v43  ;;  %v8460_v54 = vcombine.low %v996_v41, %v1000_v42  ;;  %v8714_v55 = vcombine.low %v1251_v7, %v1255_v43  ;;  %v1267_v60 = vld [vmem:[#allocation7 + $0xb00] sm:$0xff]  ;;  %v1020_v13 = vld [vmem:[#allocation7 + $0x348] sm:$0xff] }
 0x19b   :  { %v8469_v56 = vcombine.high %v1004_v50, %v1008_v51  ;;  %v8723_v57 = vcombine.high %v1259_v52, %v1263_v53  ;;  %v1271_v61 = vld [vmem:[#allocation7 + $0xb20] sm:$0xff]  ;;  %v8468_v62 = vcombine.low %v1004_v50, %v1008_v51  ;;  %v8722_v1 = vcombine.low %v1259_v52, %v1263_v53  ;;  %v1024_v15 = vld [vmem:[#allocation7 + $0x368] sm:$0xff] }
 0x19c   :  { %4214 = vmatpush1.bf16.msra.mxu1 %v8428_v18  ;;  %4128 = vmatpush1.bf16.msra.mxu0 %v8682_v21  ;;  %v8477_v3 = vcombine.high %v1012_v58, %v1016_v59  ;;  %v8731_v4 = vcombine.high %v1267_v60, %v1271_v61  ;;  %v1275_v16 = vld [vmem:[#allocation7 + $0xb40] sm:$0xff]  ;;  %v8476_v21 = vcombine.low %v1012_v58, %v1016_v59  ;;  %v1028_v26 = vld [vmem:[#allocation7 + $0x388] sm:$0xff] }
 0x19d   :  { %4215 = vmatprep.subr.bf16.mxu1 %v8437_v22  ;;  %4129 = vmatprep.subr.bf16.mxu0 %v8691_v24  ;;  %v1279_v18 = vld [vmem:[#allocation7 + $0xb60] sm:$0xff]  ;;  %v8730_v22 = vcombine.low %v1267_v60, %v1271_v61  ;;  %v8485_v24 = vcombine.high %v1020_v13, %v1024_v15  ;;  %v1032_v19 = vld [vmem:[#allocation7 + $0x3a8] sm:$0xff] }
 0x19e   :  { %v8739_v25 = vcombine.high %v1275_v16, %v1279_v18  ;;  %v1283_v27 = vld [vmem:[#allocation7 + $0xb80] sm:$0xff]  ;;  %v1036_v33 = vld [vmem:[#allocation7 + $0x3c8] sm:$0xff] }
 0x19f   :  { %v1040_v34 = vld [vmem:[#allocation7 + $0x3e8] sm:$0xff]  ;;  %v1291_v35 = vld [vmem:[#allocation7 + $0xbc0] sm:$0xff] }
 0x1a0   :  { %4216 = vmatpush1.bf16.msra.mxu1 %v8436_v28  ;;  %4130 = vmatpush1.bf16.msra.mxu0 %v8690_v29  ;;  %v1287_v28 = vld [vmem:[#allocation7 + $0xba0] sm:$0xff]  ;;  %v8484_v29 = vcombine.low %v1020_v13, %v1024_v15  ;;  %v1044_v42 = vld [vmem:[#allocation7 + $0x408] sm:$0xff] }
 0x1a1   :  { %4217 = vmatprep.subr.bf16.mxu1 %v8445_v30  ;;  %4131 = vmatprep.subr.bf16.mxu0 %v8699_v31  ;;  %v8738_v30 = vcombine.low %v1275_v16, %v1279_v18  ;;  %v8493_v31 = vcombine.high %v1028_v26, %v1032_v19  ;;  %v8747_v32 = vcombine.high %v1283_v27, %v1287_v28  ;;  %v1048_v7 = vld [vmem:[#allocation7 + $0x428] sm:$0xff]  ;;  %v1299_v43 = vld [vmem:[#allocation7 + $0xc00] sm:$0xff] }
 0x1a2   :  { %v1307_v51 = vld [vmem:[#allocation7 + $0xc40] sm:$0xff]  ;;  %v8508_v53 = vcombine.low %v1044_v42, %v1048_v7  ;;  %v1060_v58 = vld [vmem:[#allocation7 + $0x488] sm:$0xff] }
 0x1a3   :  { %v1311_v52 = vld [vmem:[#allocation7 + $0xc60] sm:$0xff]  ;;  %v1064_v59 = vld [vmem:[#allocation7 + $0x4a8] sm:$0xff] }
 0x1a4   :  { %4218 = vmatpush1.bf16.msra.mxu1 %v8444_v36  ;;  %4132 = vmatpush1.bf16.msra.mxu0 %v8698_v37  ;;  %v1295_v36 = vld [vmem:[#allocation7 + $0xbe0] sm:$0xff]  ;;  %v8492_v37 = vcombine.low %v1028_v26, %v1032_v19  ;;  %v1068_v15 = vld [vmem:[#allocation7 + $0x4c8] sm:$0xff] }
 0x1a5   :  { %4219 = vmatprep.subr.bf16.mxu1 %v8453_v38  ;;  %4133 = vmatprep.subr.bf16.mxu0 %v8707_v40  ;;  %v8746_v38 = vcombine.low %v1283_v27, %v1287_v28  ;;  %v8501_v40 = vcombine.high %v1036_v33, %v1040_v34  ;;  %v8755_v41 = vcombine.high %v1291_v35, %v1295_v36  ;;  %v1315_v61 = vld [vmem:[#allocation7 + $0xc80] sm:$0xff]  ;;  %v1072_v16 = vld [vmem:[#allocation7 + $0x4e8] sm:$0xff] }
 0x1a6   :  { %v1323_v18 = vld [vmem:[#allocation7 + $0xcc0] sm:$0xff]  ;;  %v1076_v19 = vld [vmem:[#allocation7 + $0x508] sm:$0xff] }
 0x1a7   :  { %v1080_v27 = vld [vmem:[#allocation7 + $0x528] sm:$0xff]  ;;  %v1331_v28 = vld [vmem:[#allocation7 + $0xd00] sm:$0xff] }
 0x1a8   :  { %4220 = vmatpush1.bf16.msra.mxu1 %v8452_v47  ;;  %4134 = vmatpush1.bf16.msra.mxu0 %v8706_v48  ;;  %v1303_v47 = vld [vmem:[#allocation7 + $0xc20] sm:$0xff]  ;;  %v8500_v48 = vcombine.low %v1036_v33, %v1040_v34  ;;  %v1084_v34 = vld [vmem:[#allocation7 + $0x548] sm:$0xff] }
 0x1a9   :  { %4221 = vmatprep.subr.bf16.mxu1 %v8461_v49  ;;  %4135 = vmatprep.subr.bf16.mxu0 %v8715_v0  ;;  %v8754_v49 = vcombine.low %v1291_v35, %v1295_v36  ;;  %v8509_v0 = vcombine.high %v1044_v42, %v1048_v7  ;;  %v8763_v50 = vcombine.high %v1299_v43, %v1303_v47  ;;  %v1088_v35 = vld [vmem:[#allocation7 + $0x568] sm:$0xff]  ;;  %v1339_v36 = vld [vmem:[#allocation7 + $0xd40] sm:$0xff] }
 0x1aa   :  { %v1092_v7 = vld [vmem:[#allocation7 + $0x588] sm:$0xff] }
 0x1ac   :  { %4222 = vmatpush1.bf16.msra.mxu1 %v8460_v54  ;;  %4136 = vmatpush1.bf16.msra.mxu0 %v8714_v55  ;;  %v1052_v54 = vld [vmem:[#allocation7 + $0x448] sm:$0xff] }
 0x1ad   :  { %4223 = vmatprep.subr.bf16.mxu1 %v8469_v56  ;;  %4137 = vmatprep.subr.bf16.mxu0 %v8723_v57  ;;  %v1056_v55 = vld [vmem:[#allocation7 + $0x468] sm:$0xff]  ;;  %v8762_v56 = vcombine.low %v1299_v43, %v1303_v47  ;;  %v8771_v57 = vcombine.high %v1307_v51, %v1311_v52  ;;  %v1347_v47 = vld [vmem:[#allocation7 + $0xd80] sm:$0xff] }
 0x1ae   :  { %v8517_v60 = vcombine.high %v1052_v54, %v1056_v55  ;;  %v1096_v43 = vld [vmem:[#allocation7 + $0x5a8] sm:$0xff] }
 0x1b0   :  { %4224 = vmatpush1.bf16.msra.mxu1 %v8468_v62  ;;  %4138 = vmatpush1.bf16.msra.mxu0 %v8722_v1  ;;  %v1319_v62 = vld [vmem:[#allocation7 + $0xca0] sm:$0xff]  ;;  %v8516_v1 = vcombine.low %v1052_v54, %v1056_v55 }
 0x1b1   :  { %4225 = vmatprep.subr.bf16.mxu1 %v8477_v3  ;;  %4139 = vmatprep.subr.bf16.mxu0 %v8731_v4  ;;  %v8770_v3 = vcombine.low %v1307_v51, %v1311_v52  ;;  %v8525_v4 = vcombine.high %v1060_v58, %v1064_v59  ;;  %v8779_v13 = vcombine.high %v1315_v61, %v1319_v62  ;;  %v1100_v52 = vld [vmem:[#allocation7 + $0x5c8] sm:$0xff]  ;;  %v1355_v54 = vld [vmem:[#allocation7 + $0xdc0] sm:$0xff] }
 0x1b2   :  { %v1359_v55 = vld [vmem:[#allocation7 + $0xde0] sm:$0xff] }
 0x1b4   :  { %4226 = vmatpush1.bf16.msra.mxu1 %v8476_v21  ;;  %4140 = vmatpush1.bf16.msra.mxu0 %v8730_v22  ;;  %v1327_v21 = vld [vmem:[#allocation7 + $0xce0] sm:$0xff]  ;;  %v8524_v22 = vcombine.low %v1060_v58, %v1064_v59  ;;  %v8819_v59 = vcombine.high %v1355_v54, %v1359_v55 }
 0x1b5   :  { %4227 = vmatprep.subr.bf16.mxu1 %v8485_v24  ;;  %4141 = vmatprep.subr.bf16.mxu0 %v8739_v25  ;;  %v8778_v24 = vcombine.low %v1315_v61, %v1319_v62  ;;  %v8533_v25 = vcombine.high %v1068_v15, %v1072_v16  ;;  %v8787_v26 = vcombine.high %v1323_v18, %v1327_v21  ;;  %v1112_v61 = vld [vmem:[#allocation7 + $0x628] sm:$0xff]  ;;  %v1363_v62 = vld [vmem:[#allocation7 + $0xe00] sm:$0xff] }
 0x1b8   :  { %4228 = vmatpush1.bf16.msra.mxu1 %v8484_v29  ;;  %4142 = vmatpush1.bf16.msra.mxu0 %v8738_v30  ;;  %v1335_v29 = vld [vmem:[#allocation7 + $0xd20] sm:$0xff]  ;;  %v8532_v30 = vcombine.low %v1068_v15, %v1072_v16  ;;  %v1116_v16 = vld [vmem:[#allocation7 + $0x648] sm:$0xff] }
 0x1b9   :  { %4229 = vmatprep.subr.bf16.mxu1 %v8493_v31  ;;  %4143 = vmatprep.subr.bf16.mxu0 %v8747_v32  ;;  %v8786_v31 = vcombine.low %v1323_v18, %v1327_v21  ;;  %v8541_v32 = vcombine.high %v1076_v19, %v1080_v27  ;;  %v8795_v33 = vcombine.high %v1331_v28, %v1335_v29  ;;  %v1120_v18 = vld [vmem:[#allocation7 + $0x668] sm:$0xff]  ;;  %v1371_v21 = vld [vmem:[#allocation7 + $0xe40] sm:$0xff] }
 0x1bc   :  { %4230 = vmatpush1.bf16.msra.mxu1 %v8492_v37  ;;  %4144 = vmatpush1.bf16.msra.mxu0 %v8746_v38  ;;  %v1343_v37 = vld [vmem:[#allocation7 + $0xd60] sm:$0xff]  ;;  %v8540_v38 = vcombine.low %v1076_v19, %v1080_v27  ;;  %v1124_v27 = vld [vmem:[#allocation7 + $0x688] sm:$0xff] }
 0x1bd   :  { %4231 = vmatprep.subr.bf16.mxu1 %v8501_v40  ;;  %4145 = vmatprep.subr.bf16.mxu0 %v8755_v41  ;;  %v8794_v40 = vcombine.low %v1331_v28, %v1335_v29  ;;  %v8549_v41 = vcombine.high %v1084_v34, %v1088_v35  ;;  %v8803_v42 = vcombine.high %v1339_v36, %v1343_v37  ;;  %v1128_v28 = vld [vmem:[#allocation7 + $0x6a8] sm:$0xff]  ;;  %v1379_v29 = vld [vmem:[#allocation7 + $0xe80] sm:$0xff] }
 0x1c0   :  { %4232 = vmatpush1.bf16.msra.mxu1 %v8500_v48  ;;  %4146 = vmatpush1.bf16.msra.mxu0 %v8754_v49  ;;  %v1351_v48 = vld [vmem:[#allocation7 + $0xda0] sm:$0xff]  ;;  %v8548_v49 = vcombine.low %v1084_v34, %v1088_v35  ;;  %v1132_v35 = vld [vmem:[#allocation7 + $0x6c8] sm:$0xff] }
 0x1c1   :  { %4244 = vmatprep.subr.bf16.mxu1 %v8509_v0  ;;  %4158 = vmatprep.subr.bf16.mxu0 %v8763_v50  ;;  %v8802_v0 = vcombine.low %v1339_v36, %v1343_v37  ;;  %v8557_v50 = vcombine.high %v1092_v7, %v1096_v43  ;;  %v8811_v51 = vcombine.high %v1347_v47, %v1351_v48  ;;  %v1136_v36 = vld [vmem:[#allocation7 + $0x6e8] sm:$0xff]  ;;  %v1387_v37 = vld [vmem:[#allocation7 + $0xec0] sm:$0xff] }
 0x1c3   :  { %4234 = vmatmul.mubr.bf16.vlgmr.msra.gmra.mrb[12].mxu1 %v10633_v39  ;;  %4148 = vmatmul.mubr.bf16.vlgmr.msra.gmra.mrb[8].mxu0 %v10665_v12 }
 0x1c4   :  { %4245 = vmatpush1.bf16.msra.mxu1 %v8508_v53  ;;  %4159 = vmatpush1.bf16.msra.mxu0 %v8762_v56  ;;  %v1104_v53 = vld [vmem:[#allocation7 + $0x5e8] sm:$0xff]  ;;  %v8556_v56 = vcombine.low %v1092_v7, %v1096_v43 }
 0x1c5   :  { %4190 = vmatprep.mubr.bf16.mxu0 %v10671_v23  ;;  %4276 = vmatprep.mubr.bf16.mxu1 %v10639_v46  ;;  %v8565_v58 = vcombine.high %v1100_v52, %v1104_v53  ;;  %v1140_v43 = vld [vmem:[#allocation7 + $0x708] sm:$0xff] }
 0x1c6   :  { %4160 = vmatprep.subr.bf16.mxu0 %v8771_v57  ;;  %4246 = vmatprep.subr.bf16.mxu1 %v8517_v60  ;;  %v8810_v57 = vcombine.low %v1347_v47, %v1351_v48  ;;  %v1108_v60 = vld [vmem:[#allocation7 + $0x608] sm:$0xff]  ;;  %v1395_v48 = vld [vmem:[#allocation7 + $0xf00] sm:$0xff] }
 0x1c7   :  { %v1144_v47 = vld [vmem:[#allocation7 + $0x728] sm:$0xff] }
 0x1c8   :  { %4247 = vmatpush1.bf16.msra.mxu1 %v8516_v1  ;;  %4161 = vmatpush1.bf16.msra.mxu0 %v8770_v3  ;;  %v1367_v1 = vld [vmem:[#allocation7 + $0xe20] sm:$0xff]  ;;  %v8564_v3 = vcombine.low %v1100_v52, %v1104_v53  ;;  %v1148_v53 = vld [vmem:[#allocation7 + $0x748] sm:$0xff] }
 0x1c9   :  { %4248 = vmatprep.subr.bf16.mxu1 %v8525_v4  ;;  %4162 = vmatprep.subr.bf16.mxu0 %v8779_v13  ;;  %v8818_v4 = vcombine.low %v1355_v54, %v1359_v55  ;;  %v8573_v13 = vcombine.high %v1108_v60, %v1112_v61  ;;  %v8827_v15 = vcombine.high %v1363_v62, %v1367_v1  ;;  %v1152_v54 = vld [vmem:[#allocation7 + $0x768] sm:$0xff]  ;;  %v1403_v55 = vld [vmem:[#allocation7 + $0xf40] sm:$0xff] }
 0x1cc   :  { %4249 = vmatpush1.bf16.msra.mxu1 %v8524_v22  ;;  %4163 = vmatpush1.bf16.msra.mxu0 %v8778_v24  ;;  %v1375_v22 = vld [vmem:[#allocation7 + $0xe60] sm:$0xff]  ;;  %v8572_v24 = vcombine.low %v1108_v60, %v1112_v61  ;;  %v1156_v61 = vld [vmem:[#allocation7 + $0x788] sm:$0xff] }
 0x1cd   :  { %4250 = vmatprep.subr.bf16.mxu1 %v8533_v25  ;;  %4164 = vmatprep.subr.bf16.mxu0 %v8787_v26  ;;  %v8826_v25 = vcombine.low %v1363_v62, %v1367_v1  ;;  %v8581_v26 = vcombine.high %v1116_v16, %v1120_v18  ;;  %v8835_v19 = vcombine.high %v1371_v21, %v1375_v22  ;;  %v1160_v62 = vld [vmem:[#allocation7 + $0x7a8] sm:$0xff]  ;;  %v1411_v1 = vld [vmem:[#allocation7 + $0xf80] sm:$0xff] }
 0x1d0   :  { %4251 = vmatpush1.bf16.msra.mxu1 %v8532_v30  ;;  %4165 = vmatpush1.bf16.msra.mxu0 %v8786_v31  ;;  %v1383_v30 = vld [vmem:[#allocation7 + $0xea0] sm:$0xff]  ;;  %v8580_v31 = vcombine.low %v1116_v16, %v1120_v18  ;;  %v1164_v18 = vld [vmem:[#allocation7 + $0x7c8] sm:$0xff] }
 0x1d1   :  { %4252 = vmatprep.subr.bf16.mxu1 %v8541_v32  ;;  %4166 = vmatprep.subr.bf16.mxu0 %v8795_v33  ;;  %v8834_v32 = vcombine.low %v1371_v21, %v1375_v22  ;;  %v8589_v33 = vcombine.high %v1124_v27, %v1128_v28  ;;  %v8843_v34 = vcombine.high %v1379_v29, %v1383_v30  ;;  %v1168_v21 = vld [vmem:[#allocation7 + $0x7e8] sm:$0xff]  ;;  %v1419_v22 = vld [vmem:[#allocation7 + $0xfc0] sm:$0xff] }
 0x1d4   :  { %4253 = vmatpush1.bf16.msra.mxu1 %v8540_v38  ;;  %4167 = vmatpush1.bf16.msra.mxu0 %v8794_v40  ;;  %v1391_v38 = vld [vmem:[#allocation7 + $0xee0] sm:$0xff]  ;;  %v8588_v40 = vcombine.low %v1124_v27, %v1128_v28  ;;  %v1172_v28 = vld [vmem:[#allocation7 + $0x808] sm:$0xff] }
 0x1d5   :  { %4254 = vmatprep.subr.bf16.mxu1 %v8549_v41  ;;  %4168 = vmatprep.subr.bf16.mxu0 %v8803_v42  ;;  %v8842_v41 = vcombine.low %v1379_v29, %v1383_v30  ;;  %v8597_v42 = vcombine.high %v1132_v35, %v1136_v36  ;;  %v8851_v7 = vcombine.high %v1387_v37, %v1391_v38  ;;  %v1176_v29 = vld [vmem:[#allocation7 + $0x828] sm:$0xff]  ;;  %v917_v30 = vld [vmem:[#allocation7 + $0x10] sm:$0xff] }
 0x1d8   :  { %4255 = vmatpush1.bf16.msra.mxu1 %v8548_v49  ;;  %4169 = vmatpush1.bf16.msra.mxu0 %v8802_v0  ;;  %v1399_v49 = vld [vmem:[#allocation7 + $0xf20] sm:$0xff]  ;;  %v8596_v0 = vcombine.low %v1132_v35, %v1136_v36  ;;  %v1180_v36 = vld [vmem:[#allocation7 + $0x848] sm:$0xff] }
 0x1d9   :  { %4256 = vmatprep.subr.bf16.mxu1 %v8557_v50  ;;  %4170 = vmatprep.subr.bf16.mxu0 %v8811_v51  ;;  %v8850_v50 = vcombine.low %v1387_v37, %v1391_v38  ;;  %v8605_v51 = vcombine.high %v1140_v43, %v1144_v47  ;;  %v8859_v52 = vcombine.high %v1395_v48, %v1399_v49  ;;  %v1184_v37 = vld [vmem:[#allocation7 + $0x868] sm:$0xff] }
 0x1da   :  { %v8636_v38 = vcombine.low %v1172_v28, %v1176_v29 }
 0x1dc   :  { %4257 = vmatpush1.bf16.msra.mxu1 %v8556_v56  ;;  %4171 = vmatpush1.bf16.msra.mxu0 %v8810_v57  ;;  %v1407_v56 = vld [vmem:[#allocation7 + $0xf60] sm:$0xff]  ;;  %v8604_v57 = vcombine.low %v1140_v43, %v1144_v47  ;;  %v1188_v43 = vld [vmem:[#allocation7 + $0x888] sm:$0xff] }
 0x1dd   :  { %4258 = vmatprep.subr.bf16.mxu1 %v8565_v58  ;;  %4172 = vmatprep.subr.bf16.mxu0 %v8819_v59  ;;  %v8858_v58 = vcombine.low %v1395_v48, %v1399_v49  ;;  %v8613_v59 = vcombine.high %v1148_v53, %v1152_v54  ;;  %v8867_v60 = vcombine.high %v1403_v55, %v1407_v56  ;;  %v1192_v47 = vld [vmem:[#allocation7 + $0x8a8] sm:$0xff]  ;;  %v933_v49 = vld [vmem:[#allocation7 + $0x90] sm:$0xff] }
 0x1e0   :  { %4259 = vmatpush1.bf16.msra.mxu1 %v8564_v3  ;;  %4173 = vmatpush1.bf16.msra.mxu0 %v8818_v4  ;;  %v1415_v3 = vld [vmem:[#allocation7 + $0xfa0] sm:$0xff]  ;;  %v8612_v4 = vcombine.low %v1148_v53, %v1152_v54  ;;  %v1196_v54 = vld [vmem:[#allocation7 + $0x8c8] sm:$0xff] }
 0x1e1   :  { %4260 = vmatprep.subr.bf16.mxu1 %v8573_v13  ;;  %4174 = vmatprep.subr.bf16.mxu0 %v8827_v15  ;;  %v8866_v13 = vcombine.low %v1403_v55, %v1407_v56  ;;  %v8621_v15 = vcombine.high %v1156_v61, %v1160_v62  ;;  %v8875_v16 = vcombine.high %v1411_v1, %v1415_v3  ;;  %v1200_v55 = vld [vmem:[#allocation7 + $0x8e8] sm:$0xff]  ;;  %v941_v56 = vld [vmem:[#allocation7 + $0xd0] sm:$0xff] }
 0x1e4   :  { %4261 = vmatpush1.bf16.msra.mxu1 %v8572_v24  ;;  %4175 = vmatpush1.bf16.msra.mxu0 %v8826_v25  ;;  %v1423_v24 = vld [vmem:[#allocation7 + $0xfe0] sm:$0xff]  ;;  %v8620_v25 = vcombine.low %v1156_v61, %v1160_v62  ;;  %v1204_v62 = vld [vmem:[#allocation7 + $0x908] sm:$0xff] }
 0x1e5   :  { %4262 = vmatprep.subr.bf16.mxu1 %v8581_v26  ;;  %4176 = vmatprep.subr.bf16.mxu0 %v8835_v19  ;;  %v8874_v26 = vcombine.low %v1411_v1, %v1415_v3  ;;  %v8629_v19 = vcombine.high %v1164_v18, %v1168_v21  ;;  %v8883_v27 = vcombine.high %v1419_v22, %v1423_v24  ;;  %v1208_v1 = vld [vmem:[#allocation7 + $0x928] sm:$0xff]  ;;  %v949_v3 = vld [vmem:[#allocation7 + $0x110] sm:$0xff] }
 0x1e8   :  { %4263 = vmatpush1.bf16.msra.mxu1 %v8580_v31  ;;  %4177 = vmatpush1.bf16.msra.mxu0 %v8834_v32  ;;  %v921_v31 = vld [vmem:[#allocation7 + $0x30] sm:$0xff]  ;;  %v8628_v32 = vcombine.low %v1164_v18, %v1168_v21  ;;  %v1212_v21 = vld [vmem:[#allocation7 + $0x948] sm:$0xff] }
 0x1e9   :  { %4264 = vmatprep.subr.bf16.mxu1 %v8589_v33  ;;  %4178 = vmatprep.subr.bf16.mxu0 %v8843_v34  ;;  %v8882_v33 = vcombine.low %v1419_v22, %v1423_v24  ;;  %v8637_v34 = vcombine.high %v1172_v28, %v1176_v29  ;;  %v8383_v35 = vcombine.high %v917_v30, %v921_v31  ;;  %v1216_v22 = vld [vmem:[#allocation7 + $0x968] sm:$0xff]  ;;  %v957_v24 = vld [vmem:[#allocation7 + $0x150] sm:$0xff] }
 0x1ea   :  { %v1220_v29 = vld [vmem:[#allocation7 + $0x988] sm:$0xff] }
 0x1ec   :  { %4265 = vmatpush1.bf16.msra.mxu1 %v8588_v40  ;;  %4179 = vmatpush1.bf16.msra.mxu0 %v8842_v41  ;;  %v925_v40 = vld [vmem:[#allocation7 + $0x50] sm:$0xff] }
 0x1ed   :  { %4266 = vmatprep.subr.bf16.mxu1 %v8597_v42  ;;  %4180 = vmatprep.subr.bf16.mxu0 %v8851_v7  ;;  %v929_v41 = vld [vmem:[#allocation7 + $0x70] sm:$0xff]  ;;  %v8382_v42 = vcombine.low %v917_v30, %v921_v31  ;;  %v8645_v7 = vcombine.high %v1180_v36, %v1184_v37  ;;  %v1224_v30 = vld [vmem:[#allocation7 + $0x9a8] sm:$0xff] }
 0x1ee   :  { %v8391_v48 = vcombine.high %v925_v40, %v929_v41  ;;  %v965_v31 = vld [vmem:[#allocation7 + $0x190] sm:$0xff] }
 0x1f0   :  { %4267 = vmatpush1.bf16.msra.mxu1 %v8596_v0  ;;  %4181 = vmatpush1.bf16.msra.mxu0 %v8850_v50  ;;  %v937_v0 = vld [vmem:[#allocation7 + $0xb0] sm:$0xff]  ;;  %v8644_v50 = vcombine.low %v1180_v36, %v1184_v37  ;;  %v1228_v37 = vld [vmem:[#allocation7 + $0x9c8] sm:$0xff] }
 0x1f1   :  { %4268 = vmatprep.subr.bf16.mxu1 %v8605_v51  ;;  %4182 = vmatprep.subr.bf16.mxu0 %v8859_v52  ;;  %v8390_v51 = vcombine.low %v925_v40, %v929_v41  ;;  %v8653_v52 = vcombine.high %v1188_v43, %v1192_v47  ;;  %v8399_v53 = vcombine.high %v933_v49, %v937_v0  ;;  %v973_v40 = vld [vmem:[#allocation7 + $0x1d0] sm:$0xff] }
 0x1f2   :  { %v977_v41 = vld [vmem:[#allocation7 + $0x1f0] sm:$0xff] }
 0x1f4   :  { %4269 = vmatpush1.bf16.msra.mxu1 %v8604_v57  ;;  %4183 = vmatpush1.bf16.msra.mxu0 %v8858_v58  ;;  %v945_v57 = vld [vmem:[#allocation7 + $0xf0] sm:$0xff]  ;;  %v8652_v58 = vcombine.low %v1188_v43, %v1192_v47  ;;  %v8439_v47 = vcombine.high %v973_v40, %v977_v41 }
 0x1f5   :  { %4270 = vmatprep.subr.bf16.mxu1 %v8613_v59  ;;  %4184 = vmatprep.subr.bf16.mxu0 %v8867_v60  ;;  %v8398_v59 = vcombine.low %v933_v49, %v937_v0  ;;  %v8661_v60 = vcombine.high %v1196_v54, %v1200_v55  ;;  %v8407_v61 = vcombine.high %v941_v56, %v945_v57  ;;  %v1240_v49 = vld [vmem:[#allocation7 + $0xa28] sm:$0xff]  ;;  %v981_v0 = vld [vmem:[#allocation7 + $0x210] sm:$0xff] }
 0x1f8   :  { %4271 = vmatpush1.bf16.msra.mxu1 %v8612_v4  ;;  %4185 = vmatpush1.bf16.msra.mxu0 %v8866_v13  ;;  %v953_v4 = vld [vmem:[#allocation7 + $0x130] sm:$0xff]  ;;  %v8660_v13 = vcombine.low %v1196_v54, %v1200_v55  ;;  %v1244_v55 = vld [vmem:[#allocation7 + $0xa48] sm:$0xff] }
 0x1f9   :  { %4272 = vmatprep.subr.bf16.mxu1 %v8621_v15  ;;  %4186 = vmatprep.subr.bf16.mxu0 %v8875_v16  ;;  %v8406_v15 = vcombine.low %v941_v56, %v945_v57  ;;  %v8669_v16 = vcombine.high %v1204_v62, %v1208_v1  ;;  %v8415_v18 = vcombine.high %v949_v3, %v953_v4  ;;  %v1248_v56 = vld [vmem:[#allocation7 + $0xa68] sm:$0xff]  ;;  %v989_v57 = vld [vmem:[#allocation7 + $0x250] sm:$0xff] }
 0x1fc   :  { %4273 = vmatpush1.bf16.msra.mxu1 %v8620_v25  ;;  %4187 = vmatpush1.bf16.msra.mxu0 %v8874_v26  ;;  %v961_v25 = vld [vmem:[#allocation7 + $0x170] sm:$0xff]  ;;  %v8668_v26 = vcombine.low %v1204_v62, %v1208_v1  ;;  %v1252_v1 = vld [vmem:[#allocation7 + $0xa88] sm:$0xff] }
 0x1fd   :  { %4274 = vmatprep.subr.bf16.mxu1 %v8629_v19  ;;  %4188 = vmatprep.subr.bf16.mxu0 %v8883_v27  ;;  %v8414_v19 = vcombine.low %v949_v3, %v953_v4  ;;  %v8677_v27 = vcombine.high %v1212_v21, %v1216_v22  ;;  %v8423_v28 = vcombine.high %v957_v24, %v961_v25  ;;  %v1256_v3 = vld [vmem:[#allocation7 + $0xaa8] sm:$0xff]  ;;  %v997_v4 = vld [vmem:[#allocation7 + $0x290] sm:$0xff] }
 0x200   :  { %4275 = vmatpush1.bf16.msra.mxu1 %v8628_v32  ;;  %4189 = vmatpush1.bf16.msra.mxu0 %v8882_v33  ;;  %v969_v32 = vld [vmem:[#allocation7 + $0x1b0] sm:$0xff]  ;;  %v8676_v33 = vcombine.low %v1212_v21, %v1216_v22  ;;  %v1260_v22 = vld [vmem:[#allocation7 + $0xac8] sm:$0xff] }
 0x201   :  { %4287 = vmatprep.subr.bf16.mxu1 %v8637_v34  ;;  %4373 = vmatprep.subr.bf16.mxu0 %v8383_v35  ;;  %v8422_v34 = vcombine.low %v957_v24, %v961_v25  ;;  %v8685_v35 = vcombine.high %v1220_v29, %v1224_v30  ;;  %v8431_v36 = vcombine.high %v965_v31, %v969_v32  ;;  %v1264_v24 = vld [vmem:[#allocation7 + $0xae8] sm:$0xff]  ;;  %v1005_v25 = vld [vmem:[#allocation7 + $0x2d0] sm:$0xff] }
 0x203   :  { %4277 = vmatmul.mubr.bf16.vlgmr.msra.gmra.mrb[12].mxu1 %v10635_v44  ;;  %4191 = vmatmul.mubr.bf16.vlgmr.msra.gmra.mrb[8].mxu0 %v10669_v20 }
 0x204   :  { %4288 = vmatpush1.bf16.msra.mxu1 %v8636_v38  ;;  %4319 = vmatprep.mubr.bf16.mxu1 %v10667_v17  ;;  %v1232_v38 = vld [vmem:[#allocation7 + $0x9e8] sm:$0xff] }
 0x205   :  { %4374 = vmatpush1.bf16.msra.mxu0 %v8382_v42  ;;  %4405 = vmatprep.mubr.bf16.mxu0 %v10637_v45  ;;  %v8684_v42 = vcombine.low %v1220_v29, %v1224_v30  ;;  %v8693_v43 = vcombine.high %v1228_v37, %v1232_v38  ;;  %v1268_v30 = vld [vmem:[#allocation7 + $0xb08] sm:$0xff] }
 0x206   :  { %4289 = vmatprep.subr.bf16.mxu1 %v8645_v7  ;;  %4375 = vmatprep.subr.bf16.mxu0 %v8391_v48  ;;  %v8430_v7 = vcombine.low %v965_v31, %v969_v32  ;;  %v1236_v48 = vld [vmem:[#allocation7 + $0xa08] sm:$0xff]  ;;  %v1013_v32 = vld [vmem:[#allocation7 + $0x310] sm:$0xff] }
 0x207   :  { %v1272_v31 = vld [vmem:[#allocation7 + $0xb28] sm:$0xff] }
 0x208   :  { %4290 = vmatpush1.bf16.msra.mxu1 %v8644_v50  ;;  %v985_v50 = vld [vmem:[#allocation7 + $0x230] sm:$0xff] }
 0x209   :  { %4376 = vmatpush1.bf16.msra.mxu0 %v8390_v51  ;;  %4291 = vmatprep.subr.bf16.mxu1 %v8653_v52  ;;  %v8692_v51 = vcombine.low %v1228_v37, %v1232_v38  ;;  %v8438_v52 = vcombine.low %v973_v40, %v977_v41  ;;  %v8447_v54 = vcombine.high %v981_v0, %v985_v50  ;;  %v1276_v38 = vld [vmem:[#allocation7 + $0xb48] sm:$0xff]  ;;  %v1021_v41 = vld [vmem:[#allocation7 + $0x350] sm:$0xff] }
 0x20a   :  { %4377 = vmatprep.subr.bf16.mxu0 %v8399_v53  ;;  %v8701_v53 = vcombine.high %v1236_v48, %v1240_v49  ;;  %v1280_v40 = vld [vmem:[#allocation7 + $0xb68] sm:$0xff] }
 0x20c   :  { %4292 = vmatpush1.bf16.msra.mxu1 %v8652_v58  ;;  %v993_v58 = vld [vmem:[#allocation7 + $0x270] sm:$0xff] }
 0x20d   :  { %4378 = vmatpush1.bf16.msra.mxu0 %v8398_v59  ;;  %4293 = vmatprep.subr.bf16.mxu1 %v8661_v60  ;;  %v8700_v59 = vcombine.low %v1236_v48, %v1240_v49  ;;  %v8446_v60 = vcombine.low %v981_v0, %v985_v50  ;;  %v8455_v62 = vcombine.high %v989_v57, %v993_v58  ;;  %v1284_v49 = vld [vmem:[#allocation7 + $0xb88] sm:$0xff]  ;;  %v1029_v50 = vld [vmem:[#allocation7 + $0x390] sm:$0xff] }
 0x20e   :  { %4379 = vmatprep.subr.bf16.mxu0 %v8407_v61  ;;  %v8709_v61 = vcombine.high %v1244_v55, %v1248_v56  ;;  %v1288_v0 = vld [vmem:[#allocation7 + $0xba8] sm:$0xff] }
 0x210   :  { %4294 = vmatpush1.bf16.msra.mxu1 %v8660_v13  ;;  %v1001_v13 = vld [vmem:[#allocation7 + $0x2b0] sm:$0xff] }
 0x211   :  { %4380 = vmatpush1.bf16.msra.mxu0 %v8406_v15  ;;  %4295 = vmatprep.subr.bf16.mxu1 %v8669_v16  ;;  %v8708_v15 = vcombine.low %v1244_v55, %v1248_v56  ;;  %v8454_v16 = vcombine.low %v989_v57, %v993_v58  ;;  %v8463_v21 = vcombine.high %v997_v4, %v1001_v13  ;;  %v1292_v56 = vld [vmem:[#allocation7 + $0xbc8] sm:$0xff]  ;;  %v1037_v58 = vld [vmem:[#allocation7 + $0x3d0] sm:$0xff] }
 0x212   :  { %4381 = vmatprep.subr.bf16.mxu0 %v8415_v18  ;;  %v8717_v18 = vcombine.high %v1252_v1, %v1256_v3  ;;  %v1296_v57 = vld [vmem:[#allocation7 + $0xbe8] sm:$0xff] }
 0x214   :  { %4296 = vmatpush1.bf16.msra.mxu1 %v8668_v26  ;;  %v1009_v26 = vld [vmem:[#allocation7 + $0x2f0] sm:$0xff] }
 0x215   :  { %4382 = vmatpush1.bf16.msra.mxu0 %v8414_v19  ;;  %4297 = vmatprep.subr.bf16.mxu1 %v8677_v27  ;;  %v8716_v19 = vcombine.low %v1252_v1, %v1256_v3  ;;  %v8462_v27 = vcombine.low %v997_v4, %v1001_v13  ;;  %v8471_v29 = vcombine.high %v1005_v25, %v1009_v26  ;;  %v1300_v3 = vld [vmem:[#allocation7 + $0xc08] sm:$0xff]  ;;  %v1045_v13 = vld [vmem:[#allocation7 + $0x410] sm:$0xff] }
 0x216   :  { %4383 = vmatprep.subr.bf16.mxu0 %v8423_v28  ;;  %v8725_v28 = vcombine.high %v1260_v22, %v1264_v24  ;;  %v1304_v4 = vld [vmem:[#allocation7 + $0xc28] sm:$0xff] }
 0x218   :  { %4298 = vmatpush1.bf16.msra.mxu1 %v8676_v33  ;;  %v1017_v33 = vld [vmem:[#allocation7 + $0x330] sm:$0xff] }
 0x219   :  { %4384 = vmatpush1.bf16.msra.mxu0 %v8422_v34  ;;  %4299 = vmatprep.subr.bf16.mxu1 %v8685_v35  ;;  %v8724_v34 = vcombine.low %v1260_v22, %v1264_v24  ;;  %v8470_v35 = vcombine.low %v1005_v25, %v1009_v26  ;;  %v8479_v37 = vcombine.high %v1013_v32, %v1017_v33  ;;  %v1308_v24 = vld [vmem:[#allocation7 + $0xc48] sm:$0xff] }
 0x21a   :  { %4385 = vmatprep.subr.bf16.mxu0 %v8431_v36  ;;  %v8733_v36 = vcombine.high %v1268_v30, %v1272_v31  ;;  %v1312_v25 = vld [vmem:[#allocation7 + $0xc68] sm:$0xff]  ;;  %v8764_v26 = vcombine.low %v1300_v3, %v1304_v4 }
 0x21c   :  { %4300 = vmatpush1.bf16.msra.mxu1 %v8684_v42  ;;  %v1025_v42 = vld [vmem:[#allocation7 + $0x370] sm:$0xff] }
 0x21d   :  { %4386 = vmatpush1.bf16.msra.mxu0 %v8430_v7  ;;  %4301 = vmatprep.subr.bf16.mxu1 %v8693_v43  ;;  %v8732_v7 = vcombine.low %v1268_v30, %v1272_v31  ;;  %v8478_v43 = vcombine.low %v1013_v32, %v1017_v33  ;;  %v8487_v48 = vcombine.high %v1021_v41, %v1025_v42  ;;  %v1316_v30 = vld [vmem:[#allocation7 + $0xc88] sm:$0xff]  ;;  %v1061_v33 = vld [vmem:[#allocation7 + $0x490] sm:$0xff] }
 0x21e   :  { %4387 = vmatprep.subr.bf16.mxu0 %v8439_v47  ;;  %v8741_v47 = vcombine.high %v1276_v38, %v1280_v40  ;;  %v1320_v31 = vld [vmem:[#allocation7 + $0xca8] sm:$0xff] }
 0x220   :  { %4302 = vmatpush1.bf16.msra.mxu1 %v8692_v51  ;;  %v1033_v51 = vld [vmem:[#allocation7 + $0x3b0] sm:$0xff] }
 0x221   :  { %4388 = vmatpush1.bf16.msra.mxu0 %v8438_v52  ;;  %4303 = vmatprep.subr.bf16.mxu1 %v8701_v53  ;;  %v8740_v52 = vcombine.low %v1276_v38, %v1280_v40  ;;  %v8486_v53 = vcombine.low %v1021_v41, %v1025_v42  ;;  %v8495_v55 = vcombine.high %v1029_v50, %v1033_v51  ;;  %v1324_v40 = vld [vmem:[#allocation7 + $0xcc8] sm:$0xff]  ;;  %v1069_v42 = vld [vmem:[#allocation7 + $0x4d0] sm:$0xff] }
 0x222   :  { %4389 = vmatprep.subr.bf16.mxu0 %v8447_v54  ;;  %v8749_v54 = vcombine.high %v1284_v49, %v1288_v0  ;;  %v1328_v41 = vld [vmem:[#allocation7 + $0xce8] sm:$0xff] }
 0x224   :  { %4304 = vmatpush1.bf16.msra.mxu1 %v8700_v59  ;;  %v1041_v59 = vld [vmem:[#allocation7 + $0x3f0] sm:$0xff] }
 0x225   :  { %4390 = vmatpush1.bf16.msra.mxu0 %v8446_v60  ;;  %4305 = vmatprep.subr.bf16.mxu1 %v8709_v61  ;;  %v8748_v60 = vcombine.low %v1284_v49, %v1288_v0  ;;  %v8494_v61 = vcombine.low %v1029_v50, %v1033_v51  ;;  %v8503_v1 = vcombine.high %v1037_v58, %v1041_v59  ;;  %v1332_v0 = vld [vmem:[#allocation7 + $0xd08] sm:$0xff]  ;;  %v1077_v51 = vld [vmem:[#allocation7 + $0x510] sm:$0xff] }
 0x226   :  { %4391 = vmatprep.subr.bf16.mxu0 %v8455_v62  ;;  %v8757_v62 = vcombine.high %v1292_v56, %v1296_v57  ;;  %v1336_v50 = vld [vmem:[#allocation7 + $0xd28] sm:$0xff] }
 0x228   :  { %4306 = vmatpush1.bf16.msra.mxu1 %v8708_v15  ;;  %v1049_v15 = vld [vmem:[#allocation7 + $0x430] sm:$0xff] }
 0x229   :  { %4392 = vmatpush1.bf16.msra.mxu0 %v8454_v16  ;;  %4307 = vmatprep.subr.bf16.mxu1 %v8717_v18  ;;  %v8756_v16 = vcombine.low %v1292_v56, %v1296_v57  ;;  %v8502_v18 = vcombine.low %v1037_v58, %v1041_v59  ;;  %v8511_v22 = vcombine.high %v1045_v13, %v1049_v15  ;;  %v1340_v57 = vld [vmem:[#allocation7 + $0xd48] sm:$0xff]  ;;  %v1085_v59 = vld [vmem:[#allocation7 + $0x550] sm:$0xff] }
 0x22a   :  { %4393 = vmatprep.subr.bf16.mxu0 %v8463_v21  ;;  %v8765_v21 = vcombine.high %v1300_v3, %v1304_v4  ;;  %v1344_v58 = vld [vmem:[#allocation7 + $0xd68] sm:$0xff] }
 0x22b   :  { %v1348_v4 = vld [vmem:[#allocation7 + $0xd88] sm:$0xff] }
 0x22c   :  { %4308 = vmatpush1.bf16.msra.mxu1 %v8716_v19  ;;  %v1053_v19 = vld [vmem:[#allocation7 + $0x450] sm:$0xff] }
 0x22d   :  { %4394 = vmatpush1.bf16.msra.mxu0 %v8462_v27  ;;  %4309 = vmatprep.subr.bf16.mxu1 %v8725_v28  ;;  %v1057_v27 = vld [vmem:[#allocation7 + $0x470] sm:$0xff]  ;;  %v8510_v28 = vcombine.low %v1045_v13, %v1049_v15  ;;  %v1352_v13 = vld [vmem:[#allocation7 + $0xda8] sm:$0xff] }
 0x22e   :  { %4395 = vmatprep.subr.bf16.mxu0 %v8471_v29  ;;  %v8773_v29 = vcombine.high %v1308_v24, %v1312_v25  ;;  %v8519_v32 = vcombine.high %v1053_v19, %v1057_v27  ;;  %v1093_v15 = vld [vmem:[#allocation7 + $0x590] sm:$0xff] }
 0x230   :  { %4310 = vmatpush1.bf16.msra.mxu1 %v8724_v34  ;;  %v1065_v34 = vld [vmem:[#allocation7 + $0x4b0] sm:$0xff] }
 0x231   :  { %4396 = vmatpush1.bf16.msra.mxu0 %v8470_v35  ;;  %4311 = vmatprep.subr.bf16.mxu1 %v8733_v36  ;;  %v8772_v35 = vcombine.low %v1308_v24, %v1312_v25  ;;  %v8518_v36 = vcombine.low %v1053_v19, %v1057_v27  ;;  %v8527_v38 = vcombine.high %v1061_v33, %v1065_v34  ;;  %v1360_v19 = vld [vmem:[#allocation7 + $0xde8] sm:$0xff] }
 0x232   :  { %4397 = vmatprep.subr.bf16.mxu0 %v8479_v37  ;;  %v8781_v37 = vcombine.high %v1316_v30, %v1320_v31 }
 0x234   :  { %4312 = vmatpush1.bf16.msra.mxu1 %v8732_v7  ;;  %v1073_v7 = vld [vmem:[#allocation7 + $0x4f0] sm:$0xff] }
 0x235   :  { %4398 = vmatpush1.bf16.msra.mxu0 %v8478_v43  ;;  %4313 = vmatprep.subr.bf16.mxu1 %v8741_v47  ;;  %v8780_v43 = vcombine.low %v1316_v30, %v1320_v31  ;;  %v8526_v47 = vcombine.low %v1061_v33, %v1065_v34  ;;  %v8535_v49 = vcombine.high %v1069_v42, %v1073_v7 }
 0x236   :  { %4399 = vmatprep.subr.bf16.mxu0 %v8487_v48  ;;  %v8789_v48 = vcombine.high %v1324_v40, %v1328_v41  ;;  %v8812_v31 = vcombine.low %v1348_v4, %v1352_v13 }
 0x238   :  { %4314 = vmatpush1.bf16.msra.mxu1 %v8740_v52  ;;  %v1081_v52 = vld [vmem:[#allocation7 + $0x530] sm:$0xff] }
 0x239   :  { %4400 = vmatpush1.bf16.msra.mxu0 %v8486_v53  ;;  %4315 = vmatprep.subr.bf16.mxu1 %v8749_v54  ;;  %v8788_v53 = vcombine.low %v1324_v40, %v1328_v41  ;;  %v8534_v54 = vcombine.low %v1069_v42, %v1073_v7  ;;  %v8543_v56 = vcombine.high %v1077_v51, %v1081_v52  ;;  %v1113_v40 = vld [vmem:[#allocation7 + $0x630] sm:$0xff] }
 0x23a   :  { %4401 = vmatprep.subr.bf16.mxu0 %v8495_v55  ;;  %v8797_v55 = vcombine.high %v1332_v0, %v1336_v50 }
 0x23c   :  { %4316 = vmatpush1.bf16.msra.mxu1 %v8748_v60  ;;  %v1089_v60 = vld [vmem:[#allocation7 + $0x570] sm:$0xff] }
 0x23d   :  { %4402 = vmatpush1.bf16.msra.mxu0 %v8494_v61  ;;  %4317 = vmatprep.subr.bf16.mxu1 %v8757_v62  ;;  %v8796_v61 = vcombine.low %v1332_v0, %v1336_v50  ;;  %v8542_v62 = vcombine.low %v1077_v51, %v1081_v52  ;;  %v8551_v3 = vcombine.high %v1085_v59, %v1089_v60  ;;  %v1121_v0 = vld [vmem:[#allocation7 + $0x670] sm:$0xff] }
 0x23e   :  { %4403 = vmatprep.subr.bf16.mxu0 %v8503_v1  ;;  %v8805_v1 = vcombine.high %v1340_v57, %v1344_v58 }
 0x240   :  { %4318 = vmatpush1.bf16.msra.mxu1 %v8756_v16  ;;  %v1097_v16 = vld [vmem:[#allocation7 + $0x5b0] sm:$0xff] }
 0x241   :  { %4404 = vmatpush1.bf16.msra.mxu0 %v8502_v18  ;;  %4330 = vmatprep.subr.bf16.mxu1 %v8765_v21  ;;  %v8804_v18 = vcombine.low %v1340_v57, %v1344_v58  ;;  %v8550_v21 = vcombine.low %v1085_v59, %v1089_v60  ;;  %v8559_v25 = vcombine.high %v1093_v15, %v1097_v16  ;;  %v1129_v57 = vld [vmem:[#allocation7 + $0x6b0] sm:$0xff] }
 0x242   :  { %4416 = vmatprep.subr.bf16.mxu0 %v8511_v22  ;;  %v8813_v22 = vcombine.high %v1348_v4, %v1352_v13  ;;  %v8558_v33 = vcombine.low %v1093_v15, %v1097_v16  ;;  %v1137_v4 = vld [vmem:[#allocation7 + $0x6f0] sm:$0xff] }
 0x243   :  { %4320 = vmatmul.mubr.bf16.vlgmr.msra.gmra.mrb[12].mxu1 %v10665_v12 }
 0x244   :  { %4406 = vmatmul.mubr.bf16.vlgmr.msra.gmra.mrb[12].mxu0 %v10633_v39  ;;  %4331 = vmatpush1.bf16.msra.mxu1 %v8764_v26  ;;  %v1356_v26 = vld [vmem:[#allocation7 + $0xdc8] sm:$0xff] }
 0x245   :  { %4362 = vmatprep.mubr.bf16.mxu1 %v10671_v23  ;;  %4417 = vmatpush1.bf16.msra.mxu0 %v8510_v28  ;;  %v1101_v28 = vld [vmem:[#allocation7 + $0x5d0] sm:$0xff]  ;;  %v8821_v34 = vcombine.high %v1356_v26, %v1360_v19  ;;  %v8820_v41 = vcombine.low %v1356_v26, %v1360_v19 }
 0x246   :  { %4448 = vmatprep.mubr.bf16.mxu0 %v10639_v46  ;;  %4332 = vmatprep.subr.bf16.mxu1 %v8773_v29  ;;  %v1105_v29 = vld [vmem:[#allocation7 + $0x5f0] sm:$0xff] }
 0x247   :  { %4418 = vmatprep.subr.bf16.mxu0 %v8519_v32  ;;  %v8566_v42 = vcombine.low %v1101_v28, %v1105_v29  ;;  %v1145_v26 = vld [vmem:[#allocation7 + $0x730] sm:$0xff] }
 0x248   :  { %4333 = vmatpush1.bf16.msra.mxu1 %v8772_v35  ;;  %v8567_v35 = vcombine.high %v1101_v28, %v1105_v29 }
 0x249   :  { %4419 = vmatpush1.bf16.msra.mxu0 %v8518_v36  ;;  %4334 = vmatprep.subr.bf16.mxu1 %v8781_v37  ;;  %v1364_v36 = vld [vmem:[#allocation7 + $0xe08] sm:$0xff] }
 0x24a   :  { %4420 = vmatprep.subr.bf16.mxu0 %v8527_v38  ;;  %v1368_v37 = vld [vmem:[#allocation7 + $0xe28] sm:$0xff]  ;;  %v1109_v38 = vld [vmem:[#allocation7 + $0x610] sm:$0xff] }
 0x24b   :  { %v8829_v7 = vcombine.high %v1364_v36, %v1368_v37  ;;  %v8828_v50 = vcombine.low %v1364_v36, %v1368_v37  ;;  %v8574_v51 = vcombine.low %v1109_v38, %v1113_v40  ;;  %v1153_v36 = vld [vmem:[#allocation7 + $0x770] sm:$0xff] }
 0x24c   :  { %4335 = vmatpush1.bf16.msra.mxu1 %v8780_v43  ;;  %v8575_v43 = vcombine.high %v1109_v38, %v1113_v40 }
 0x24d   :  { %4421 = vmatpush1.bf16.msra.mxu0 %v8526_v47  ;;  %4336 = vmatprep.subr.bf16.mxu1 %v8789_v48  ;;  %v1372_v47 = vld [vmem:[#allocation7 + $0xe48] sm:$0xff] }
 0x24e   :  { %4422 = vmatprep.subr.bf16.mxu0 %v8535_v49  ;;  %v1376_v48 = vld [vmem:[#allocation7 + $0xe68] sm:$0xff]  ;;  %v1117_v49 = vld [vmem:[#allocation7 + $0x650] sm:$0xff] }
 0x24f   :  { %v8837_v52 = vcombine.high %v1372_v47, %v1376_v48  ;;  %v8836_v58 = vcombine.low %v1372_v47, %v1376_v48  ;;  %v8582_v59 = vcombine.low %v1117_v49, %v1121_v0  ;;  %v1161_v47 = vld [vmem:[#allocation7 + $0x7b0] sm:$0xff] }
 0x250   :  { %4337 = vmatpush1.bf16.msra.mxu1 %v8788_v53  ;;  %v8583_v53 = vcombine.high %v1117_v49, %v1121_v0 }
 0x251   :  { %4423 = vmatpush1.bf16.msra.mxu0 %v8534_v54  ;;  %4338 = vmatprep.subr.bf16.mxu1 %v8797_v55  ;;  %v1380_v54 = vld [vmem:[#allocation7 + $0xe88] sm:$0xff] }
 0x252   :  { %4424 = vmatprep.subr.bf16.mxu0 %v8543_v56  ;;  %v1384_v55 = vld [vmem:[#allocation7 + $0xea8] sm:$0xff]  ;;  %v1125_v56 = vld [vmem:[#allocation7 + $0x690] sm:$0xff] }
 0x253   :  { %v8845_v60 = vcombine.high %v1380_v54, %v1384_v55  ;;  %v8844_v13 = vcombine.low %v1380_v54, %v1384_v55  ;;  %v8590_v15 = vcombine.low %v1125_v56, %v1129_v57  ;;  %v1169_v54 = vld [vmem:[#allocation7 + $0x7f0] sm:$0xff] }
 0x254   :  { %4339 = vmatpush1.bf16.msra.mxu1 %v8796_v61  ;;  %v8591_v61 = vcombine.high %v1125_v56, %v1129_v57 }
 0x255   :  { %4425 = vmatpush1.bf16.msra.mxu0 %v8542_v62  ;;  %4340 = vmatprep.subr.bf16.mxu1 %v8805_v1  ;;  %v1388_v62 = vld [vmem:[#allocation7 + $0xec8] sm:$0xff] }
 0x256   :  { %v10686_v24 = vpop.f32.mrb[8].mxu1  ;;  %4426 = vmatprep.subr.bf16.mxu0 %v8551_v3  ;;  %v1392_v1 = vld [vmem:[#allocation7 + $0xee8] sm:$0xff]  ;;  %v1133_v3 = vld [vmem:[#allocation7 + $0x6d0] sm:$0xff] }
 0x257   :  { %v10688_v27 = vpop.f32.mrb[9].mxu1  ;;  %v8853_v16 = vcombine.high %v1388_v62, %v1392_v1  ;;  %v8852_v19 = vcombine.low %v1388_v62, %v1392_v1  ;;  %v8598_v28 = vcombine.low %v1133_v3, %v1137_v4  ;;  %v1177_v62 = vld [vmem:[#allocation7 + $0x830] sm:$0xff] }
 0x258   :  { %4341 = vmatpush1.bf16.msra.mxu1 %v8804_v18  ;;  %v10690_v30 = vpop.f32.mrb[10].mxu1  ;;  %v8599_v18 = vcombine.high %v1133_v3, %v1137_v4 }
 0x259   :  { %4427 = vmatpush1.bf16.msra.mxu0 %v8550_v21  ;;  %v10692_v32 = vpop.f32.mrb[11].mxu1  ;;  %4342 = vmatprep.subr.bf16.mxu1 %v8813_v22  ;;  %v1396_v21 = vld [vmem:[#allocation7 + $0xf08] sm:$0xff] }
 0x25a   :  { %4428 = vmatprep.subr.bf16.mxu0 %v8559_v25  ;;  %v1400_v22 = vld [vmem:[#allocation7 + $0xf28] sm:$0xff]  ;;  %v1141_v25 = vld [vmem:[#allocation7 + $0x710] sm:$0xff] }
 0x25b   :  { %v8861_v29 = vcombine.high %v1396_v21, %v1400_v22  ;;  %v8860_v37 = vcombine.low %v1396_v21, %v1400_v22  ;;  %v8606_v38 = vcombine.low %v1141_v25, %v1145_v26  ;;  %v926_v21 = vld [vmem:[#allocation7 + $0x58] sm:$0xff] }
 0x25c   :  { %4343 = vmatpush1.bf16.msra.mxu1 %v8812_v31  ;;  %v8607_v31 = vcombine.high %v1141_v25, %v1145_v26  ;;  %v930_v22 = vld [vmem:[#allocation7 + $0x78] sm:$0xff] }
 0x25d   :  { %4429 = vmatpush1.bf16.msra.mxu0 %v8558_v33  ;;  %4344 = vmatprep.subr.bf16.mxu1 %v8821_v34  ;;  %v1404_v33 = vld [vmem:[#allocation7 + $0xf48] sm:$0xff] }
 0x25e   :  { %4430 = vmatprep.subr.bf16.mxu0 %v8567_v35  ;;  %v1408_v34 = vld [vmem:[#allocation7 + $0xf68] sm:$0xff]  ;;  %v1149_v35 = vld [vmem:[#allocation7 + $0x750] sm:$0xff] }
 0x25f   :  { %v8869_v40 = vcombine.high %v1404_v33, %v1408_v34  ;;  %v8868_v48 = vcombine.low %v1404_v33, %v1408_v34  ;;  %v8614_v49 = vcombine.low %v1149_v35, %v1153_v36  ;;  %v1193_v33 = vld [vmem:[#allocation7 + $0x8b0] sm:$0xff]  ;;  %v8392_v34 = vcombine.low %v926_v21, %v930_v22 }
 0x260   :  { %4345 = vmatpush1.bf16.msra.mxu1 %v8820_v41  ;;  %v8615_v41 = vcombine.high %v1149_v35, %v1153_v36 }
 0x261   :  { %4431 = vmatpush1.bf16.msra.mxu0 %v8566_v42  ;;  %4346 = vmatprep.subr.bf16.mxu1 %v8829_v7  ;;  %v1412_v42 = vld [vmem:[#allocation7 + $0xf88] sm:$0xff] }
 0x262   :  { %4432 = vmatprep.subr.bf16.mxu0 %v8575_v43  ;;  %v1416_v7 = vld [vmem:[#allocation7 + $0xfa8] sm:$0xff]  ;;  %v1157_v43 = vld [vmem:[#allocation7 + $0x790] sm:$0xff] }
 0x263   :  { %v8877_v0 = vcombine.high %v1412_v42, %v1416_v7  ;;  %v8876_v55 = vcombine.low %v1412_v42, %v1416_v7  ;;  %v8622_v56 = vcombine.low %v1157_v43, %v1161_v47  ;;  %v1201_v42 = vld [vmem:[#allocation7 + $0x8f0] sm:$0xff] }
 0x264   :  { %4347 = vmatpush1.bf16.msra.mxu1 %v8828_v50  ;;  %v8623_v50 = vcombine.high %v1157_v43, %v1161_v47 }
 0x265   :  { %4433 = vmatpush1.bf16.msra.mxu0 %v8574_v51  ;;  %4348 = vmatprep.subr.bf16.mxu1 %v8837_v52  ;;  %v1420_v51 = vld [vmem:[#allocation7 + $0xfc8] sm:$0xff] }
 0x266   :  { %4434 = vmatprep.subr.bf16.mxu0 %v8583_v53  ;;  %v1424_v52 = vld [vmem:[#allocation7 + $0xfe8] sm:$0xff]  ;;  %v1165_v53 = vld [vmem:[#allocation7 + $0x7d0] sm:$0xff] }
 0x267   :  { %v8885_v57 = vcombine.high %v1420_v51, %v1424_v52  ;;  %v8884_v1 = vcombine.low %v1420_v51, %v1424_v52  ;;  %v8630_v3 = vcombine.low %v1165_v53, %v1169_v54  ;;  %v1209_v51 = vld [vmem:[#allocation7 + $0x930] sm:$0xff] }
 0x268   :  { %4349 = vmatpush1.bf16.msra.mxu1 %v8836_v58  ;;  %v8631_v58 = vcombine.high %v1165_v53, %v1169_v54 }
 0x269   :  { %4435 = vmatpush1.bf16.msra.mxu0 %v8582_v59  ;;  %4350 = vmatprep.subr.bf16.mxu1 %v8845_v60  ;;  %v918_v59 = vld [vmem:[#allocation7 + $0x18] sm:$0xff] }
 0x26a   :  { %4436 = vmatprep.subr.bf16.mxu0 %v8591_v61  ;;  %v922_v60 = vld [vmem:[#allocation7 + $0x38] sm:$0xff]  ;;  %v1173_v61 = vld [vmem:[#allocation7 + $0x810] sm:$0xff] }
 0x26b   :  { %v8385_v4 = vcombine.high %v918_v59, %v922_v60  ;;  %v8638_v25 = vcombine.low %v1173_v61, %v1177_v62 }
 0x26c   :  { %4351 = vmatpush1.bf16.msra.mxu1 %v8844_v13  ;;  %v8639_v13 = vcombine.high %v1173_v61, %v1177_v62 }
 0x26d   :  { %4437 = vmatpush1.bf16.msra.mxu0 %v8590_v15  ;;  %4352 = vmatprep.subr.bf16.mxu1 %v8853_v16  ;;  %v1181_v15 = vld [vmem:[#allocation7 + $0x850] sm:$0xff] }
 0x26e   :  { %4438 = vmatprep.subr.bf16.mxu0 %v8599_v18  ;;  %v1185_v16 = vld [vmem:[#allocation7 + $0x870] sm:$0xff]  ;;  %v8384_v18 = vcombine.low %v918_v59, %v922_v60 }
 0x26f   :  { %v8647_v26 = vcombine.high %v1181_v15, %v1185_v16  ;;  %v8646_v35 = vcombine.low %v1181_v15, %v1185_v16 }
 0x270   :  { %4353 = vmatpush1.bf16.msra.mxu1 %v8852_v19  ;;  %v934_v19 = vld [vmem:[#allocation7 + $0x98] sm:$0xff] }
 0x271   :  { %4439 = vmatpush1.bf16.msra.mxu0 %v8598_v28  ;;  %4354 = vmatprep.subr.bf16.mxu1 %v8861_v29  ;;  %v938_v28 = vld [vmem:[#allocation7 + $0xb8] sm:$0xff]  ;;  %v8393_v29 = vcombine.high %v926_v21, %v930_v22 }
 0x272   :  { %4440 = vmatprep.subr.bf16.mxu0 %v8607_v31  ;;  %v1189_v31 = vld [vmem:[#allocation7 + $0x890] sm:$0xff]  ;;  %v8401_v36 = vcombine.high %v934_v19, %v938_v28  ;;  %v8400_v7 = vcombine.low %v934_v19, %v938_v28  ;;  %v974_v22 = vld [vmem:[#allocation7 + $0x1d8] sm:$0xff] }
 0x273   :  { %v8654_v43 = vcombine.low %v1189_v31, %v1193_v33  ;;  %v1233_v19 = vld [vmem:[#allocation7 + $0x9f0] sm:$0xff] }
 0x274   :  { %4355 = vmatpush1.bf16.msra.mxu1 %v8860_v37  ;;  %v8655_v37 = vcombine.high %v1189_v31, %v1193_v33 }
 0x275   :  { %4441 = vmatpush1.bf16.msra.mxu0 %v8606_v38  ;;  %4356 = vmatprep.subr.bf16.mxu1 %v8869_v40  ;;  %v942_v38 = vld [vmem:[#allocation7 + $0xd8] sm:$0xff] }
 0x276   :  { %4442 = vmatprep.subr.bf16.mxu0 %v8615_v41  ;;  %v946_v40 = vld [vmem:[#allocation7 + $0xf8] sm:$0xff]  ;;  %v1197_v41 = vld [vmem:[#allocation7 + $0x8d0] sm:$0xff] }
 0x277   :  { %v8409_v47 = vcombine.high %v942_v38, %v946_v40  ;;  %v8662_v52 = vcombine.low %v1197_v41, %v1201_v42 }
 0x278   :  { %4357 = vmatpush1.bf16.msra.mxu1 %v8868_v48  ;;  %v8663_v48 = vcombine.high %v1197_v41, %v1201_v42 }
 0x279   :  { %4443 = vmatpush1.bf16.msra.mxu0 %v8614_v49  ;;  %4358 = vmatprep.subr.bf16.mxu1 %v8877_v0  ;;  %v950_v49 = vld [vmem:[#allocation7 + $0x118] sm:$0xff] }
 0x27a   :  { %4444 = vmatprep.subr.bf16.mxu0 %v8623_v50  ;;  %v954_v0 = vld [vmem:[#allocation7 + $0x138] sm:$0xff]  ;;  %v1205_v50 = vld [vmem:[#allocation7 + $0x910] sm:$0xff] }
 0x27b   :  { %v8417_v53 = vcombine.high %v950_v49, %v954_v0  ;;  %v8671_v54 = vcombine.high %v1205_v50, %v1209_v51  ;;  %v8416_v59 = vcombine.low %v950_v49, %v954_v0  ;;  %v8670_v60 = vcombine.low %v1205_v50, %v1209_v51 }
 0x27c   :  { %4359 = vmatpush1.bf16.msra.mxu1 %v8876_v55  ;;  %v958_v55 = vld [vmem:[#allocation7 + $0x158] sm:$0xff] }
 0x27d   :  { %4445 = vmatpush1.bf16.msra.mxu0 %v8622_v56  ;;  %4360 = vmatprep.subr.bf16.mxu1 %v8885_v57  ;;  %v962_v56 = vld [vmem:[#allocation7 + $0x178] sm:$0xff]  ;;  %v1213_v57 = vld [vmem:[#allocation7 + $0x950] sm:$0xff] }
 0x27e   :  { %4446 = vmatprep.subr.bf16.mxu0 %v8631_v58  ;;  %v1217_v58 = vld [vmem:[#allocation7 + $0x970] sm:$0xff]  ;;  %v8425_v61 = vcombine.high %v958_v55, %v962_v56  ;;  %v8424_v15 = vcombine.low %v958_v55, %v962_v56 }
 0x27f   :  { %v8679_v62 = vcombine.high %v1213_v57, %v1217_v58  ;;  %v8678_v16 = vcombine.low %v1213_v57, %v1217_v58 }
 0x280   :  { %4361 = vmatpush1.bf16.msra.mxu1 %v8884_v1  ;;  %v966_v1 = vld [vmem:[#allocation7 + $0x198] sm:$0xff] }
 0x281   :  { %4447 = vmatpush1.bf16.msra.mxu0 %v8630_v3  ;;  %4545 = vmatprep.subr.bf16.mxu1 %v8385_v4  ;;  %v970_v3 = vld [vmem:[#allocation7 + $0x1b8] sm:$0xff]  ;;  %v1221_v4 = vld [vmem:[#allocation7 + $0x990] sm:$0xff] }
 0x282   :  { %4459 = vmatprep.subr.bf16.mxu0 %v8639_v13  ;;  %v1225_v13 = vld [vmem:[#allocation7 + $0x9b0] sm:$0xff]  ;;  %v8432_v28 = vcombine.low %v966_v1, %v970_v3 }
 0x283   :  { %4363 = vmatmul.mubr.bf16.vlgmr.msra.gmra.mrb[12].mxu1 %v10669_v20  ;;  %v8687_v21 = vcombine.high %v1221_v4, %v1225_v13 }
 0x284   :  { %4449 = vmatmul.mubr.bf16.vlgmr.msra.gmra.mrb[12].mxu0 %v10635_v44  ;;  %4546 = vmatpush1.bf16.msra.mxu1 %v8384_v18  ;;  %v8433_v18 = vcombine.high %v966_v1, %v970_v3 }
 0x285   :  { %4460 = vmatpush1.bf16.msra.mxu0 %v8638_v25  ;;  %4491 = vmatprep.mubr.bf16.mxu0 %v10667_v17  ;;  %v978_v25 = vld [vmem:[#allocation7 + $0x1f8] sm:$0xff] }
 0x286   :  { %4577 = vmatprep.mubr.bf16.mxu1 %v10637_v45  ;;  %4461 = vmatprep.subr.bf16.mxu0 %v8647_v26  ;;  %v8408_v45 = vcombine.low %v942_v38, %v946_v40  ;;  %v1229_v26 = vld [vmem:[#allocation7 + $0x9d0] sm:$0xff]  ;;  %v8441_v31 = vcombine.high %v974_v22, %v978_v25  ;;  %v8440_v38 = vcombine.low %v974_v22, %v978_v25 }
 0x287   :  { %4547 = vmatprep.subr.bf16.mxu1 %v8393_v29  ;;  %v8686_v29 = vcombine.low %v1221_v4, %v1225_v13  ;;  %v8695_v33 = vcombine.high %v1229_v26, %v1233_v19  ;;  %v8694_v40 = vcombine.low %v1229_v26, %v1233_v19 }
 0x288   :  { %4548 = vmatpush1.bf16.msra.mxu1 %v8392_v34  ;;  %v982_v34 = vld [vmem:[#allocation7 + $0x218] sm:$0xff] }
 0x289   :  { %4462 = vmatpush1.bf16.msra.mxu0 %v8646_v35  ;;  %4549 = vmatprep.subr.bf16.mxu1 %v8401_v36  ;;  %v986_v35 = vld [vmem:[#allocation7 + $0x238] sm:$0xff]  ;;  %v1237_v36 = vld [vmem:[#allocation7 + $0xa10] sm:$0xff] }
 0x28a   :  { %4463 = vmatprep.subr.bf16.mxu0 %v8655_v37  ;;  %v1241_v37 = vld [vmem:[#allocation7 + $0xa30] sm:$0xff]  ;;  %v8449_v41 = vcombine.high %v982_v34, %v986_v35  ;;  %v8448_v49 = vcombine.low %v982_v34, %v986_v35 }
 0x28b   :  { %v8703_v42 = vcombine.high %v1237_v36, %v1241_v37  ;;  %v8702_v0 = vcombine.low %v1237_v36, %v1241_v37 }
 0x28c   :  { %4550 = vmatpush1.bf16.msra.mxu1 %v8400_v7  ;;  %v990_v7 = vld [vmem:[#allocation7 + $0x258] sm:$0xff] }
 0x28d   :  { %4464 = vmatpush1.bf16.msra.mxu0 %v8654_v43  ;;  %4551 = vmatprep.subr.bf16.mxu1 %v8409_v47  ;;  %v994_v43 = vld [vmem:[#allocation7 + $0x278] sm:$0xff]  ;;  %v1245_v47 = vld [vmem:[#allocation7 + $0xa50] sm:$0xff] }
 0x28e   :  { %4465 = vmatprep.subr.bf16.mxu0 %v8663_v48  ;;  %v1249_v48 = vld [vmem:[#allocation7 + $0xa70] sm:$0xff]  ;;  %v8457_v50 = vcombine.high %v990_v7, %v994_v43  ;;  %v8456_v55 = vcombine.low %v990_v7, %v994_v43 }
 0x28f   :  { %v8711_v51 = vcombine.high %v1245_v47, %v1249_v48  ;;  %v8710_v56 = vcombine.low %v1245_v47, %v1249_v48 }
 0x290   :  { %4552 = vmatpush1.bf16.msra.mxu1 %v8408_v45  ;;  %v998_v45 = vld [vmem:[#allocation7 + $0x298] sm:$0xff] }
 0x291   :  { %4466 = vmatpush1.bf16.msra.mxu0 %v8662_v52  ;;  %4553 = vmatprep.subr.bf16.mxu1 %v8417_v53  ;;  %v1002_v52 = vld [vmem:[#allocation7 + $0x2b8] sm:$0xff]  ;;  %v1253_v53 = vld [vmem:[#allocation7 + $0xa90] sm:$0xff] }
 0x292   :  { %4467 = vmatprep.subr.bf16.mxu0 %v8671_v54  ;;  %v1257_v54 = vld [vmem:[#allocation7 + $0xab0] sm:$0xff]  ;;  %v8465_v57 = vcombine.high %v998_v45, %v1002_v52  ;;  %v8464_v1 = vcombine.low %v998_v45, %v1002_v52 }
 0x293   :  { %v8719_v58 = vcombine.high %v1253_v53, %v1257_v54  ;;  %v8718_v3 = vcombine.low %v1253_v53, %v1257_v54 }
 0x294   :  { %4554 = vmatpush1.bf16.msra.mxu1 %v8416_v59  ;;  %v1006_v59 = vld [vmem:[#allocation7 + $0x2d8] sm:$0xff] }
 0x295   :  { %4468 = vmatpush1.bf16.msra.mxu0 %v8670_v60  ;;  %4555 = vmatprep.subr.bf16.mxu1 %v8425_v61  ;;  %v1010_v60 = vld [vmem:[#allocation7 + $0x2f8] sm:$0xff]  ;;  %v1261_v61 = vld [vmem:[#allocation7 + $0xad0] sm:$0xff] }
 0x296   :  { %4469 = vmatprep.subr.bf16.mxu0 %v8679_v62  ;;  %v1265_v62 = vld [vmem:[#allocation7 + $0xaf0] sm:$0xff]  ;;  %v8473_v4 = vcombine.high %v1006_v59, %v1010_v60  ;;  %v8472_v22 = vcombine.low %v1006_v59, %v1010_v60 }
 0x297   :  { %v8727_v13 = vcombine.high %v1261_v61, %v1265_v62  ;;  %v8726_v25 = vcombine.low %v1261_v61, %v1265_v62 }
 0x298   :  { %4556 = vmatpush1.bf16.msra.mxu1 %v8424_v15  ;;  %v1014_v15 = vld [vmem:[#allocation7 + $0x318] sm:$0xff] }
 0x299   :  { %4470 = vmatpush1.bf16.msra.mxu0 %v8678_v16  ;;  %4557 = vmatprep.subr.bf16.mxu1 %v8433_v18  ;;  %v1018_v16 = vld [vmem:[#allocation7 + $0x338] sm:$0xff]  ;;  %v1269_v18 = vld [vmem:[#allocation7 + $0xb10] sm:$0xff] }
 0x29a   :  { %4471 = vmatprep.subr.bf16.mxu0 %v8687_v21  ;;  %v1273_v21 = vld [vmem:[#allocation7 + $0xb30] sm:$0xff]  ;;  %v8481_v26 = vcombine.high %v1014_v15, %v1018_v16  ;;  %v8480_v34 = vcombine.low %v1014_v15, %v1018_v16  ;;  %v1058_v15 = vld [vmem:[#allocation7 + $0x478] sm:$0xff] }
 0x29b   :  { %v8735_v19 = vcombine.high %v1269_v18, %v1273_v21  ;;  %v8734_v35 = vcombine.low %v1269_v18, %v1273_v21  ;;  %v1062_v21 = vld [vmem:[#allocation7 + $0x498] sm:$0xff] }
 0x29c   :  { %4558 = vmatpush1.bf16.msra.mxu1 %v8432_v28  ;;  %v1022_v28 = vld [vmem:[#allocation7 + $0x358] sm:$0xff] }
 0x29d   :  { %4472 = vmatpush1.bf16.msra.mxu0 %v8686_v29  ;;  %4559 = vmatprep.subr.bf16.mxu1 %v8441_v31  ;;  %v1026_v29 = vld [vmem:[#allocation7 + $0x378] sm:$0xff]  ;;  %v1277_v31 = vld [vmem:[#allocation7 + $0xb50] sm:$0xff] }
 0x29e   :  { %4473 = vmatprep.subr.bf16.mxu0 %v8695_v33  ;;  %v1281_v33 = vld [vmem:[#allocation7 + $0xb70] sm:$0xff]  ;;  %v8489_v36 = vcombine.high %v1022_v28, %v1026_v29  ;;  %v8488_v7 = vcombine.low %v1022_v28, %v1026_v29 }
 0x29f   :  { %v8743_v37 = vcombine.high %v1277_v31, %v1281_v33  ;;  %v8742_v43 = vcombine.low %v1277_v31, %v1281_v33 }
 0x2a0   :  { %4560 = vmatpush1.bf16.msra.mxu1 %v8440_v38  ;;  %v1030_v38 = vld [vmem:[#allocation7 + $0x398] sm:$0xff] }
 0x2a1   :  { %4474 = vmatpush1.bf16.msra.mxu0 %v8694_v40  ;;  %4561 = vmatprep.subr.bf16.mxu1 %v8449_v41  ;;  %v1034_v40 = vld [vmem:[#allocation7 + $0x3b8] sm:$0xff]  ;;  %v1285_v41 = vld [vmem:[#allocation7 + $0xb90] sm:$0xff] }
 0x2a2   :  { %4475 = vmatprep.subr.bf16.mxu0 %v8703_v42  ;;  %v1289_v42 = vld [vmem:[#allocation7 + $0xbb0] sm:$0xff]  ;;  %v8497_v47 = vcombine.high %v1030_v38, %v1034_v40  ;;  %v8496_v45 = vcombine.low %v1030_v38, %v1034_v40 }
 0x2a3   :  { %v8751_v48 = vcombine.high %v1285_v41, %v1289_v42  ;;  %v8750_v52 = vcombine.low %v1285_v41, %v1289_v42  ;;  %v1078_v42 = vld [vmem:[#allocation7 + $0x518] sm:$0xff] }
 0x2a4   :  { %4562 = vmatpush1.bf16.msra.mxu1 %v8448_v49  ;;  %v1038_v49 = vld [vmem:[#allocation7 + $0x3d8] sm:$0xff] }
 0x2a5   :  { %4476 = vmatpush1.bf16.msra.mxu0 %v8702_v0  ;;  %4563 = vmatprep.subr.bf16.mxu1 %v8457_v50  ;;  %v1042_v0 = vld [vmem:[#allocation7 + $0x3f8] sm:$0xff]  ;;  %v1293_v50 = vld [vmem:[#allocation7 + $0xbd0] sm:$0xff] }
 0x2a6   :  { %4477 = vmatprep.subr.bf16.mxu0 %v8711_v51  ;;  %v1297_v51 = vld [vmem:[#allocation7 + $0xbf0] sm:$0xff]  ;;  %v8505_v53 = vcombine.high %v1038_v49, %v1042_v0  ;;  %v8504_v59 = vcombine.low %v1038_v49, %v1042_v0 }
 0x2a7   :  { %v8759_v54 = vcombine.high %v1293_v50, %v1297_v51  ;;  %v8758_v60 = vcombine.low %v1293_v50, %v1297_v51  ;;  %v1086_v50 = vld [vmem:[#allocation7 + $0x558] sm:$0xff] }
 0x2a8   :  { %4564 = vmatpush1.bf16.msra.mxu1 %v8456_v55  ;;  %v1046_v55 = vld [vmem:[#allocation7 + $0x418] sm:$0xff] }
 0x2a9   :  { %4478 = vmatpush1.bf16.msra.mxu0 %v8710_v56  ;;  %4565 = vmatprep.subr.bf16.mxu1 %v8465_v57  ;;  %v1050_v56 = vld [vmem:[#allocation7 + $0x438] sm:$0xff]  ;;  %v1301_v57 = vld [vmem:[#allocation7 + $0xc10] sm:$0xff] }
 0x2aa   :  { %4479 = vmatprep.subr.bf16.mxu0 %v8719_v58  ;;  %v1305_v58 = vld [vmem:[#allocation7 + $0xc30] sm:$0xff]  ;;  %v8513_v61 = vcombine.high %v1046_v55, %v1050_v56  ;;  %v1090_v51 = vld [vmem:[#allocation7 + $0x578] sm:$0xff] }
 0x2ab   :  { %v8767_v62 = vcombine.high %v1301_v57, %v1305_v58  ;;  %v8766_v16 = vcombine.low %v1301_v57, %v1305_v58 }
 0x2ac   :  { %4566 = vmatpush1.bf16.msra.mxu1 %v8464_v1  ;;  %v1309_v1 = vld [vmem:[#allocation7 + $0xc50] sm:$0xff] }
 0x2ad   :  { %4480 = vmatpush1.bf16.msra.mxu0 %v8718_v3  ;;  %4567 = vmatprep.subr.bf16.mxu1 %v8473_v4  ;;  %v1313_v3 = vld [vmem:[#allocation7 + $0xc70] sm:$0xff]  ;;  %v8512_v4 = vcombine.low %v1046_v55, %v1050_v56  ;;  %v8553_v56 = vcombine.high %v1086_v50, %v1090_v51 }
 0x2ae   :  { %4481 = vmatprep.subr.bf16.mxu0 %v8727_v13  ;;  %v1054_v13 = vld [vmem:[#allocation7 + $0x458] sm:$0xff]  ;;  %v8775_v18 = vcombine.high %v1309_v1, %v1313_v3  ;;  %v8774_v29 = vcombine.low %v1309_v1, %v1313_v3  ;;  %v1353_v1 = vld [vmem:[#allocation7 + $0xdb0] sm:$0xff]  ;;  %v8552_v3 = vcombine.low %v1086_v50, %v1090_v51 }
 0x2af   :  { %v8520_v28 = vcombine.low %v1054_v13, %v1058_v15 }
 0x2b0   :  { %4568 = vmatpush1.bf16.msra.mxu1 %v8472_v22  ;;  %v1066_v22 = vld [vmem:[#allocation7 + $0x4b8] sm:$0xff] }
 0x2b1   :  { %4482 = vmatpush1.bf16.msra.mxu0 %v8726_v25  ;;  %4569 = vmatprep.subr.bf16.mxu1 %v8481_v26  ;;  %v8521_v25 = vcombine.high %v1054_v13, %v1058_v15  ;;  %v1317_v26 = vld [vmem:[#allocation7 + $0xc90] sm:$0xff]  ;;  %v8529_v31 = vcombine.high %v1062_v21, %v1066_v22 }
 0x2b2   :  { %4483 = vmatprep.subr.bf16.mxu0 %v8735_v19  ;;  %v1321_v19 = vld [vmem:[#allocation7 + $0xcb0] sm:$0xff] }
 0x2b3   :  { %v8783_v33 = vcombine.high %v1317_v26, %v1321_v19  ;;  %v8782_v38 = vcombine.low %v1317_v26, %v1321_v19  ;;  %v1357_v26 = vld [vmem:[#allocation7 + $0xdd0] sm:$0xff] }
 0x2b4   :  { %4570 = vmatpush1.bf16.msra.mxu1 %v8480_v34  ;;  %v1070_v34 = vld [vmem:[#allocation7 + $0x4d8] sm:$0xff]  ;;  %v1361_v19 = vld [vmem:[#allocation7 + $0xdf0] sm:$0xff] }
 0x2b5   :  { %4484 = vmatpush1.bf16.msra.mxu0 %v8734_v35  ;;  %4571 = vmatprep.subr.bf16.mxu1 %v8489_v36  ;;  %v1074_v35 = vld [vmem:[#allocation7 + $0x4f8] sm:$0xff]  ;;  %v1329_v36 = vld [vmem:[#allocation7 + $0xcf0] sm:$0xff] }
 0x2b6   :  { %4485 = vmatprep.subr.bf16.mxu0 %v8743_v37  ;;  %v8528_v37 = vcombine.low %v1062_v21, %v1066_v22  ;;  %v8537_v40 = vcombine.high %v1070_v34, %v1074_v35  ;;  %v1106_v21 = vld [vmem:[#allocation7 + $0x5f8] sm:$0xff] }
 0x2b8   :  { %4572 = vmatpush1.bf16.msra.mxu1 %v8488_v7  ;;  %v1082_v7 = vld [vmem:[#allocation7 + $0x538] sm:$0xff] }
 0x2b9   :  { %4486 = vmatpush1.bf16.msra.mxu0 %v8742_v43  ;;  %4573 = vmatprep.subr.bf16.mxu1 %v8497_v47  ;;  %v1333_v43 = vld [vmem:[#allocation7 + $0xd10] sm:$0xff]  ;;  %v8545_v49 = vcombine.high %v1078_v42, %v1082_v7 }
 0x2ba   :  { %4487 = vmatprep.subr.bf16.mxu0 %v8751_v48  ;;  %v1337_v47 = vld [vmem:[#allocation7 + $0xd30] sm:$0xff] }
 0x2bb   :  { %v8799_v0 = vcombine.high %v1333_v43, %v1337_v47  ;;  %v8798_v55 = vcombine.low %v1333_v43, %v1337_v47 }
 0x2bc   :  { %4574 = vmatpush1.bf16.msra.mxu1 %v8496_v45  ;;  %v10702_v45 = vld [vmem:[#allocation9] sm:$0xff] }
 0x2bd   :  { %4488 = vmatpush1.bf16.msra.mxu0 %v8750_v52  ;;  %4575 = vmatprep.subr.bf16.mxu1 %v8505_v53  ;;  %v1341_v52 = vld [vmem:[#allocation7 + $0xd50] sm:$0xff]  ;;  %v1432_v57 = vrot.slane %v10702_v45, %v10612_v6 }
 0x2be   :  { %4489 = vmatprep.subr.bf16.mxu0 %v8759_v54  ;;  %v1345_v53 = vld [vmem:[#allocation7 + $0xd70] sm:$0xff]  ;;  %v8544_v54 = vcombine.low %v1078_v42, %v1082_v7 }
 0x2bf   :  { %v8807_v58 = vcombine.high %v1341_v52, %v1345_v53  ;;  %v4064_v15 = vadd.f32 %v10686_v24, %v1432_v57  ;;  %v1369_v7 = vld [vmem:[#allocation7 + $0xe30] sm:$0xff] }
 0x2c0   :  { %4576 = vmatpush1.bf16.msra.mxu1 %v8504_v59  ;;  %v1094_v59 = vld [vmem:[#allocation7 + $0x598] sm:$0xff] }
 0x2c1   :  { %4490 = vmatpush1.bf16.msra.mxu0 %v8758_v60  ;;  %4588 = vmatprep.subr.bf16.mxu1 %v8513_v61  ;;  %v1098_v60 = vld [vmem:[#allocation7 + $0x5b8] sm:$0xff]  ;;  %v1436_v61 = vrot.slane %v10702_v45, %v10620_v9 }
 0x2c2   :  { %4502 = vmatprep.subr.bf16.mxu0 %v8767_v62  ;;  %v1349_v62 = vld [vmem:[#allocation7 + $0xd90] sm:$0xff]  ;;  %v8561_v13 = vcombine.high %v1094_v59, %v1098_v60 }
 0x2c3   :  { %4578 = vmatmul.mubr.bf16.vlgmr.msra.gmra.mrb[16].mxu1 %v10633_v39  ;;  %v1325_v39 = vld [vmem:[#allocation7 + $0xcd0] sm:$0xff]  ;;  %v4066_v22 = vadd.f32 %v10688_v27, %v1436_v61  ;;  %v8814_v24 = vcombine.low %v1349_v62, %v1353_v1  ;;  %v8823_v27 = vcombine.high %v1357_v26, %v1361_v19 }
 0x2c4   :  { %4492 = vmatmul.mubr.bf16.vlgmr.msra.gmra.mrb[12].mxu0 %v10665_v12  ;;  %4589 = vmatpush1.bf16.msra.mxu1 %v8512_v4  ;;  %v8791_v41 = vcombine.high %v1325_v39, %v1329_v36  ;;  %v8790_v48 = vcombine.low %v1325_v39, %v1329_v36  ;;  %v8806_v4 = vcombine.low %v1341_v52, %v1345_v53  ;;  %v1118_v52 = vld [vmem:[#allocation7 + $0x658] sm:$0xff] }
 0x2c5   :  { %4503 = vmatpush1.bf16.msra.mxu0 %v8766_v16  ;;  %4534 = vmatprep.mubr.bf16.mxu0 %v10671_v23  ;;  %v8815_v16 = vcombine.high %v1349_v62, %v1353_v1  ;;  %v1122_v53 = vld [vmem:[#allocation7 + $0x678] sm:$0xff]  ;;  %v1381_v1 = vld [vmem:[#allocation7 + $0xe90] sm:$0xff] }
 0x2c6   :  { %4620 = vmatprep.mubr.bf16.mxu1 %v10639_v46  ;;  %4504 = vmatprep.subr.bf16.mxu0 %v8775_v18  ;;  %v8536_v46 = vcombine.low %v1070_v34, %v1074_v35  ;;  %v1102_v18 = vld [vmem:[#allocation7 + $0x5d8] sm:$0xff]  ;;  %v8560_v34 = vcombine.low %v1094_v59, %v1098_v60  ;;  %v8585_v59 = vcombine.high %v1118_v52, %v1122_v53 }
 0x2c7   :  { %4590 = vmatprep.subr.bf16.mxu1 %v8521_v25  ;;  %v8569_v36 = vcombine.high %v1102_v18, %v1106_v21  ;;  %v8568_v47 = vcombine.low %v1102_v18, %v1106_v21  ;;  %v1130_v62 = vld [vmem:[#allocation7 + $0x6b8] sm:$0xff] }
 0x2c8   :  { %4591 = vmatpush1.bf16.msra.mxu1 %v8520_v28  ;;  %v4068_v28 = vadd.f32 %v10690_v30, %v1432_v57  ;;  %v1365_v30 = vld [vmem:[#allocation7 + $0xe10] sm:$0xff]  ;;  %v1134_v18 = vld [vmem:[#allocation7 + $0x6d8] sm:$0xff] }
 0x2c9   :  { %4505 = vmatpush1.bf16.msra.mxu0 %v8774_v29  ;;  %4592 = vmatprep.subr.bf16.mxu1 %v8529_v31  ;;  %v4070_v29 = vadd.f32 %v10692_v32, %v1436_v61  ;;  %v8831_v51 = vcombine.high %v1365_v30, %v1369_v7  ;;  %v1126_v61 = vld [vmem:[#allocation7 + $0x698] sm:$0xff] }
 0x2ca   :  { %4506 = vmatprep.subr.bf16.mxu0 %v8783_v33  ;;  %v1138_v21 = vld [vmem:[#allocation7 + $0x6f8] sm:$0xff] }
 0x2cc   :  { %4593 = vmatpush1.bf16.msra.mxu1 %v8528_v37 }
 0x2cd   :  { %4507 = vmatpush1.bf16.msra.mxu0 %v8782_v38  ;;  %4594 = vmatprep.subr.bf16.mxu1 %v8537_v40  ;;  %v1110_v40 = vld [vmem:[#allocation7 + $0x618] sm:$0xff] }
 0x2ce   :  { %4508 = vmatprep.subr.bf16.mxu0 %v8791_v41  ;;  %v1114_v41 = vld [vmem:[#allocation7 + $0x638] sm:$0xff] }
 0x2cf   :  { %v8576_v57 = vcombine.low %v1110_v40, %v1114_v41 }
 0x2d0   :  { %4595 = vmatpush1.bf16.msra.mxu1 %v8536_v46 }
 0x2d1   :  { %4509 = vmatpush1.bf16.msra.mxu0 %v8790_v48  ;;  %4596 = vmatprep.subr.bf16.mxu1 %v8545_v49  ;;  %v8822_v49 = vcombine.low %v1357_v26, %v1361_v19  ;;  %v8592_v26 = vcombine.low %v1126_v61, %v1130_v62 }
 0x2d2   :  { %4510 = vmatprep.subr.bf16.mxu0 %v8799_v0  ;;  %v8577_v0 = vcombine.high %v1110_v40, %v1114_v41  ;;  %v1405_v40 = vld [vmem:[#allocation7 + $0xf50] sm:$0xff] }
 0x2d3   :  { %v1409_v41 = vld [vmem:[#allocation7 + $0xf70] sm:$0xff] }
 0x2d4   :  { %4597 = vmatpush1.bf16.msra.mxu1 %v8544_v54 }
 0x2d5   :  { %4511 = vmatpush1.bf16.msra.mxu0 %v8798_v55  ;;  %4598 = vmatprep.subr.bf16.mxu1 %v8553_v56  ;;  %v1373_v55 = vld [vmem:[#allocation7 + $0xe50] sm:$0xff] }
 0x2d6   :  { %4512 = vmatprep.subr.bf16.mxu0 %v8807_v58  ;;  %v4192_v25 = vpop.f32.mrb[8].mxu0  ;;  %v1377_v56 = vld [vmem:[#allocation7 + $0xe70] sm:$0xff]  ;;  %v8830_v58 = vcombine.low %v1365_v30, %v1369_v7 }
 0x2d7   :  { %v9427_v31 = vadd.f32 %v4192_v25, %v4064_v15  ;;  %v4194_v33 = vpop.f32.mrb[9].mxu0  ;;  %v8839_v60 = vcombine.high %v1373_v55, %v1377_v56  ;;  %v8593_v15 = vcombine.high %v1126_v61, %v1130_v62  ;;  %v1393_v25 = vld [vmem:[#allocation7 + $0xef0] sm:$0xff]  ;;  %v1174_v62 = vld [vmem:[#allocation7 + $0x818] sm:$0xff] }
 0x2d8   :  { %4599 = vmatpush1.bf16.msra.mxu1 %v8552_v3  ;;  %v9429_v35 = vadd.f32 %v4194_v33, %v4066_v22  ;;  %v4196_v39 = vpop.f32.mrb[10].mxu0  ;;  %v1385_v3 = vld [vmem:[#allocation7 + $0xeb0] sm:$0xff]  ;;  %v1146_v33 = vld [vmem:[#allocation7 + $0x738] sm:$0xff] }
 0x2d9   :  { %4513 = vmatpush1.bf16.msra.mxu0 %v8806_v4  ;;  %4600 = vmatprep.subr.bf16.mxu1 %v8561_v13  ;;  %v9431_v37 = vadd.f32 %v4196_v39, %v4068_v28  ;;  %v4198_v38 = vpop.f32.mrb[11].mxu0  ;;  %v4717_v32 = vmax.f32 %v9427_v31, 0.0  ;;  %v8584_v4 = vcombine.low %v1118_v52, %v1122_v53  ;;  %v8838_v13 = vcombine.low %v1373_v55, %v1377_v56  ;;  %v1389_v22 = vld [vmem:[#allocation7 + $0xed0] sm:$0xff]  ;;  %v1142_v31 = vld [vmem:[#allocation7 + $0x718] sm:$0xff] }
 0x2da   :  { %4514 = vmatprep.subr.bf16.mxu0 %v8815_v16  ;;  %v9433_v42 = vadd.f32 %v4198_v38, %v4070_v29  ;;  %v4718_v46 = vmax.f32 %v9429_v35, 0.0  ;;  %v8847_v16 = vcombine.high %v1381_v1, %v1385_v3  ;;  %v8846_v19 = vcombine.low %v1381_v1, %v1385_v3  ;;  %v1401_v35 = vld [vmem:[#allocation7 + $0xf30] sm:$0xff]  ;;  %v1150_v38 = vld [vmem:[#allocation7 + $0x758] sm:$0xff] }
 0x2db   :  { %v4725_v43 = vmax.f32 %v9431_v37, 0.0  ;;  %v8601_v28 = vcombine.high %v1134_v18, %v1138_v21  ;;  %v8855_v29 = vcombine.high %v1389_v22, %v1393_v25  ;;  %v8600_v39 = vcombine.low %v1134_v18, %v1138_v21  ;;  %v1166_v53 = vld [vmem:[#allocation7 + $0x7d8] sm:$0xff]  ;;  %v1421_v56 = vld [vmem:[#allocation7 + $0xfd0] sm:$0xff] }
 0x2dc   :  { %4601 = vmatpush1.bf16.msra.mxu1 %v8560_v34  ;;  %v4726_v48 = vmax.f32 %v9433_v42, 0.0  ;;  %v1397_v34 = vld [vmem:[#allocation7 + $0xf10] sm:$0xff]  ;;  %v8608_v42 = vcombine.low %v1142_v31, %v1146_v33  ;;  %v1170_v55 = vld [vmem:[#allocation7 + $0x7f8] sm:$0xff] }
 0x2dd   :  { %4515 = vmatpush1.bf16.msra.mxu0 %v8814_v24  ;;  %4602 = vmatprep.subr.bf16.mxu1 %v8569_v36  ;;  %v10712_v50 = vpack.c.bf16 %v4725_v43, %v4717_v32  ;;  %v8854_v24 = vcombine.low %v1389_v22, %v1393_v25  ;;  %v8609_v36 = vcombine.high %v1142_v31, %v1146_v33  ;;  %v1158_v43 = vld [vmem:[#allocation7 + $0x798] sm:$0xff]  ;;  %v9566_v22 = vld [vmem:[#allocation10] ss:$28 sps:$4 sm:$0xff]  }
 0x2de   :  { %4516 = vmatprep.subr.bf16.mxu0 %v8823_v27  ;;  %v10714_v54 = vpack.c.bf16 %v4726_v48, %v4718_v46  ;;  %v8863_v37 = vcombine.high %v1397_v34, %v1401_v35  ;;  %v1154_v27 = vld [vmem:[#allocation7 + $0x778] sm:$0xff]  ;;  %v8862_v30 = vcombine.low %v1397_v34, %v1401_v35  ;;  %v8871_v32 = vcombine.high %v1405_v40, %v1409_v41  ;;  %v1413_v46 = vld [vmem:[#allocation7 + $0xf90] sm:$0xff] }
 0x2df   :  { %v8617_v7 = vcombine.high %v1150_v38, %v1154_v27  ;;  %v1417_v48 = vld [vmem:[#allocation7 + $0xfb0] sm:$0xff]  ;;  %v1178_v1 = vld [vmem:[#allocation7 + $0x838] sm:$0xff]  ;;  %v8632_v3 = vcombine.low %v1166_v53, %v1170_v55 }
 0x2e0   :  { %4603 = vmatpush1.bf16.msra.mxu1 %v8568_v47  ;;  %v1162_v47 = vld [vmem:[#allocation7 + $0x7b8] sm:$0xff]  ;;  %v8879_v52 = vcombine.high %v1413_v46, %v1417_v48  ;;  %v8640_v21 = vcombine.low %v1174_v62, %v1178_v1 }
 0x2e1   :  { %4517 = vmatpush1.bf16.msra.mxu0 %v8822_v49  ;;  %4604 = vmatprep.subr.bf16.mxu1 %v8577_v0  ;;  %v8616_v49 = vcombine.low %v1150_v38, %v1154_v27  ;;  %v8870_v0 = vcombine.low %v1405_v40, %v1409_v41  ;;  %v1186_v18 = vld [vmem:[#allocation7 + $0x878] sm:$0xff]  ;;  %v9575_v40 = vld [vmem:[#allocation10 + $0xa8] ss:$28 sps:$4 sm:$0xff]  }
 0x2e2   :  { %4518 = vmatprep.subr.bf16.mxu0 %v8831_v51  ;;  %v8625_v51 = vcombine.high %v1158_v43, %v1162_v47  ;;  %v9569_v31 = vld [vmem:[#allocation10 + $0x38] ss:$28 sps:$4 sm:$0xff]  }
 0x2e3   :  { %v9574_v34 = vld [vmem:[#allocation10 + $0x74] ss:$28 sps:$4 sm:$0xff]  }
 0x2e4   :  { %4605 = vmatpush1.bf16.msra.mxu1 %v8576_v57  ;;  %v1425_v57 = vld [vmem:[#allocation7 + $0xff0] sm:$0xff]  ;;  %v1198_v35 = vld [vmem:[#allocation7 + $0x8d8] sm:$0xff] }
 0x2e5   :  { %4519 = vmatpush1.bf16.msra.mxu0 %v8830_v58  ;;  %4606 = vmatprep.subr.bf16.mxu1 %v8585_v59  ;;  %v8624_v58 = vcombine.low %v1158_v43, %v1162_v47  ;;  %v8878_v59 = vcombine.low %v1413_v46, %v1417_v48  ;;  %v8887_v61 = vcombine.high %v1421_v56, %v1425_v57  ;;  %v1206_v38 = vld [vmem:[#allocation7 + $0x918] sm:$0xff]  ;;  %v9578_v43 = vld [vmem:[#allocation10 + $0xe0] ss:$28 sps:$4 sm:$0xff]  }
 0x2e6   :  { %4520 = vmatprep.subr.bf16.mxu0 %v8839_v60  ;;  %v8633_v60 = vcombine.high %v1166_v53, %v1170_v55  ;;  %v9583_v46 = vld [vmem:[#allocation10 + $0x11c] ss:$28 sps:$4 sm:$0xff]   ;;  %v1222_v48 = vld [vmem:[#allocation7 + $0x998] sm:$0xff] }
 0x2e7   :  { %v9586_v53 = vld [vmem:[#allocation10 + $0x154] ss:$28 sps:$4 sm:$0xff]  }
 0x2e8   :  { %4607 = vmatpush1.bf16.msra.mxu1 %v8584_v4  ;;  %v8886_v4 = vcombine.low %v1421_v56, %v1425_v57  ;;  %v1230_v55 = vld [vmem:[#allocation7 + $0x9d8] sm:$0xff] }
 0x2e9   :  { %4521 = vmatpush1.bf16.msra.mxu0 %v8838_v13  ;;  %4608 = vmatprep.subr.bf16.mxu1 %v8593_v15  ;;  %v8641_v13 = vcombine.high %v1174_v62, %v1178_v1  ;;  %v9568_v15 = vld [vmem:[#allocation10 + $0x4] ss:$28 sps:$4 sm:$0xff]   ;;  %v1234_v56 = vld [vmem:[#allocation7 + $0x9f8] sm:$0xff] }
 0x2ea   :  { %4522 = vmatprep.subr.bf16.mxu0 %v8847_v16  ;;  %v1182_v16 = vld [vmem:[#allocation7 + $0x858] sm:$0xff]  ;;  %v8696_v1 = vcombine.low %v1230_v55, %v1234_v56 }
 0x2eb   :  { %v8649_v25 = vcombine.high %v1182_v16, %v1186_v18  ;;  %v1242_v62 = vld [vmem:[#allocation7 + $0xa38] sm:$0xff] }
 0x2ec   :  { %4609 = vmatpush1.bf16.msra.mxu1 %v8592_v26  ;;  %v1190_v26 = vld [vmem:[#allocation7 + $0x898] sm:$0xff] }
 0x2ed   :  { %4523 = vmatpush1.bf16.msra.mxu0 %v8846_v19  ;;  %4610 = vmatprep.subr.bf16.mxu1 %v8601_v28  ;;  %v1194_v19 = vld [vmem:[#allocation7 + $0x8b8] sm:$0xff]  ;;  %v9571_v28 = vld [vmem:[#allocation10 + $0x3c] ss:$28 sps:$4 sm:$0xff]  }
 0x2ee   :  { %4524 = vmatprep.subr.bf16.mxu0 %v8855_v29  ;;  %v8648_v29 = vcombine.low %v1182_v16, %v1186_v18  ;;  %v8657_v33 = vcombine.high %v1190_v26, %v1194_v19  ;;  %v1250_v16 = vld [vmem:[#allocation7 + $0xa78] sm:$0xff] }
 0x2f0   :  { %4611 = vmatpush1.bf16.msra.mxu1 %v8600_v39  ;;  %v1202_v39 = vld [vmem:[#allocation7 + $0x8f8] sm:$0xff] }
 0x2f1   :  { %4525 = vmatpush1.bf16.msra.mxu0 %v8854_v24  ;;  %4612 = vmatprep.subr.bf16.mxu1 %v8609_v36  ;;  %v8656_v24 = vcombine.low %v1190_v26, %v1194_v19  ;;  %v8665_v36 = vcombine.high %v1198_v35, %v1202_v39  ;;  %v8664_v27 = vcombine.low %v1198_v35, %v1202_v39  ;;  %v1254_v26 = vld [vmem:[#allocation7 + $0xa98] sm:$0xff] }
 0x2f2   :  { %4526 = vmatprep.subr.bf16.mxu0 %v8863_v37  ;;  %v9577_v37 = vld [vmem:[#allocation10 + $0xac] ss:$28 sps:$4 sm:$0xff]   ;;  %v1258_v19 = vld [vmem:[#allocation7 + $0xab8] sm:$0xff] }
 0x2f3   :  { %v1266_v35 = vld [vmem:[#allocation7 + $0xaf8] sm:$0xff]  ;;  %v8720_v39 = vcombine.low %v1254_v26, %v1258_v19 }
 0x2f4   :  { %4613 = vmatpush1.bf16.msra.mxu1 %v8608_v42  ;;  %v9580_v42 = vld [vmem:[#allocation10 + $0xe4] ss:$28 sps:$4 sm:$0xff]  }
 0x2f5   :  { %4527 = vmatpush1.bf16.msra.mxu0 %v8862_v30  ;;  %4614 = vmatprep.subr.bf16.mxu1 %v8617_v7  ;;  %v1214_v30 = vld [vmem:[#allocation7 + $0x958] sm:$0xff] }
 0x2f6   :  { %4528 = vmatprep.subr.bf16.mxu0 %v8871_v32  ;;  %v1218_v7 = vld [vmem:[#allocation7 + $0x978] sm:$0xff] }
 0x2f7   :  { %v8681_v47 = vcombine.high %v1214_v30, %v1218_v7 }
 0x2f8   :  { %4615 = vmatpush1.bf16.msra.mxu1 %v8616_v49  ;;  %v1226_v49 = vld [vmem:[#allocation7 + $0x9b8] sm:$0xff] }
 0x2f9   :  { %4529 = vmatpush1.bf16.msra.mxu0 %v8870_v0  ;;  %4616 = vmatprep.subr.bf16.mxu1 %v8625_v51  ;;  %v8680_v0 = vcombine.low %v1214_v30, %v1218_v7  ;;  %v9581_v51 = vld [vmem:[#allocation10 + $0x118] ss:$28 sps:$4 sm:$0xff]   ;;  %v8688_v57 = vcombine.low %v1222_v48, %v1226_v49 }
 0x2fa   :  { %4530 = vmatprep.subr.bf16.mxu0 %v8879_v52  ;;  %v8689_v52 = vcombine.high %v1222_v48, %v1226_v49  ;;  %v1282_v30 = vld [vmem:[#allocation7 + $0xb78] sm:$0xff] }
 0x2fb   :  { %v1290_v48 = vld [vmem:[#allocation7 + $0xbb8] sm:$0xff] }
 0x2fc   :  { %4617 = vmatpush1.bf16.msra.mxu1 %v8624_v58  ;;  %v9584_v58 = vld [vmem:[#allocation10 + $0x150] ss:$28 sps:$4 sm:$0xff]  }
 0x2fd   :  { %4531 = vmatpush1.bf16.msra.mxu0 %v8878_v59  ;;  %4618 = vmatprep.subr.bf16.mxu1 %v8633_v60  ;;  %v8697_v59 = vcombine.high %v1230_v55, %v1234_v56  ;;  %v9589_v60 = vld [vmem:[#allocation10 + $0x18c] ss:$28 sps:$4 sm:$0xff]   ;;  %v1298_v55 = vld [vmem:[#allocation7 + $0xbf8] sm:$0xff] }
 0x2fe   :  { %4532 = vmatprep.subr.bf16.mxu0 %v8887_v61  ;;  %v1238_v61 = vld [vmem:[#allocation7 + $0xa18] sm:$0xff] }
 0x2ff   :  { %v8704_v18 = vcombine.low %v1238_v61, %v1242_v62 }
 0x300   :  { %4619 = vmatpush1.bf16.msra.mxu1 %v8632_v3  ;;  %v9587_v3 = vld [vmem:[#allocation10 + $0x188] ss:$28 sps:$4 sm:$0xff]  }
 0x301   :  { %4533 = vmatpush1.bf16.msra.mxu0 %v8886_v4  ;;  %4631 = vmatprep.subr.bf16.mxu1 %v8641_v13  ;;  %v8705_v4 = vcombine.high %v1238_v61, %v1242_v62  ;;  %v9592_v13 = vld [vmem:[#allocation10 + $0x1c4] ss:$28 sps:$4 sm:$0xff]   ;;  %v1306_v61 = vld [vmem:[#allocation7 + $0xc38] sm:$0xff] }
 0x302   :  { %7594 = vmatprep.subr.bf16.mxu0 %v9568_v15  ;;  %v1246_v15 = vld [vmem:[#allocation7 + $0xa58] sm:$0xff] }
 0x303   :  { %4621 = vmatmul.mubr.bf16.vlgmr.msra.gmra.mrb[16].mxu1 %v10635_v44  ;;  %v9572_v44 = vld [vmem:[#allocation10 + $0x70] ss:$28 sps:$4 sm:$0xff]  }
 0x304   :  { %4535 = vmatmul.mubr.bf16.vlgmr.msra.gmra.mrb[12].mxu0 %v10669_v20  ;;  %4632 = vmatpush1.bf16.msra.mxu1 %v8640_v21  ;;  %v9590_v21 = vld [vmem:[#allocation10 + $0x1c0] ss:$28 sps:$4 sm:$0xff]  }
 0x305   :  { %4663 = vmatprep.mubr.bf16.mxu1 %v10667_v17  ;;  %7595 = vmatpush1.bf16.msra.mxu0 %v9566_v22  ;;  %v1210_v17 = vld [vmem:[#allocation7 + $0x938] sm:$0xff]  ;;  %v8713_v22 = vcombine.high %v1246_v15, %v1250_v16 }
 0x306   :  { %7626 = vmatprep.mubr.bf16.mxu0 %v10714_v54  ;;  %4633 = vmatprep.subr.bf16.mxu1 %v8649_v25  ;;  %v8673_v41 = vcombine.high %v1206_v38, %v1210_v17  ;;  %v8672_v32 = vcombine.low %v1206_v38, %v1210_v17  ;;  %v9595_v25 = vld [vmem:[#allocation10 + $0x1fc] ss:$28 sps:$4 sm:$0xff]   ;;  %v1274_v38 = vld [vmem:[#allocation7 + $0xb38] sm:$0xff] }
 0x307   :  { %7596 = vmatprep.subr.bf16.mxu0 %v9571_v28  ;;  %v8712_v28 = vcombine.low %v1246_v15, %v1250_v16  ;;  %v1314_v15 = vld [vmem:[#allocation7 + $0xc78] sm:$0xff] }
 0x308   :  { %4634 = vmatpush1.bf16.msra.mxu1 %v8648_v29  ;;  %v9593_v29 = vld [vmem:[#allocation10 + $0x1f8] ss:$28 sps:$4 sm:$0xff]  }
 0x309   :  { %7597 = vmatpush1.bf16.msra.mxu0 %v9569_v31  ;;  %4635 = vmatprep.subr.bf16.mxu1 %v8657_v33  ;;  %v8721_v31 = vcombine.high %v1254_v26, %v1258_v19  ;;  %v9598_v33 = vld [vmem:[#allocation10 + $0x234] ss:$28 sps:$4 sm:$0xff]  }
 0x30a   :  { %7598 = vmatprep.subr.bf16.mxu0 %v9574_v34  ;;  %v1262_v34 = vld [vmem:[#allocation7 + $0xad8] sm:$0xff] }
 0x30b   :  { %v8728_v17 = vcombine.low %v1262_v34, %v1266_v35  ;;  %v1322_v26 = vld [vmem:[#allocation7 + $0xcb8] sm:$0xff] }
 0x30c   :  { %4636 = vmatpush1.bf16.msra.mxu1 %v8656_v24  ;;  %v9596_v24 = vld [vmem:[#allocation10 + $0x230] ss:$28 sps:$4 sm:$0xff]  }
 0x30d   :  { %7599 = vmatpush1.bf16.msra.mxu0 %v9572_v44  ;;  %4637 = vmatprep.subr.bf16.mxu1 %v8665_v36  ;;  %v8729_v44 = vcombine.high %v1262_v34, %v1266_v35  ;;  %v9601_v36 = vld [vmem:[#allocation10 + $0x26c] ss:$28 sps:$4 sm:$0xff]   ;;  %v1330_v34 = vld [vmem:[#allocation7 + $0xcf8] sm:$0xff] }
 0x30e   :  { %7600 = vmatprep.subr.bf16.mxu0 %v9577_v37  ;;  %v1270_v37 = vld [vmem:[#allocation7 + $0xb18] sm:$0xff] }
 0x30f   :  { %v8736_v7 = vcombine.low %v1270_v37, %v1274_v38 }
 0x310   :  { %4638 = vmatpush1.bf16.msra.mxu1 %v8664_v27  ;;  %v9599_v27 = vld [vmem:[#allocation10 + $0x268] ss:$28 sps:$4 sm:$0xff]  }
 0x311   :  { %7601 = vmatpush1.bf16.msra.mxu0 %v9575_v40  ;;  %4639 = vmatprep.subr.bf16.mxu1 %v8673_v41  ;;  %v8737_v40 = vcombine.high %v1270_v37, %v1274_v38  ;;  %v9604_v41 = vld [vmem:[#allocation10 + $0x2a4] ss:$28 sps:$4 sm:$0xff]  }
 0x312   :  { %7602 = vmatprep.subr.bf16.mxu0 %v9580_v42  ;;  %v1278_v42 = vld [vmem:[#allocation7 + $0xb58] sm:$0xff]  ;;  %v9623_v37 = vld [vmem:[#allocation10 + $0x428] ss:$28 sps:$4 sm:$0xff]  }
 0x313   :  { %v8744_v49 = vcombine.low %v1278_v42, %v1282_v30 }
 0x314   :  { %4640 = vmatpush1.bf16.msra.mxu1 %v8672_v32  ;;  %v9602_v32 = vld [vmem:[#allocation10 + $0x2a0] ss:$28 sps:$4 sm:$0xff]  }
 0x315   :  { %7603 = vmatpush1.bf16.msra.mxu0 %v9578_v43  ;;  %4641 = vmatprep.subr.bf16.mxu1 %v8681_v47  ;;  %v8745_v43 = vcombine.high %v1278_v42, %v1282_v30  ;;  %v9607_v47 = vld [vmem:[#allocation10 + $0x2dc] ss:$28 sps:$4 sm:$0xff]  }
 0x316   :  { %7604 = vmatprep.subr.bf16.mxu0 %v9583_v46  ;;  %v1286_v46 = vld [vmem:[#allocation7 + $0xb98] sm:$0xff]  ;;  %v9626_v42 = vld [vmem:[#allocation10 + $0x460] ss:$28 sps:$4 sm:$0xff]  }
 0x317   :  { %v8752_v56 = vcombine.low %v1286_v46, %v1290_v48 }
 0x318   :  { %4642 = vmatpush1.bf16.msra.mxu1 %v8680_v0  ;;  %v9605_v0 = vld [vmem:[#allocation10 + $0x2d8] ss:$28 sps:$4 sm:$0xff]  }
 0x319   :  { %7605 = vmatpush1.bf16.msra.mxu0 %v9581_v51  ;;  %4643 = vmatprep.subr.bf16.mxu1 %v8689_v52  ;;  %v8753_v51 = vcombine.high %v1286_v46, %v1290_v48  ;;  %v9610_v52 = vld [vmem:[#allocation10 + $0x314] ss:$28 sps:$4 sm:$0xff]   ;;  %v1444_v46 = vrot.slane %v10702_v45, %v10623_v10 }
 0x31a   :  { %7606 = vmatprep.subr.bf16.mxu0 %v9586_v53  ;;  %v1294_v53 = vld [vmem:[#allocation7 + $0xbd8] sm:$0xff] }
 0x31b   :  { %v8760_v62 = vcombine.low %v1294_v53, %v1298_v55 }
 0x31c   :  { %4644 = vmatpush1.bf16.msra.mxu1 %v8688_v57  ;;  %v9608_v57 = vld [vmem:[#allocation10 + $0x310] ss:$28 sps:$4 sm:$0xff]  }
 0x31d   :  { %7607 = vmatpush1.bf16.msra.mxu0 %v9584_v58  ;;  %4645 = vmatprep.subr.bf16.mxu1 %v8697_v59  ;;  %v8761_v58 = vcombine.high %v1294_v53, %v1298_v55  ;;  %v9613_v59 = vld [vmem:[#allocation10 + $0x34c] ss:$28 sps:$4 sm:$0xff]   ;;  %v1358_v53 = vld [vmem:[#allocation7 + $0xdd8] sm:$0xff] }
 0x31e   :  { %7608 = vmatprep.subr.bf16.mxu0 %v9589_v60  ;;  %v1302_v60 = vld [vmem:[#allocation7 + $0xc18] sm:$0xff] }
 0x31f   :  { %v8768_v16 = vcombine.low %v1302_v60, %v1306_v61  ;;  %v1362_v55 = vld [vmem:[#allocation7 + $0xdf8] sm:$0xff] }
 0x320   :  { %4646 = vmatpush1.bf16.msra.mxu1 %v8696_v1  ;;  %v9611_v1 = vld [vmem:[#allocation10 + $0x348] ss:$28 sps:$4 sm:$0xff]  }
 0x321   :  { %7609 = vmatpush1.bf16.msra.mxu0 %v9587_v3  ;;  %4647 = vmatprep.subr.bf16.mxu1 %v8705_v4  ;;  %v8769_v3 = vcombine.high %v1302_v60, %v1306_v61  ;;  %v9616_v4 = vld [vmem:[#allocation10 + $0x384] ss:$28 sps:$4 sm:$0xff]  }
 0x322   :  { %7610 = vmatprep.subr.bf16.mxu0 %v9592_v13  ;;  %v1310_v13 = vld [vmem:[#allocation7 + $0xc58] sm:$0xff] }
 0x323   :  { %v8776_v19 = vcombine.low %v1310_v13, %v1314_v15 }
 0x324   :  { %4648 = vmatpush1.bf16.msra.mxu1 %v8704_v18  ;;  %v9614_v18 = vld [vmem:[#allocation10 + $0x380] ss:$28 sps:$4 sm:$0xff]  }
 0x325   :  { %7611 = vmatpush1.bf16.msra.mxu0 %v9590_v21  ;;  %4649 = vmatprep.subr.bf16.mxu1 %v8713_v22  ;;  %v8777_v21 = vcombine.high %v1310_v13, %v1314_v15  ;;  %v9619_v22 = vld [vmem:[#allocation10 + $0x3bc] ss:$28 sps:$4 sm:$0xff]   ;;  %v1366_v13 = vld [vmem:[#allocation7 + $0xe18] sm:$0xff] }
 0x326   :  { %7612 = vmatprep.subr.bf16.mxu0 %v9595_v25  ;;  %v1318_v25 = vld [vmem:[#allocation7 + $0xc98] sm:$0xff] }
 0x327   :  { %v8784_v35 = vcombine.low %v1318_v25, %v1322_v26  ;;  %v1370_v15 = vld [vmem:[#allocation7 + $0xe38] sm:$0xff] }
 0x328   :  { %4650 = vmatpush1.bf16.msra.mxu1 %v8712_v28  ;;  %v9617_v28 = vld [vmem:[#allocation10 + $0x3b8] ss:$28 sps:$4 sm:$0xff]  }
 0x329   :  { %7613 = vmatpush1.bf16.msra.mxu0 %v9593_v29  ;;  %4651 = vmatprep.subr.bf16.mxu1 %v8721_v31  ;;  %v8785_v29 = vcombine.high %v1318_v25, %v1322_v26  ;;  %v9622_v31 = vld [vmem:[#allocation10 + $0x3f4] ss:$28 sps:$4 sm:$0xff]   ;;  %v8824_v25 = vcombine.low %v1358_v53, %v1362_v55 }
 0x32a   :  { %7614 = vmatprep.subr.bf16.mxu0 %v9598_v33  ;;  %v1326_v33 = vld [vmem:[#allocation7 + $0xcd8] sm:$0xff] }
 0x32c   :  { %4652 = vmatpush1.bf16.msra.mxu1 %v8720_v39  ;;  %v9620_v39 = vld [vmem:[#allocation10 + $0x3f0] ss:$28 sps:$4 sm:$0xff]  }
 0x32d   :  { %7615 = vmatpush1.bf16.msra.mxu0 %v9596_v24  ;;  %4653 = vmatprep.subr.bf16.mxu1 %v8729_v44  ;;  %v9625_v24 = vld [vmem:[#allocation10 + $0x42c] ss:$28 sps:$4 sm:$0xff]   ;;  %v1334_v44 = vld [vmem:[#allocation7 + $0xd18] sm:$0xff] }
 0x32e   :  { %7616 = vmatprep.subr.bf16.mxu0 %v9601_v36  ;;  %v1338_v36 = vld [vmem:[#allocation7 + $0xd38] sm:$0xff] }
 0x32f   :  { %v8801_v38 = vcombine.high %v1334_v44, %v1338_v36 }
 0x330   :  { %4654 = vmatpush1.bf16.msra.mxu1 %v8728_v17  ;;  %v9628_v17 = vld [vmem:[#allocation10 + $0x464] ss:$28 sps:$4 sm:$0xff]  }
 0x331   :  { %7617 = vmatpush1.bf16.msra.mxu0 %v9599_v27  ;;  %4655 = vmatprep.subr.bf16.mxu1 %v8737_v40  ;;  %v1342_v27 = vld [vmem:[#allocation7 + $0xd58] sm:$0xff] }
 0x332   :  { %7618 = vmatprep.subr.bf16.mxu0 %v9604_v41  ;;  %v1346_v40 = vld [vmem:[#allocation7 + $0xd78] sm:$0xff]  ;;  %v8800_v41 = vcombine.low %v1334_v44, %v1338_v36 }
 0x333   :  { %v8809_v30 = vcombine.high %v1342_v27, %v1346_v40  ;;  %v8808_v48 = vcombine.low %v1342_v27, %v1346_v40  ;;  %v1382_v44 = vld [vmem:[#allocation7 + $0xe98] sm:$0xff] }
 0x334   :  { %4656 = vmatpush1.bf16.msra.mxu1 %v8736_v7  ;;  %v9631_v7 = vld [vmem:[#allocation10 + $0x49c] ss:$28 sps:$4 sm:$0xff]   ;;  %v1386_v36 = vld [vmem:[#allocation7 + $0xeb8] sm:$0xff] }
 0x335   :  { %7619 = vmatpush1.bf16.msra.mxu0 %v9602_v32  ;;  %4657 = vmatprep.subr.bf16.mxu1 %v8745_v43  ;;  %v1350_v32 = vld [vmem:[#allocation7 + $0xd98] sm:$0xff] }
 0x336   :  { %7620 = vmatprep.subr.bf16.mxu0 %v9607_v47  ;;  %v1354_v43 = vld [vmem:[#allocation7 + $0xdb8] sm:$0xff]  ;;  %v1440_v47 = vrot.slane %v10702_v45, %v10617_v8 }
 0x337   :  { %v8816_v60 = vcombine.low %v1350_v32, %v1354_v43  ;;  %v9632_v45 = vld [vmem:[#allocation10 + $0x4d0] ss:$28 sps:$4 sm:$0xff]  }
 0x338   :  { %4658 = vmatpush1.bf16.msra.mxu1 %v8744_v49  ;;  %v9629_v49 = vld [vmem:[#allocation10 + $0x498] ss:$28 sps:$4 sm:$0xff]  }
 0x339   :  { %7621 = vmatpush1.bf16.msra.mxu0 %v9605_v0  ;;  %4659 = vmatprep.subr.bf16.mxu1 %v8753_v51  ;;  %v8817_v0 = vcombine.high %v1350_v32, %v1354_v43  ;;  %v1390_v27 = vld [vmem:[#allocation7 + $0xed8] sm:$0xff] }
 0x33a   :  { %7622 = vmatprep.subr.bf16.mxu0 %v9610_v52  ;;  %v9634_v52 = vld [vmem:[#allocation10 + $0x4d4] ss:$28 sps:$4 sm:$0xff]  }
 0x33b   :  { %v1394_v40 = vld [vmem:[#allocation7 + $0xef8] sm:$0xff] }
 0x33c   :  { %4660 = vmatpush1.bf16.msra.mxu1 %v8752_v56  ;;  %v1398_v32 = vld [vmem:[#allocation7 + $0xf18] sm:$0xff] }
 0x33d   :  { %7623 = vmatpush1.bf16.msra.mxu0 %v9608_v57  ;;  %4661 = vmatprep.subr.bf16.mxu1 %v8761_v58  ;;  %v1402_v43 = vld [vmem:[#allocation7 + $0xf38] sm:$0xff] }
 0x33e   :  { %7624 = vmatprep.subr.bf16.mxu0 %v9613_v59 }
 0x340   :  { %4662 = vmatpush1.bf16.msra.mxu1 %v8760_v62 }
 0x341   :  { %7625 = vmatpush1.bf16.msra.mxu0 %v9611_v1  ;;  %4674 = vmatprep.subr.bf16.mxu1 %v8769_v3  ;;  %v8825_v1 = vcombine.high %v1358_v53, %v1362_v55  ;;  %v9650_v53 = vld [vmem:[#allocation10 + $0x620] ss:$28 sps:$4 sm:$0xff]  }
 0x342   :  { %7637 = vmatprep.subr.bf16.mxu0 %v9616_v4  ;;  %v9637_v4 = vld [vmem:[#allocation10 + $0x50c] ss:$28 sps:$4 sm:$0xff]  }
 0x343   :  { %4664 = vmatmul.mubr.bf16.vlgmr.msra.gmra.mrb[16].mxu1 %v10665_v12  ;;  %v8793_v12 = vcombine.high %v1326_v33, %v1330_v34 }
 0x344   :  { %7627 = vmatmul.mubr.bf16.vlgmr.msra.gmra.mrb[16].mxu0 %v10712_v50  ;;  %4675 = vmatpush1.bf16.msra.mxu1 %v8768_v16 }
 0x345   :  { %4706 = vmatprep.mubr.bf16.mxu1 %v10671_v23  ;;  %7638 = vmatpush1.bf16.msra.mxu0 %v9614_v18  ;;  %v8792_v23 = vcombine.low %v1326_v33, %v1330_v34  ;;  %v1374_v33 = vld [vmem:[#allocation7 + $0xe58] sm:$0xff] }
 0x346   :  { %4676 = vmatprep.subr.bf16.mxu1 %v8777_v21  ;;  %7639 = vmatprep.subr.bf16.mxu0 %v9619_v22  ;;  %v1378_v34 = vld [vmem:[#allocation7 + $0xe78] sm:$0xff] }
 0x348   :  { %4677 = vmatpush1.bf16.msra.mxu1 %v8776_v19  ;;  %v9635_v19 = vld [vmem:[#allocation10 + $0x508] ss:$28 sps:$4 sm:$0xff]  }
 0x349   :  { %7640 = vmatpush1.bf16.msra.mxu0 %v9617_v28  ;;  %4678 = vmatprep.subr.bf16.mxu1 %v8785_v29  ;;  %v8833_v28 = vcombine.high %v1366_v13, %v1370_v15 }
 0x34a   :  { %7641 = vmatprep.subr.bf16.mxu0 %v9622_v31  ;;  %v9640_v31 = vld [vmem:[#allocation10 + $0x544] ss:$28 sps:$4 sm:$0xff]  }
 0x34c   :  { %4679 = vmatpush1.bf16.msra.mxu1 %v8784_v35  ;;  %v8832_v35 = vcombine.low %v1366_v13, %v1370_v15  ;;  %v9661_v15 = vld [vmem:[#allocation10 + $0x6cc] ss:$28 sps:$4 sm:$0xff]  }
 0x34d   :  { %7642 = vmatpush1.bf16.msra.mxu0 %v9620_v39  ;;  %4680 = vmatprep.subr.bf16.mxu1 %v8793_v12  ;;  %v9638_v39 = vld [vmem:[#allocation10 + $0x540] ss:$28 sps:$4 sm:$0xff]   ;;  %v8841_v12 = vcombine.high %v1374_v33, %v1378_v34 }
 0x34e   :  { %7643 = vmatprep.subr.bf16.mxu0 %v9625_v24  ;;  %v9643_v24 = vld [vmem:[#allocation10 + $0x57c] ss:$28 sps:$4 sm:$0xff]  }
 0x350   :  { %4681 = vmatpush1.bf16.msra.mxu1 %v8792_v23  ;;  %v8840_v23 = vcombine.low %v1374_v33, %v1378_v34  ;;  %v9665_v33 = vld [vmem:[#allocation10 + $0x40] ss:$28 sps:$4 sm:$0xff]  }
 0x351   :  { %7644 = vmatpush1.bf16.msra.mxu0 %v9623_v37  ;;  %4682 = vmatprep.subr.bf16.mxu1 %v8801_v38  ;;  %v9641_v37 = vld [vmem:[#allocation10 + $0x578] ss:$28 sps:$4 sm:$0xff]   ;;  %v8849_v38 = vcombine.high %v1382_v44, %v1386_v36 }
 0x352   :  { %7645 = vmatprep.subr.bf16.mxu0 %v9628_v17  ;;  %v9646_v17 = vld [vmem:[#allocation10 + $0x5b4] ss:$28 sps:$4 sm:$0xff]   ;;  %v9670_v34 = vld [vmem:[#allocation10 + $0x7c] ss:$28 sps:$4 sm:$0xff]  }
 0x354   :  { %4683 = vmatpush1.bf16.msra.mxu1 %v8800_v41  ;;  %v8848_v41 = vcombine.low %v1382_v44, %v1386_v36  ;;  %v9698_v44 = vld [vmem:[#allocation10 + $0x770] ss:$28 sps:$4 sm:$0xff]  }
 0x355   :  { %7646 = vmatpush1.bf16.msra.mxu0 %v9626_v42  ;;  %4684 = vmatprep.subr.bf16.mxu1 %v8809_v30  ;;  %v9644_v42 = vld [vmem:[#allocation10 + $0x5b0] ss:$28 sps:$4 sm:$0xff]   ;;  %v8857_v30 = vcombine.high %v1390_v27, %v1394_v40 }
 0x356   :  { %v4364_v51 = vpop.f32.mrb[12].mxu1  ;;  %7647 = vmatprep.subr.bf16.mxu0 %v9631_v7  ;;  %v9649_v7 = vld [vmem:[#allocation10 + $0x5ec] ss:$28 sps:$4 sm:$0xff]  }
 0x357   :  { %v9434_v56 = vadd.f32 %v4364_v51, %v1440_v47  ;;  %v4366_v57 = vpop.f32.mrb[13].mxu1  ;;  %v1410_v51 = vld [vmem:[#allocation7 + $0xf78] sm:$0xff] }
 0x358   :  { %v9435_v58 = vadd.f32 %v4366_v57, %v1444_v46  ;;  %v4368_v59 = vpop.f32.mrb[14].mxu1  ;;  %4685 = vmatpush1.bf16.msra.mxu1 %v8808_v48  ;;  %v8865_v48 = vcombine.high %v1398_v32, %v1402_v43  ;;  %v1414_v57 = vld [vmem:[#allocation7 + $0xf98] sm:$0xff] }
 0x359   :  { %v9436_v61 = vadd.f32 %v4368_v59, %v1440_v47  ;;  %7648 = vmatpush1.bf16.msra.mxu0 %v9629_v49  ;;  %v4370_v62 = vpop.f32.mrb[15].mxu1  ;;  %4686 = vmatprep.subr.bf16.mxu1 %v8817_v0  ;;  %v4719_v16 = vmax.f32 %v9434_v56, 0.0  ;;  %v8856_v47 = vcombine.low %v1390_v27, %v1394_v40  ;;  %v9652_v49 = vld [vmem:[#allocation10 + $0x624] ss:$28 sps:$4 sm:$0xff]   ;;  %v1406_v0 = vld [vmem:[#allocation7 + $0xf58] sm:$0xff] }
 0x35a   :  { %v9437_v3 = vadd.f32 %v4370_v62, %v1444_v46  ;;  %7649 = vmatprep.subr.bf16.mxu0 %v9634_v52  ;;  %v4720_v21 = vmax.f32 %v9435_v58, 0.0  ;;  %v9647_v46 = vld [vmem:[#allocation10 + $0x5e8] ss:$28 sps:$4 sm:$0xff]   ;;  %v8864_v52 = vcombine.low %v1398_v32, %v1402_v43  ;;  %v8873_v55 = vcombine.high %v1406_v0, %v1410_v51  ;;  %v9655_v56 = vld [vmem:[#allocation10 + $0x65c] ss:$28 sps:$4 sm:$0xff]   ;;  %v1418_v58 = vld [vmem:[#allocation7 + $0xfb8] sm:$0xff] }
 0x35b   :  { %v4727_v18 = vmax.f32 %v9436_v61, 0.0  ;;  %v8872_v59 = vcombine.low %v1406_v0, %v1410_v51  ;;  %v8881_v61 = vcombine.high %v1414_v57, %v1418_v58  ;;  %v9658_v62 = vld [vmem:[#allocation10 + $0x694] ss:$28 sps:$4 sm:$0xff]   ;;  %v9679_v27 = vld [vmem:[#allocation10 + $0x124] ss:$28 sps:$4 sm:$0xff]  }
 0x35c   :  { %v4728_v22 = vmax.f32 %v9437_v3, 0.0  ;;  %4687 = vmatpush1.bf16.msra.mxu1 %v8816_v60  ;;  %v9653_v60 = vld [vmem:[#allocation10 + $0x658] ss:$28 sps:$4 sm:$0xff]   ;;  %v8880_v3 = vcombine.low %v1414_v57, %v1418_v58  ;;  %v9671_v36 = vld [vmem:[#allocation10 + $0xb0] ss:$28 sps:$4 sm:$0xff]  }
 0x35d   :  { %v10727_v26 = vpack.c.bf16 %v4727_v18, %v4719_v16  ;;  %7650 = vmatpush1.bf16.msra.mxu0 %v9632_v45  ;;  %4688 = vmatprep.subr.bf16.mxu1 %v8825_v1  ;;  %v1422_v45 = vld [vmem:[#allocation7 + $0xfd8] sm:$0xff]  ;;  %v9659_v18 = vld [vmem:[#allocation10 + $0x6c8] ss:$28 sps:$4 sm:$0xff]   ;;  %v9710_v40 = vld [vmem:[#allocation10 + $0x7e0] ss:$28 sps:$4 sm:$0xff]  }
 0x35e   :  { %v10729_v29 = vpack.c.bf16 %v4728_v22, %v4720_v21  ;;  %7651 = vmatprep.subr.bf16.mxu0 %v9637_v4  ;;  %v1426_v1 = vld [vmem:[#allocation7 + $0xff8] sm:$0xff]  ;;  %v9664_v21 = vld [vmem:[#allocation10 + $0xc] ss:$28 sps:$4 sm:$0xff]   ;;  %v9688_v22 = vld [vmem:[#allocation10 + $0x704] ss:$28 sps:$4 sm:$0xff]  }
 0x35f   :  { %v9656_v4 = vld [vmem:[#allocation10 + $0x690] ss:$28 sps:$4 sm:$0xff]   ;;  %v8889_v13 = vcombine.high %v1422_v45, %v1426_v1  ;;  %v8888_v16 = vcombine.low %v1422_v45, %v1426_v1  ;;  %v9680_v43 = vld [vmem:[#allocation10 + $0x158] ss:$28 sps:$4 sm:$0xff]   ;;  %v9728_v51 = vld [vmem:[#allocation10 + $0x888] ss:$28 sps:$4 sm:$0xff]  }
 0x360   :  { %4689 = vmatpush1.bf16.msra.mxu1 %v8824_v25  ;;  %7669 = vmatprep.mubr.bf16.mxu0 %v10729_v29  ;;  %v9662_v25 = vld [vmem:[#allocation10 + $0x8] ss:$28 sps:$4 sm:$0xff]   ;;  %v9724_v32 = vld [vmem:[#allocation10 + $0x854] ss:$28 sps:$4 sm:$0xff]   ;;  %v9742_v57 = vld [vmem:[#allocation10 + $0x8fc] ss:$28 sps:$4 sm:$0xff]  }
 0x361   :  { %7652 = vmatpush1.bf16.msra.mxu0 %v9635_v19  ;;  %4690 = vmatprep.subr.bf16.mxu1 %v8833_v28  ;;  %v9667_v19 = vld [vmem:[#allocation10 + $0x44] ss:$28 sps:$4 sm:$0xff]   ;;  %v9691_v0 = vld [vmem:[#allocation10 + $0x1cc] ss:$28 sps:$4 sm:$0xff]   ;;  %v9709_v45 = vld [vmem:[#allocation10 + $0x274] ss:$28 sps:$4 sm:$0xff]  }
 0x362   :  { %7653 = vmatprep.subr.bf16.mxu0 %v9640_v31  ;;  %v9686_v28 = vld [vmem:[#allocation10 + $0x700] ss:$28 sps:$4 sm:$0xff]   ;;  %v9746_v1 = vld [vmem:[#allocation10 + $0x930] ss:$28 sps:$4 sm:$0xff]  }
 0x363   :  { %v9694_v31 = vld [vmem:[#allocation10 + $0x73c] ss:$28 sps:$4 sm:$0xff]  }
 0x364   :  { %4691 = vmatpush1.bf16.msra.mxu1 %v8832_v35  ;;  %v9692_v35 = vld [vmem:[#allocation10 + $0x738] ss:$28 sps:$4 sm:$0xff]   ;;  %v9695_v58 = vld [vmem:[#allocation10 + $0x200] ss:$28 sps:$4 sm:$0xff]  }
 0x365   :  { %7654 = vmatpush1.bf16.msra.mxu0 %v9638_v39  ;;  %4692 = vmatprep.subr.bf16.mxu1 %v8841_v12  ;;  %v9700_v39 = vld [vmem:[#allocation10 + $0x774] ss:$28 sps:$4 sm:$0xff]  }
 0x366   :  { %7655 = vmatprep.subr.bf16.mxu0 %v9643_v24  ;;  %v9668_v12 = vld [vmem:[#allocation10 + $0x78] ss:$28 sps:$4 sm:$0xff]  }
 0x367   :  { %v9673_v24 = vld [vmem:[#allocation10 + $0xb4] ss:$28 sps:$4 sm:$0xff]  }
 0x368   :  { %4693 = vmatpush1.bf16.msra.mxu1 %v8840_v23  ;;  %v9676_v23 = vld [vmem:[#allocation10 + $0xec] ss:$28 sps:$4 sm:$0xff]  }
 0x369   :  { %7656 = vmatpush1.bf16.msra.mxu0 %v9641_v37  ;;  %4694 = vmatprep.subr.bf16.mxu1 %v8849_v38  ;;  %v9704_v37 = vld [vmem:[#allocation10 + $0x7a8] ss:$28 sps:$4 sm:$0xff]  }
 0x36a   :  { %7657 = vmatprep.subr.bf16.mxu0 %v9646_v17  ;;  %v9712_v38 = vld [vmem:[#allocation10 + $0x7e4] ss:$28 sps:$4 sm:$0xff]  }
 0x36b   :  { %v9674_v17 = vld [vmem:[#allocation10 + $0xe8] ss:$28 sps:$4 sm:$0xff]  }
 0x36c   :  { %4695 = vmatpush1.bf16.msra.mxu1 %v8848_v41  ;;  %v9718_v41 = vld [vmem:[#allocation10 + $0x81c] ss:$28 sps:$4 sm:$0xff]  }
 0x36d   :  { %7658 = vmatpush1.bf16.msra.mxu0 %v9644_v42  ;;  %4696 = vmatprep.subr.bf16.mxu1 %v8857_v30  ;;  %v9677_v42 = vld [vmem:[#allocation10 + $0x120] ss:$28 sps:$4 sm:$0xff]  }
 0x36e   :  { %7659 = vmatprep.subr.bf16.mxu0 %v9649_v7  ;;  %v9682_v30 = vld [vmem:[#allocation10 + $0x15c] ss:$28 sps:$4 sm:$0xff]  }
 0x36f   :  { %v9716_v7 = vld [vmem:[#allocation10 + $0x818] ss:$28 sps:$4 sm:$0xff]  }
 0x370   :  { %4697 = vmatpush1.bf16.msra.mxu1 %v8856_v47  ;;  %v9685_v47 = vld [vmem:[#allocation10 + $0x194] ss:$28 sps:$4 sm:$0xff]  }
 0x371   :  { %7660 = vmatpush1.bf16.msra.mxu0 %v9647_v46  ;;  %4698 = vmatprep.subr.bf16.mxu1 %v8865_v48  ;;  %v9722_v46 = vld [vmem:[#allocation10 + $0x850] ss:$28 sps:$4 sm:$0xff]  }
 0x372   :  { %7661 = vmatprep.subr.bf16.mxu0 %v9652_v49  ;;  %v9730_v48 = vld [vmem:[#allocation10 + $0x88c] ss:$28 sps:$4 sm:$0xff]  }
 0x373   :  { %v9683_v49 = vld [vmem:[#allocation10 + $0x190] ss:$28 sps:$4 sm:$0xff]  }
 0x374   :  { %4699 = vmatpush1.bf16.msra.mxu1 %v8864_v52  ;;  %v9736_v52 = vld [vmem:[#allocation10 + $0x8c4] ss:$28 sps:$4 sm:$0xff]  }
 0x375   :  { %7662 = vmatpush1.bf16.msra.mxu0 %v9650_v53  ;;  %4700 = vmatprep.subr.bf16.mxu1 %v8873_v55  ;;  %v9689_v53 = vld [vmem:[#allocation10 + $0x1c8] ss:$28 sps:$4 sm:$0xff]  }
 0x376   :  { %7663 = vmatprep.subr.bf16.mxu0 %v9655_v56  ;;  %v9697_v55 = vld [vmem:[#allocation10 + $0x204] ss:$28 sps:$4 sm:$0xff]  }
 0x377   :  { %v9734_v56 = vld [vmem:[#allocation10 + $0x8c0] ss:$28 sps:$4 sm:$0xff]  }
 0x378   :  { %4701 = vmatpush1.bf16.msra.mxu1 %v8872_v59  ;;  %v9703_v59 = vld [vmem:[#allocation10 + $0x23c] ss:$28 sps:$4 sm:$0xff]  }
 0x379   :  { %7664 = vmatpush1.bf16.msra.mxu0 %v9653_v60  ;;  %4702 = vmatprep.subr.bf16.mxu1 %v8881_v61  ;;  %v9740_v60 = vld [vmem:[#allocation10 + $0x8f8] ss:$28 sps:$4 sm:$0xff]  }
 0x37a   :  { %7665 = vmatprep.subr.bf16.mxu0 %v9658_v62  ;;  %v9748_v61 = vld [vmem:[#allocation10 + $0x934] ss:$28 sps:$4 sm:$0xff]  }
 0x37b   :  { %v9701_v62 = vld [vmem:[#allocation10 + $0x238] ss:$28 sps:$4 sm:$0xff]  }
 0x37c   :  { %4703 = vmatpush1.bf16.msra.mxu1 %v8880_v3  ;;  %v9754_v3 = vld [vmem:[#allocation10 + $0x96c] ss:$28 sps:$4 sm:$0xff]  }
 0x37d   :  { %7666 = vmatpush1.bf16.msra.mxu0 %v9656_v4  ;;  %4704 = vmatprep.subr.bf16.mxu1 %v8889_v13  ;;  %v9707_v4 = vld [vmem:[#allocation10 + $0x270] ss:$28 sps:$4 sm:$0xff]  }
 0x37e   :  { %7667 = vmatprep.subr.bf16.mxu0 %v9661_v15  ;;  %v9715_v13 = vld [vmem:[#allocation10 + $0x2ac] ss:$28 sps:$4 sm:$0xff]  }
 0x37f   :  { %v9752_v15 = vld [vmem:[#allocation10 + $0x968] ss:$28 sps:$4 sm:$0xff]  }
 0x380   :  { %4705 = vmatpush1.bf16.msra.mxu1 %v8888_v16  ;;  %v9760_v16 = vld [vmem:[#allocation10 + $0x9a4] ss:$28 sps:$4 sm:$0xff]  }
 0x381   :  { %7668 = vmatpush1.bf16.msra.mxu0 %v9659_v18  ;;  %7766 = vmatprep.subr.bf16.mxu1 %v9664_v21  ;;  %v9713_v18 = vld [vmem:[#allocation10 + $0x2a8] ss:$28 sps:$4 sm:$0xff]  }
 0x382   :  { %7680 = vmatprep.subr.bf16.mxu0 %v9688_v22  ;;  %v9721_v21 = vld [vmem:[#allocation10 + $0x2e4] ss:$28 sps:$4 sm:$0xff]  }
 0x383   :  { %4707 = vmatmul.mubr.bf16.vlgmr.msra.gmra.mrb[16].mxu1 %v10669_v20  ;;  %v9706_v20 = vld [vmem:[#allocation10 + $0x7ac] ss:$28 sps:$4 sm:$0xff]   ;;  %v9758_v22 = vld [vmem:[#allocation10 + $0x9a0] ss:$28 sps:$4 sm:$0xff]  }
 0x384   :  { %7670 = vmatmul.mubr.bf16.vlgmr.msra.gmra.mrb[16].mxu0 %v10727_v26  ;;  %7767 = vmatpush1.bf16.msra.mxu1 %v9662_v25  ;;  %v9766_v25 = vld [vmem:[#allocation10 + $0x9dc] ss:$28 sps:$4 sm:$0xff]  }
 0x385   :  { %7798 = vmatprep.mubr.bf16.mxu1 %v10714_v54  ;;  %7768 = vmatprep.subr.bf16.mxu1 %v9667_v19  ;;  %v9719_v19 = vld [vmem:[#allocation10 + $0x2e0] ss:$28 sps:$4 sm:$0xff]  }
 0x386   :  { %7681 = vmatpush1.bf16.msra.mxu0 %v9686_v28  ;;  %v9727_v28 = vld [vmem:[#allocation10 + $0x31c] ss:$28 sps:$4 sm:$0xff]  }
 0x387   :  { %7682 = vmatprep.subr.bf16.mxu0 %v9694_v31  ;;  %v9764_v31 = vld [vmem:[#allocation10 + $0x9d8] ss:$28 sps:$4 sm:$0xff]  }
 0x388   :  { %7769 = vmatpush1.bf16.msra.mxu1 %v9665_v33  ;;  %v9772_v33 = vld [vmem:[#allocation10 + $0xa14] ss:$28 sps:$4 sm:$0xff]  }
 0x389   :  { %7770 = vmatprep.subr.bf16.mxu1 %v9670_v34  ;;  %v9725_v34 = vld [vmem:[#allocation10 + $0x318] ss:$28 sps:$4 sm:$0xff]  }
 0x38a   :  { %7683 = vmatpush1.bf16.msra.mxu0 %v9692_v35  ;;  %v9733_v35 = vld [vmem:[#allocation10 + $0x354] ss:$28 sps:$4 sm:$0xff]  }
 0x38b   :  { %7684 = vmatprep.subr.bf16.mxu0 %v9700_v39  ;;  %v9770_v39 = vld [vmem:[#allocation10 + $0xa10] ss:$28 sps:$4 sm:$0xff]  }
 0x38c   :  { %7771 = vmatpush1.bf16.msra.mxu1 %v9668_v12  ;;  %v9778_v12 = vld [vmem:[#allocation10 + $0xa4c] ss:$28 sps:$4 sm:$0xff]  }
 0x38d   :  { %7772 = vmatprep.subr.bf16.mxu1 %v9673_v24  ;;  %v9731_v24 = vld [vmem:[#allocation10 + $0x350] ss:$28 sps:$4 sm:$0xff]  }
 0x38e   :  { %7685 = vmatpush1.bf16.msra.mxu0 %v9698_v44  ;;  %v9739_v44 = vld [vmem:[#allocation10 + $0x38c] ss:$28 sps:$4 sm:$0xff]  }
 0x38f   :  { %7686 = vmatprep.subr.bf16.mxu0 %v9706_v20  ;;  %v9776_v20 = vld [vmem:[#allocation10 + $0xa48] ss:$28 sps:$4 sm:$0xff]  }
 0x390   :  { %7773 = vmatpush1.bf16.msra.mxu1 %v9671_v36  ;;  %v9832_v36 = vld [vmem:[#allocation10 + $0xa84] ss:$28 sps:$4 sm:$0xff]  }
 0x391   :  { %7774 = vmatprep.subr.bf16.mxu1 %v9676_v23  ;;  %v9737_v23 = vld [vmem:[#allocation10 + $0x388] ss:$28 sps:$4 sm:$0xff]  }
 0x392   :  { %7687 = vmatpush1.bf16.msra.mxu0 %v9704_v37  ;;  %v9745_v37 = vld [vmem:[#allocation10 + $0x3c4] ss:$28 sps:$4 sm:$0xff]  }
 0x393   :  { %7688 = vmatprep.subr.bf16.mxu0 %v9712_v38  ;;  %v9743_v38 = vld [vmem:[#allocation10 + $0x3c0] ss:$28 sps:$4 sm:$0xff]  }
 0x394   :  { %7775 = vmatpush1.bf16.msra.mxu1 %v9674_v17  ;;  %v9751_v17 = vld [vmem:[#allocation10 + $0x3fc] ss:$28 sps:$4 sm:$0xff]  }
 0x395   :  { %7776 = vmatprep.subr.bf16.mxu1 %v9679_v27  ;;  %v9749_v27 = vld [vmem:[#allocation10 + $0x3f8] ss:$28 sps:$4 sm:$0xff]  }
 0x396   :  { %7689 = vmatpush1.bf16.msra.mxu0 %v9710_v40  ;;  %v9757_v40 = vld [vmem:[#allocation10 + $0x434] ss:$28 sps:$4 sm:$0xff]  }
 0x397   :  { %7690 = vmatprep.subr.bf16.mxu0 %v9718_v41  ;;  %v9755_v41 = vld [vmem:[#allocation10 + $0x430] ss:$28 sps:$4 sm:$0xff]  }
 0x398   :  { %7777 = vmatpush1.bf16.msra.mxu1 %v9677_v42  ;;  %v9763_v42 = vld [vmem:[#allocation10 + $0x46c] ss:$28 sps:$4 sm:$0xff]  }
 0x399   :  { %7778 = vmatprep.subr.bf16.mxu1 %v9682_v30  ;;  %v9761_v30 = vld [vmem:[#allocation10 + $0x468] ss:$28 sps:$4 sm:$0xff]  }
 0x39a   :  { %7691 = vmatpush1.bf16.msra.mxu0 %v9716_v7  ;;  %v9769_v7 = vld [vmem:[#allocation10 + $0x4a4] ss:$28 sps:$4 sm:$0xff]  }
 0x39b   :  { %7692 = vmatprep.subr.bf16.mxu0 %v9724_v32  ;;  %v10737_v32 = vld [vmem:[#allocation9] sm:$0xff] }
 0x39c   :  { %7779 = vmatpush1.bf16.msra.mxu1 %v9680_v43  ;;  %v1448_v43 = vrot.slane %v10737_v32, %v10647_v63 }
 0x39d   :  { %7780 = vmatprep.subr.bf16.mxu1 %v9685_v47  ;;  %v9767_v47 = vld [vmem:[#allocation10 + $0x4a0] ss:$28 sps:$4 sm:$0xff]  }
 0x39e   :  { %7693 = vmatpush1.bf16.msra.mxu0 %v9722_v46  ;;  %v1452_v46 = vrot.slane %v10737_v32, %v10650_v2 }
 0x39f   :  { %7694 = vmatprep.subr.bf16.mxu0 %v9730_v48  ;;  %v9775_v48 = vld [vmem:[#allocation10 + $0x4dc] ss:$28 sps:$4 sm:$0xff]  }
 0x3a0   :  { %7781 = vmatpush1.bf16.msra.mxu1 %v9683_v49 }
 0x3a1   :  { %7782 = vmatprep.subr.bf16.mxu1 %v9691_v0 }
 0x3a2   :  { %7695 = vmatpush1.bf16.msra.mxu0 %v9728_v51 }
 0x3a3   :  { %7696 = vmatprep.subr.bf16.mxu0 %v9736_v52  ;;  %v9773_v52 = vld [vmem:[#allocation10 + $0x4d8] ss:$28 sps:$4 sm:$0xff]  }
 0x3a4   :  { %7783 = vmatpush1.bf16.msra.mxu1 %v9689_v53 }
 0x3a5   :  { %7784 = vmatprep.subr.bf16.mxu1 %v9697_v55 }
 0x3a6   :  { %7697 = vmatpush1.bf16.msra.mxu0 %v9734_v56  ;;  %v9781_v56 = vld [vmem:[#allocation10 + $0x514] ss:$28 sps:$4 sm:$0xff]  }
 0x3a7   :  { %7698 = vmatprep.subr.bf16.mxu0 %v9742_v57 }
 0x3a8   :  { %7785 = vmatpush1.bf16.msra.mxu1 %v9695_v58 }
 0x3a9   :  { %7786 = vmatprep.subr.bf16.mxu1 %v9703_v59 }
 0x3aa   :  { %7699 = vmatpush1.bf16.msra.mxu0 %v9740_v60 }
 0x3ab   :  { %7700 = vmatprep.subr.bf16.mxu0 %v9748_v61 }
 0x3ac   :  { %7787 = vmatpush1.bf16.msra.mxu1 %v9701_v62  ;;  %v9779_v62 = vld [vmem:[#allocation10 + $0x510] ss:$28 sps:$4 sm:$0xff]  }
 0x3ad   :  { %7788 = vmatprep.subr.bf16.mxu1 %v9709_v45 }
 0x3ae   :  { %7701 = vmatpush1.bf16.msra.mxu0 %v9746_v1 }
 0x3af   :  { %7702 = vmatprep.subr.bf16.mxu0 %v9754_v3  ;;  %v9784_v3 = vld [vmem:[#allocation10 + $0x54c] ss:$28 sps:$4 sm:$0xff]  }
 0x3b0   :  { %7789 = vmatpush1.bf16.msra.mxu1 %v9707_v4 }
 0x3b1   :  { %7790 = vmatprep.subr.bf16.mxu1 %v9715_v13 }
 0x3b2   :  { %7703 = vmatpush1.bf16.msra.mxu0 %v9752_v15  ;;  %v9830_v15 = vld [vmem:[#allocation10 + $0xa80] ss:$28 sps:$4 sm:$0xff]  }
 0x3b3   :  { %7704 = vmatprep.subr.bf16.mxu0 %v9760_v16  ;;  %v9782_v16 = vld [vmem:[#allocation10 + $0x548] ss:$28 sps:$4 sm:$0xff]  }
 0x3b4   :  { %7791 = vmatpush1.bf16.msra.mxu1 %v9713_v18  ;;  %v9838_v18 = vld [vmem:[#allocation10 + $0xabc] ss:$28 sps:$4 sm:$0xff]  }
 0x3b5   :  { %7792 = vmatprep.subr.bf16.mxu1 %v9721_v21  ;;  %v9787_v21 = vld [vmem:[#allocation10 + $0x584] ss:$28 sps:$4 sm:$0xff]  }
 0x3b6   :  { %7705 = vmatpush1.bf16.msra.mxu0 %v9758_v22  ;;  %v9836_v22 = vld [vmem:[#allocation10 + $0xab8] ss:$28 sps:$4 sm:$0xff]  }
 0x3b7   :  { %7706 = vmatprep.subr.bf16.mxu0 %v9766_v25  ;;  %v9785_v25 = vld [vmem:[#allocation10 + $0x580] ss:$28 sps:$4 sm:$0xff]  }
 0x3b8   :  { %7793 = vmatpush1.bf16.msra.mxu1 %v9719_v19  ;;  %v9844_v19 = vld [vmem:[#allocation10 + $0xaf4] ss:$28 sps:$4 sm:$0xff]  }
 0x3b9   :  { %7794 = vmatprep.subr.bf16.mxu1 %v9727_v28  ;;  %v9790_v28 = vld [vmem:[#allocation10 + $0x5bc] ss:$28 sps:$4 sm:$0xff]  }
 0x3ba   :  { %7707 = vmatpush1.bf16.msra.mxu0 %v9764_v31  ;;  %v9842_v31 = vld [vmem:[#allocation10 + $0xaf0] ss:$28 sps:$4 sm:$0xff]  }
 0x3bb   :  { %7708 = vmatprep.subr.bf16.mxu0 %v9772_v33  ;;  %v9788_v33 = vld [vmem:[#allocation10 + $0x5b8] ss:$28 sps:$4 sm:$0xff]  }
 0x3bc   :  { %7795 = vmatpush1.bf16.msra.mxu1 %v9725_v34  ;;  %v9850_v34 = vld [vmem:[#allocation10 + $0xb2c] ss:$28 sps:$4 sm:$0xff]  }
 0x3bd   :  { %7796 = vmatprep.subr.bf16.mxu1 %v9733_v35  ;;  %v9793_v35 = vld [vmem:[#allocation10 + $0x5f4] ss:$28 sps:$4 sm:$0xff]  }
 0x3be   :  { %7709 = vmatpush1.bf16.msra.mxu0 %v9770_v39  ;;  %v9848_v39 = vld [vmem:[#allocation10 + $0xb28] ss:$28 sps:$4 sm:$0xff]  }
 0x3bf   :  { %7710 = vmatprep.subr.bf16.mxu0 %v9778_v12  ;;  %v9791_v12 = vld [vmem:[#allocation10 + $0x5f0] ss:$28 sps:$4 sm:$0xff]  }
 0x3c0   :  { %7797 = vmatpush1.bf16.msra.mxu1 %v9731_v24  ;;  %v9856_v24 = vld [vmem:[#allocation10 + $0xb64] ss:$28 sps:$4 sm:$0xff]  }
 0x3c1   :  { %7809 = vmatprep.subr.bf16.mxu1 %v9739_v44  ;;  %v9796_v44 = vld [vmem:[#allocation10 + $0x62c] ss:$28 sps:$4 sm:$0xff]  }
 0x3c2   :  { %7711 = vmatpush1.bf16.msra.mxu0 %v9776_v20  ;;  %v9854_v20 = vld [vmem:[#allocation10 + $0xb60] ss:$28 sps:$4 sm:$0xff]  }
 0x3c3   :  { %7799 = vmatmul.mubr.bf16.vlgmr.msra.gmra.mrb[20].mxu1 %v10712_v50  ;;  %7723 = vmatprep.subr.bf16.mxu0 %v9832_v36  ;;  %v9794_v36 = vld [vmem:[#allocation10 + $0x628] ss:$28 sps:$4 sm:$0xff]  }
 0x3c4   :  { %7810 = vmatpush1.bf16.msra.mxu1 %v9737_v23  ;;  %7841 = vmatprep.mubr.bf16.mxu1 %v10729_v29  ;;  %v9862_v23 = vld [vmem:[#allocation10 + $0xb9c] ss:$28 sps:$4 sm:$0xff]  }
 0x3c5   :  { %7811 = vmatprep.subr.bf16.mxu1 %v9745_v37  ;;  %v9799_v37 = vld [vmem:[#allocation10 + $0x664] ss:$28 sps:$4 sm:$0xff]  }
 0x3c8   :  { %7812 = vmatpush1.bf16.msra.mxu1 %v9743_v38  ;;  %v9860_v38 = vld [vmem:[#allocation10 + $0xb98] ss:$28 sps:$4 sm:$0xff]  }
 0x3c9   :  { %7813 = vmatprep.subr.bf16.mxu1 %v9751_v17  ;;  %v9797_v17 = vld [vmem:[#allocation10 + $0x660] ss:$28 sps:$4 sm:$0xff]  }
 0x3cc   :  { %7814 = vmatpush1.bf16.msra.mxu1 %v9749_v27  ;;  %v9868_v27 = vld [vmem:[#allocation10 + $0xbd4] ss:$28 sps:$4 sm:$0xff]  }
 0x3cd   :  { %7815 = vmatprep.subr.bf16.mxu1 %v9757_v40  ;;  %v9802_v40 = vld [vmem:[#allocation10 + $0x69c] ss:$28 sps:$4 sm:$0xff]  }
 0x3d0   :  { %7816 = vmatpush1.bf16.msra.mxu1 %v9755_v41  ;;  %v9866_v41 = vld [vmem:[#allocation10 + $0xbd0] ss:$28 sps:$4 sm:$0xff]  }
 0x3d1   :  { %7817 = vmatprep.subr.bf16.mxu1 %v9763_v42  ;;  %v9800_v42 = vld [vmem:[#allocation10 + $0x698] ss:$28 sps:$4 sm:$0xff]  }
 0x3d4   :  { %7818 = vmatpush1.bf16.msra.mxu1 %v9761_v30  ;;  %v9874_v30 = vld [vmem:[#allocation10 + $0xc0c] ss:$28 sps:$4 sm:$0xff]  }
 0x3d5   :  { %7819 = vmatprep.subr.bf16.mxu1 %v9769_v7  ;;  %v9805_v7 = vld [vmem:[#allocation10 + $0x6d4] ss:$28 sps:$4 sm:$0xff]  }
 0x3d7   :  { %v4536_v49 = vpop.f32.mrb[12].mxu0 }
 0x3d8   :  { %v9438_v0 = vadd.f32 %v4536_v49, %v1448_v43  ;;  %v4538_v51 = vpop.f32.mrb[13].mxu0  ;;  %7820 = vmatpush1.bf16.msra.mxu1 %v9767_v47  ;;  %v9803_v47 = vld [vmem:[#allocation10 + $0x6d0] ss:$28 sps:$4 sm:$0xff]   ;;  %v9878_v49 = vld [vmem:[#allocation10 + $0xc40] ss:$28 sps:$4 sm:$0xff]  }
 0x3d9   :  { %v9439_v53 = vadd.f32 %v4538_v51, %v1452_v46  ;;  %v4540_v55 = vpop.f32.mrb[14].mxu0  ;;  %7821 = vmatprep.subr.bf16.mxu1 %v9775_v48  ;;  %v9808_v48 = vld [vmem:[#allocation10 + $0x70c] ss:$28 sps:$4 sm:$0xff]   ;;  %v9811_v51 = vld [vmem:[#allocation10 + $0x744] ss:$28 sps:$4 sm:$0xff]  }
 0x3da   :  { %v9440_v57 = vadd.f32 %v4540_v55, %v1448_v43  ;;  %v4542_v58 = vpop.f32.mrb[15].mxu0  ;;  %v4721_v60 = vmax.f32 %v9438_v0, 0.0  ;;  %v9872_v43 = vld [vmem:[#allocation10 + $0xc08] ss:$28 sps:$4 sm:$0xff]   ;;  %v9809_v55 = vld [vmem:[#allocation10 + $0x740] ss:$28 sps:$4 sm:$0xff]  }
 0x3db   :  { %v9441_v59 = vadd.f32 %v4542_v58, %v1452_v46  ;;  %v4722_v45 = vmax.f32 %v9439_v53, 0.0  ;;  %v9880_v46 = vld [vmem:[#allocation10 + $0xc44] ss:$28 sps:$4 sm:$0xff]   ;;  %v9884_v53 = vld [vmem:[#allocation10 + $0xc78] ss:$28 sps:$4 sm:$0xff]  }
 0x3dc   :  { %v4729_v61 = vmax.f32 %v9440_v57, 0.0  ;;  %7822 = vmatpush1.bf16.msra.mxu1 %v9773_v52  ;;  %v9806_v0 = vld [vmem:[#allocation10 + $0x708] ss:$28 sps:$4 sm:$0xff]   ;;  %v9886_v52 = vld [vmem:[#allocation10 + $0xc7c] ss:$28 sps:$4 sm:$0xff]  }
 0x3dd   :  { %v4730_v1 = vmax.f32 %v9441_v59, 0.0  ;;  %7823 = vmatprep.subr.bf16.mxu1 %v9781_v56  ;;  %v9892_v56 = vld [vmem:[#allocation10 + $0xcb4] ss:$28 sps:$4 sm:$0xff]   ;;  %v9814_v57 = vld [vmem:[#allocation10 + $0x77c] ss:$28 sps:$4 sm:$0xff]  }
 0x3de   :  { %v10743_v4 = vpack.c.bf16 %v4729_v61, %v4721_v60  ;;  %v9890_v58 = vld [vmem:[#allocation10 + $0xcb0] ss:$28 sps:$4 sm:$0xff]   ;;  %v9812_v59 = vld [vmem:[#allocation10 + $0x778] ss:$28 sps:$4 sm:$0xff]  }
 0x3df   :  { %v10745_v13 = vpack.c.bf16 %v4730_v1, %v4722_v45  ;;  %v9898_v60 = vld [vmem:[#allocation10 + $0xcec] ss:$28 sps:$4 sm:$0xff]   ;;  %v9817_v61 = vld [vmem:[#allocation10 + $0x7b4] ss:$28 sps:$4 sm:$0xff]   ;;  %v9904_v1 = vld [vmem:[#allocation10 + $0xd24] ss:$28 sps:$4 sm:$0xff]  }
 0x3e0   :  { %7824 = vmatpush1.bf16.msra.mxu1 %v9779_v62  ;;  %v9896_v62 = vld [vmem:[#allocation10 + $0xce8] ss:$28 sps:$4 sm:$0xff]   ;;  %v9815_v45 = vld [vmem:[#allocation10 + $0x7b0] ss:$28 sps:$4 sm:$0xff]  }
 0x3e1   :  { %7712 = vmatprep.mubr.bf16.mxu0 %v10745_v13  ;;  %7825 = vmatprep.subr.bf16.mxu1 %v9784_v3  ;;  %v9820_v3 = vld [vmem:[#allocation10 + $0x7ec] ss:$28 sps:$4 sm:$0xff]  }
 0x3e2   :  { %7713 = vmatmul.mubr.bf16.vlgmr.msra.gmra.mrb[16].mxu0 %v10743_v4 }
 0x3e3   :  { %7724 = vmatpush1.bf16.msra.mxu0 %v9830_v15  ;;  %v9902_v15 = vld [vmem:[#allocation10 + $0xd20] ss:$28 sps:$4 sm:$0xff]  }
 0x3e4   :  { %7826 = vmatpush1.bf16.msra.mxu1 %v9782_v16  ;;  %7725 = vmatprep.subr.bf16.mxu0 %v9838_v18  ;;  %v9818_v16 = vld [vmem:[#allocation10 + $0x7e8] ss:$28 sps:$4 sm:$0xff]   ;;  %v9910_v18 = vld [vmem:[#allocation10 + $0xd5c] ss:$28 sps:$4 sm:$0xff]  }
 0x3e5   :  { %7827 = vmatprep.subr.bf16.mxu1 %v9787_v21  ;;  %v9823_v21 = vld [vmem:[#allocation10 + $0x824] ss:$28 sps:$4 sm:$0xff]  }
 0x3e7   :  { %7726 = vmatpush1.bf16.msra.mxu0 %v9836_v22  ;;  %v9908_v22 = vld [vmem:[#allocation10 + $0xd58] ss:$28 sps:$4 sm:$0xff]  }
 0x3e8   :  { %7828 = vmatpush1.bf16.msra.mxu1 %v9785_v25  ;;  %7727 = vmatprep.subr.bf16.mxu0 %v9844_v19  ;;  %v9821_v25 = vld [vmem:[#allocation10 + $0x820] ss:$28 sps:$4 sm:$0xff]   ;;  %v9916_v19 = vld [vmem:[#allocation10 + $0xd94] ss:$28 sps:$4 sm:$0xff]  }
 0x3e9   :  { %7829 = vmatprep.subr.bf16.mxu1 %v9790_v28  ;;  %v9826_v28 = vld [vmem:[#allocation10 + $0x85c] ss:$28 sps:$4 sm:$0xff]  }
 0x3eb   :  { %7728 = vmatpush1.bf16.msra.mxu0 %v9842_v31  ;;  %v9914_v31 = vld [vmem:[#allocation10 + $0xd90] ss:$28 sps:$4 sm:$0xff]  }
 0x3ec   :  { %7830 = vmatpush1.bf16.msra.mxu1 %v9788_v33  ;;  %7729 = vmatprep.subr.bf16.mxu0 %v9850_v34  ;;  %v9824_v33 = vld [vmem:[#allocation10 + $0x858] ss:$28 sps:$4 sm:$0xff]   ;;  %v9922_v34 = vld [vmem:[#allocation10 + $0xdcc] ss:$28 sps:$4 sm:$0xff]  }
 0x3ed   :  { %7831 = vmatprep.subr.bf16.mxu1 %v9793_v35  ;;  %v9829_v35 = vld [vmem:[#allocation10 + $0x894] ss:$28 sps:$4 sm:$0xff]  }
 0x3ef   :  { %7730 = vmatpush1.bf16.msra.mxu0 %v9848_v39  ;;  %v9920_v39 = vld [vmem:[#allocation10 + $0xdc8] ss:$28 sps:$4 sm:$0xff]  }
 0x3f0   :  { %7832 = vmatpush1.bf16.msra.mxu1 %v9791_v12  ;;  %7731 = vmatprep.subr.bf16.mxu0 %v9856_v24  ;;  %v9827_v12 = vld [vmem:[#allocation10 + $0x890] ss:$28 sps:$4 sm:$0xff]  }
 0x3f1   :  { %7833 = vmatprep.subr.bf16.mxu1 %v9796_v44  ;;  %v9928_v24 = vld [vmem:[#allocation10 + $0x14] ss:$28 sps:$4 sm:$0xff]   ;;  %v9835_v44 = vld [vmem:[#allocation10 + $0x8cc] ss:$28 sps:$4 sm:$0xff]  }
 0x3f3   :  { %7732 = vmatpush1.bf16.msra.mxu0 %v9854_v20  ;;  %v9833_v20 = vld [vmem:[#allocation10 + $0x8c8] ss:$28 sps:$4 sm:$0xff]  }
 0x3f4   :  { %7834 = vmatpush1.bf16.msra.mxu1 %v9794_v36  ;;  %7733 = vmatprep.subr.bf16.mxu0 %v9862_v23  ;;  %v9841_v36 = vld [vmem:[#allocation10 + $0x904] ss:$28 sps:$4 sm:$0xff]  }
 0x3f5   :  { %7835 = vmatprep.subr.bf16.mxu1 %v9799_v37  ;;  %v9839_v23 = vld [vmem:[#allocation10 + $0x900] ss:$28 sps:$4 sm:$0xff]  }
 0x3f6   :  { %v9847_v37 = vld [vmem:[#allocation10 + $0x93c] ss:$28 sps:$4 sm:$0xff]  }
 0x3f7   :  { %7734 = vmatpush1.bf16.msra.mxu0 %v9860_v38  ;;  %v9845_v38 = vld [vmem:[#allocation10 + $0x938] ss:$28 sps:$4 sm:$0xff]  }
 0x3f8   :  { %7836 = vmatpush1.bf16.msra.mxu1 %v9797_v17  ;;  %7735 = vmatprep.subr.bf16.mxu0 %v9868_v27  ;;  %v9853_v17 = vld [vmem:[#allocation10 + $0x974] ss:$28 sps:$4 sm:$0xff]  }
 0x3f9   :  { %7837 = vmatprep.subr.bf16.mxu1 %v9802_v40  ;;  %v9851_v27 = vld [vmem:[#allocation10 + $0x970] ss:$28 sps:$4 sm:$0xff]  }
 0x3fa   :  { %v9859_v40 = vld [vmem:[#allocation10 + $0x9ac] ss:$28 sps:$4 sm:$0xff]  }
 0x3fb   :  { %7736 = vmatpush1.bf16.msra.mxu0 %v9866_v41  ;;  %v9857_v41 = vld [vmem:[#allocation10 + $0x9a8] ss:$28 sps:$4 sm:$0xff]  }
 0x3fc   :  { %7838 = vmatpush1.bf16.msra.mxu1 %v9800_v42  ;;  %7737 = vmatprep.subr.bf16.mxu0 %v9874_v30  ;;  %v9865_v42 = vld [vmem:[#allocation10 + $0x9e4] ss:$28 sps:$4 sm:$0xff]  }
 0x3fd   :  { %7839 = vmatprep.subr.bf16.mxu1 %v9805_v7  ;;  %v9863_v30 = vld [vmem:[#allocation10 + $0x9e0] ss:$28 sps:$4 sm:$0xff]  }
 0x3fe   :  { %v9871_v7 = vld [vmem:[#allocation10 + $0xa1c] ss:$28 sps:$4 sm:$0xff]  }
 0x3ff   :  { %7738 = vmatpush1.bf16.msra.mxu0 %v9872_v43  ;;  %v9869_v43 = vld [vmem:[#allocation10 + $0xa18] ss:$28 sps:$4 sm:$0xff]  }
 0x400   :  { %7840 = vmatpush1.bf16.msra.mxu1 %v9803_v47  ;;  %7739 = vmatprep.subr.bf16.mxu0 %v9880_v46  ;;  %v9877_v47 = vld [vmem:[#allocation10 + $0xa54] ss:$28 sps:$4 sm:$0xff]  }
 0x401   :  { %7852 = vmatprep.subr.bf16.mxu1 %v9808_v48  ;;  %v9875_v46 = vld [vmem:[#allocation10 + $0xa50] ss:$28 sps:$4 sm:$0xff]  }
 0x402   :  { %v9883_v48 = vld [vmem:[#allocation10 + $0xa8c] ss:$28 sps:$4 sm:$0xff]  }
 0x403   :  { %7842 = vmatmul.mubr.bf16.vlgmr.msra.gmra.mrb[20].mxu1 %v10727_v26  ;;  %7740 = vmatpush1.bf16.msra.mxu0 %v9878_v49  ;;  %v9881_v49 = vld [vmem:[#allocation10 + $0xa88] ss:$28 sps:$4 sm:$0xff]  }
 0x404   :  { %7853 = vmatpush1.bf16.msra.mxu1 %v9806_v0  ;;  %7884 = vmatprep.mubr.bf16.mxu1 %v10745_v13  ;;  %v9889_v0 = vld [vmem:[#allocation10 + $0xac4] ss:$28 sps:$4 sm:$0xff]  }
 0x405   :  { %7854 = vmatprep.subr.bf16.mxu1 %v9811_v51  ;;  %7741 = vmatprep.subr.bf16.mxu0 %v9886_v52  ;;  %v9887_v51 = vld [vmem:[#allocation10 + $0xac0] ss:$28 sps:$4 sm:$0xff]  }
 0x406   :  { %v9895_v52 = vld [vmem:[#allocation10 + $0xafc] ss:$28 sps:$4 sm:$0xff]  }
 0x407   :  { %7742 = vmatpush1.bf16.msra.mxu0 %v9884_v53  ;;  %v9893_v53 = vld [vmem:[#allocation10 + $0xaf8] ss:$28 sps:$4 sm:$0xff]  }
 0x408   :  { %7855 = vmatpush1.bf16.msra.mxu1 %v9809_v55  ;;  %7743 = vmatprep.subr.bf16.mxu0 %v9892_v56  ;;  %v9901_v55 = vld [vmem:[#allocation10 + $0xb34] ss:$28 sps:$4 sm:$0xff]  }
 0x409   :  { %7856 = vmatprep.subr.bf16.mxu1 %v9814_v57  ;;  %v9899_v56 = vld [vmem:[#allocation10 + $0xb30] ss:$28 sps:$4 sm:$0xff]  }
 0x40a   :  { %v9907_v57 = vld [vmem:[#allocation10 + $0xb6c] ss:$28 sps:$4 sm:$0xff]  }
 0x40b   :  { %7744 = vmatpush1.bf16.msra.mxu0 %v9890_v58  ;;  %v9905_v58 = vld [vmem:[#allocation10 + $0xb68] ss:$28 sps:$4 sm:$0xff]  }
 0x40c   :  { %7857 = vmatpush1.bf16.msra.mxu1 %v9812_v59  ;;  %7745 = vmatprep.subr.bf16.mxu0 %v9898_v60  ;;  %v9913_v59 = vld [vmem:[#allocation10 + $0xba4] ss:$28 sps:$4 sm:$0xff]   ;;  %v1456_v60 = vrot.slane %v10737_v32, %v10653_v11 }
 0x40d   :  { %7858 = vmatprep.subr.bf16.mxu1 %v9817_v61  ;;  %v1460_v61 = vrot.slane %v10737_v32, %v865_v14  ;;  %v9923_v14 = vld [vmem:[#allocation10 + $0xc10] ss:$28 sps:$4 sm:$0xff]  }
 0x40f   :  { %7746 = vmatpush1.bf16.msra.mxu0 %v9896_v62  ;;  %v9911_v62 = vld [vmem:[#allocation10 + $0xba0] ss:$28 sps:$4 sm:$0xff]  }
 0x410   :  { %7859 = vmatpush1.bf16.msra.mxu1 %v9815_v45  ;;  %7747 = vmatprep.subr.bf16.mxu0 %v9904_v1  ;;  %v9919_v45 = vld [vmem:[#allocation10 + $0xbdc] ss:$28 sps:$4 sm:$0xff]  }
 0x411   :  { %7860 = vmatprep.subr.bf16.mxu1 %v9820_v3 }
 0x413   :  { %7748 = vmatpush1.bf16.msra.mxu0 %v9902_v15 }
 0x414   :  { %7861 = vmatpush1.bf16.msra.mxu1 %v9818_v16  ;;  %7749 = vmatprep.subr.bf16.mxu0 %v9910_v18 }
 0x415   :  { %7862 = vmatprep.subr.bf16.mxu1 %v9823_v21  ;;  %v9917_v21 = vld [vmem:[#allocation10 + $0xbd8] ss:$28 sps:$4 sm:$0xff]  }
 0x417   :  { %7750 = vmatpush1.bf16.msra.mxu0 %v9908_v22 }
 0x418   :  { %7863 = vmatpush1.bf16.msra.mxu1 %v9821_v25  ;;  %7751 = vmatprep.subr.bf16.mxu0 %v9916_v19  ;;  %v9925_v19 = vld [vmem:[#allocation10 + $0xc14] ss:$28 sps:$4 sm:$0xff]  }
 0x419   :  { %7864 = vmatprep.subr.bf16.mxu1 %v9826_v28 }
 0x41b   :  { %7752 = vmatpush1.bf16.msra.mxu0 %v9914_v31 }
 0x41c   :  { %7865 = vmatpush1.bf16.msra.mxu1 %v9824_v33  ;;  %7753 = vmatprep.subr.bf16.mxu0 %v9922_v34 }
 0x41d   :  { %7866 = vmatprep.subr.bf16.mxu1 %v9829_v35 }
 0x41f   :  { %7754 = vmatpush1.bf16.msra.mxu0 %v9920_v39  ;;  %v9926_v39 = vld [vmem:[#allocation10 + $0x10] ss:$28 sps:$4 sm:$0xff]  }
 0x420   :  { %7867 = vmatpush1.bf16.msra.mxu1 %v9827_v12  ;;  %7938 = vmatprep.subr.bf16.mxu0 %v9928_v24  ;;  %v9931_v12 = vld [vmem:[#allocation10 + $0xc4c] ss:$28 sps:$4 sm:$0xff]  }
 0x421   :  { %7868 = vmatprep.subr.bf16.mxu1 %v9835_v44  ;;  %v9934_v24 = vld [vmem:[#allocation10 + $0x4c] ss:$28 sps:$4 sm:$0xff]  }
 0x422   :  { %v9929_v44 = vld [vmem:[#allocation10 + $0xc48] ss:$28 sps:$4 sm:$0xff]  }
 0x424   :  { %7869 = vmatpush1.bf16.msra.mxu1 %v9833_v20  ;;  %v9937_v20 = vld [vmem:[#allocation10 + $0xc84] ss:$28 sps:$4 sm:$0xff]  }
 0x425   :  { %7870 = vmatprep.subr.bf16.mxu1 %v9841_v36  ;;  %v9932_v36 = vld [vmem:[#allocation10 + $0x48] ss:$28 sps:$4 sm:$0xff]  }
 0x428   :  { %7871 = vmatpush1.bf16.msra.mxu1 %v9839_v23  ;;  %v9940_v23 = vld [vmem:[#allocation10 + $0x84] ss:$28 sps:$4 sm:$0xff]  }
 0x429   :  { %7872 = vmatprep.subr.bf16.mxu1 %v9847_v37  ;;  %v9935_v37 = vld [vmem:[#allocation10 + $0xc80] ss:$28 sps:$4 sm:$0xff]  }
 0x42c   :  { %7873 = vmatpush1.bf16.msra.mxu1 %v9845_v38  ;;  %v9943_v38 = vld [vmem:[#allocation10 + $0xcbc] ss:$28 sps:$4 sm:$0xff]  }
 0x42d   :  { %7874 = vmatprep.subr.bf16.mxu1 %v9853_v17  ;;  %v9938_v17 = vld [vmem:[#allocation10 + $0x80] ss:$28 sps:$4 sm:$0xff]  }
 0x430   :  { %7875 = vmatpush1.bf16.msra.mxu1 %v9851_v27  ;;  %v9946_v27 = vld [vmem:[#allocation10 + $0xbc] ss:$28 sps:$4 sm:$0xff]  }
 0x431   :  { %7876 = vmatprep.subr.bf16.mxu1 %v9859_v40  ;;  %v9941_v40 = vld [vmem:[#allocation10 + $0xcb8] ss:$28 sps:$4 sm:$0xff]  }
 0x434   :  { %7877 = vmatpush1.bf16.msra.mxu1 %v9857_v41  ;;  %v9949_v41 = vld [vmem:[#allocation10 + $0xcf4] ss:$28 sps:$4 sm:$0xff]  }
 0x435   :  { %7878 = vmatprep.subr.bf16.mxu1 %v9865_v42  ;;  %v9944_v42 = vld [vmem:[#allocation10 + $0xb8] ss:$28 sps:$4 sm:$0xff]  }
 0x438   :  { %7879 = vmatpush1.bf16.msra.mxu1 %v9863_v30  ;;  %v9952_v30 = vld [vmem:[#allocation10 + $0xf4] ss:$28 sps:$4 sm:$0xff]  }
 0x439   :  { %7880 = vmatprep.subr.bf16.mxu1 %v9871_v7  ;;  %v9947_v7 = vld [vmem:[#allocation10 + $0xcf0] ss:$28 sps:$4 sm:$0xff]  }
 0x43c   :  { %7881 = vmatpush1.bf16.msra.mxu1 %v9869_v43  ;;  %v9955_v43 = vld [vmem:[#allocation10 + $0xd2c] ss:$28 sps:$4 sm:$0xff]  }
 0x43d   :  { %7882 = vmatprep.subr.bf16.mxu1 %v9877_v47  ;;  %v9950_v47 = vld [vmem:[#allocation10 + $0xf0] ss:$28 sps:$4 sm:$0xff]  }
 0x440   :  { %7883 = vmatpush1.bf16.msra.mxu1 %v9875_v46  ;;  %v9958_v46 = vld [vmem:[#allocation10 + $0x12c] ss:$28 sps:$4 sm:$0xff]  }
 0x441   :  { %7895 = vmatprep.subr.bf16.mxu1 %v9883_v48  ;;  %v9953_v48 = vld [vmem:[#allocation10 + $0xd28] ss:$28 sps:$4 sm:$0xff]  }
 0x443   :  { %7885 = vmatmul.mubr.bf16.vlgmr.msra.gmra.mrb[20].mxu1 %v10743_v4 }
 0x444   :  { %7896 = vmatpush1.bf16.msra.mxu1 %v9881_v49  ;;  %v9961_v49 = vld [vmem:[#allocation10 + $0xd64] ss:$28 sps:$4 sm:$0xff]  }
 0x445   :  { %7897 = vmatprep.subr.bf16.mxu1 %v9889_v0  ;;  %v9956_v0 = vld [vmem:[#allocation10 + $0x128] ss:$28 sps:$4 sm:$0xff]  }
 0x448   :  { %7898 = vmatpush1.bf16.msra.mxu1 %v9887_v51  ;;  %v9964_v51 = vld [vmem:[#allocation10 + $0x164] ss:$28 sps:$4 sm:$0xff]  }
 0x449   :  { %7899 = vmatprep.subr.bf16.mxu1 %v9895_v52  ;;  %v9959_v52 = vld [vmem:[#allocation10 + $0xd60] ss:$28 sps:$4 sm:$0xff]  }
 0x44c   :  { %7900 = vmatpush1.bf16.msra.mxu1 %v9893_v53  ;;  %v9967_v53 = vld [vmem:[#allocation10 + $0xd9c] ss:$28 sps:$4 sm:$0xff]  }
 0x44d   :  { %7901 = vmatprep.subr.bf16.mxu1 %v9901_v55  ;;  %v9962_v55 = vld [vmem:[#allocation10 + $0x160] ss:$28 sps:$4 sm:$0xff]  }
 0x450   :  { %7902 = vmatpush1.bf16.msra.mxu1 %v9899_v56  ;;  %v9970_v56 = vld [vmem:[#allocation10 + $0x19c] ss:$28 sps:$4 sm:$0xff]  }
 0x451   :  { %7903 = vmatprep.subr.bf16.mxu1 %v9907_v57  ;;  %v9965_v57 = vld [vmem:[#allocation10 + $0xd98] ss:$28 sps:$4 sm:$0xff]  }
 0x454   :  { %7904 = vmatpush1.bf16.msra.mxu1 %v9905_v58  ;;  %v9973_v58 = vld [vmem:[#allocation10 + $0xdd4] ss:$28 sps:$4 sm:$0xff]  }
 0x455   :  { %7905 = vmatprep.subr.bf16.mxu1 %v9913_v59  ;;  %v9968_v59 = vld [vmem:[#allocation10 + $0x198] ss:$28 sps:$4 sm:$0xff]  }
 0x456   :  { %v4708_v1 = vpop.f32.mrb[16].mxu1 }
 0x457   :  { %v9442_v3 = vadd.f32 %v4708_v1, %v1456_v60  ;;  %v4710_v15 = vpop.f32.mrb[17].mxu1  ;;  %v9980_v1 = vld [vmem:[#allocation10 + $0x20c] ss:$28 sps:$4 sm:$0xff]  }
 0x458   :  { %v9443_v16 = vadd.f32 %v4710_v15, %v1460_v61  ;;  %v4712_v18 = vpop.f32.mrb[18].mxu1  ;;  %7906 = vmatpush1.bf16.msra.mxu1 %v9911_v62  ;;  %v9977_v62 = vld [vmem:[#allocation10 + $0x1d8] ss:$28 sps:$4 sm:$0xff]   ;;  %v9982_v15 = vld [vmem:[#allocation10 + $0x210] ss:$28 sps:$4 sm:$0xff]  }
 0x459   :  { %v9444_v22 = vadd.f32 %v4712_v18, %v1456_v60  ;;  %v4714_v25 = vpop.f32.mrb[19].mxu1  ;;  %7907 = vmatprep.subr.bf16.mxu1 %v9919_v45  ;;  %v4723_v31 = vmax.f32 %v9442_v3, 0.0  ;;  %v9976_v60 = vld [vmem:[#allocation10 + $0x1d4] ss:$28 sps:$4 sm:$0xff]   ;;  %v9985_v18 = vld [vmem:[#allocation10 + $0x244] ss:$28 sps:$4 sm:$0xff]  }
 0x45a   :  { %v9445_v28 = vadd.f32 %v4714_v25, %v1460_v61  ;;  %v4724_v5 = vmax.f32 %v9443_v16, 0.0  ;;  %v9971_v61 = vld [vmem:[#allocation10 + $0xdd0] ss:$28 sps:$4 sm:$0xff]   ;;  %v9981_v3 = vld [vmem:[#allocation10 + $0x18] ss:$28 sps:$4 sm:$0xff]  }
 0x45b   :  { %v4731_v33 = vmax.f32 %v9444_v22, 0.0  ;;  %v9974_v45 = vld [vmem:[#allocation10 + $0x1d0] ss:$28 sps:$4 sm:$0xff]   ;;  %v9978_v16 = vld [vmem:[#allocation10 + $0x208] ss:$28 sps:$4 sm:$0xff]  }
 0x45c   :  { %v4732_v34 = vmax.f32 %v9445_v28, 0.0  ;;  %7908 = vmatpush1.bf16.msra.mxu1 %v9917_v21  ;;  %v9986_v21 = vld [vmem:[#allocation10 + $0x50] ss:$28 sps:$4 sm:$0xff]   ;;  %v9987_v22 = vld [vmem:[#allocation10 + $0x248] ss:$28 sps:$4 sm:$0xff]  }
 0x45d   :  { %v10757_v32 = vpack.c.bf16 %v4731_v33, %v4723_v31  ;;  %7909 = vmatprep.subr.bf16.mxu1 %v9925_v19  ;;  %v9983_v25 = vld [vmem:[#allocation10 + $0x240] ss:$28 sps:$4 sm:$0xff]   ;;  %v9991_v28 = vld [vmem:[#allocation10 + $0x88] ss:$28 sps:$4 sm:$0xff]   ;;  %v9988_v33 = vld [vmem:[#allocation10 + $0x278] ss:$28 sps:$4 sm:$0xff]  }
 0x45e   :  { %v10759_v35 = vpack.c.bf16 %v4732_v34, %v4724_v5  ;;  %v9990_v19 = vld [vmem:[#allocation10 + $0x27c] ss:$28 sps:$4 sm:$0xff]   ;;  %v9995_v5 = vld [vmem:[#allocation10 + $0x2b4] ss:$28 sps:$4 sm:$0xff]  }
 0x45f   :  { %v9992_v31 = vld [vmem:[#allocation10 + $0x280] ss:$28 sps:$4 sm:$0xff]  }
 0x460   :  { %7755 = vmatprep.mubr.bf16.mxu0 %v10759_v35  ;;  %7910 = vmatpush1.bf16.msra.mxu1 %v9923_v14  ;;  %v9996_v34 = vld [vmem:[#allocation10 + $0xc0] ss:$28 sps:$4 sm:$0xff]   ;;  %v9997_v14 = vld [vmem:[#allocation10 + $0x2b8] ss:$28 sps:$4 sm:$0xff]  }
 0x461   :  { %7927 = vmatprep.mubr.bf16.mxu1 %v10759_v35  ;;  %7756 = vmatmul.mubr.bf16.vlgmr.msra.gmra.mrb[16].mxu0 %v10757_v32 }
 0x462   :  { %7939 = vmatpush1.bf16.msra.mxu0 %v9926_v39  ;;  %7970 = vmatprep.mubr.bf16.mxu0 %v10714_v54  ;;  %v10000_v39 = vld [vmem:[#allocation10 + $0x2ec] ss:$28 sps:$4 sm:$0xff]  }
 0x463   :  { %7911 = vmatprep.subr.bf16.mxu1 %v9931_v12  ;;  %7940 = vmatprep.subr.bf16.mxu0 %v9934_v24  ;;  %v10001_v12 = vld [vmem:[#allocation10 + $0xf8] ss:$28 sps:$4 sm:$0xff]   ;;  %v10002_v24 = vld [vmem:[#allocation10 + $0x2f0] ss:$28 sps:$4 sm:$0xff]  }
 0x464   :  { %7912 = vmatpush1.bf16.msra.mxu1 %v9929_v44  ;;  %v9998_v44 = vld [vmem:[#allocation10 + $0x2e8] ss:$28 sps:$4 sm:$0xff]  }
 0x465   :  { %7913 = vmatprep.subr.bf16.mxu1 %v9937_v20  ;;  %v10005_v20 = vld [vmem:[#allocation10 + $0x324] ss:$28 sps:$4 sm:$0xff]  }
 0x466   :  { %7941 = vmatpush1.bf16.msra.mxu0 %v9932_v36  ;;  %v10006_v36 = vld [vmem:[#allocation10 + $0x130] ss:$28 sps:$4 sm:$0xff]  }
 0x467   :  { %7942 = vmatprep.subr.bf16.mxu0 %v9940_v23  ;;  %v10007_v23 = vld [vmem:[#allocation10 + $0x328] ss:$28 sps:$4 sm:$0xff]  }
 0x468   :  { %7914 = vmatpush1.bf16.msra.mxu1 %v9935_v37  ;;  %v10003_v37 = vld [vmem:[#allocation10 + $0x320] ss:$28 sps:$4 sm:$0xff]  }
 0x469   :  { %7915 = vmatprep.subr.bf16.mxu1 %v9943_v38  ;;  %v10010_v38 = vld [vmem:[#allocation10 + $0x35c] ss:$28 sps:$4 sm:$0xff]  }
 0x46a   :  { %7943 = vmatpush1.bf16.msra.mxu0 %v9938_v17  ;;  %v10011_v17 = vld [vmem:[#allocation10 + $0x168] ss:$28 sps:$4 sm:$0xff]  }
 0x46b   :  { %7944 = vmatprep.subr.bf16.mxu0 %v9946_v27  ;;  %v10012_v27 = vld [vmem:[#allocation10 + $0x360] ss:$28 sps:$4 sm:$0xff]  }
 0x46c   :  { %7916 = vmatpush1.bf16.msra.mxu1 %v9941_v40  ;;  %v10008_v40 = vld [vmem:[#allocation10 + $0x358] ss:$28 sps:$4 sm:$0xff]  }
 0x46d   :  { %7917 = vmatprep.subr.bf16.mxu1 %v9949_v41  ;;  %v10015_v41 = vld [vmem:[#allocation10 + $0x394] ss:$28 sps:$4 sm:$0xff]  }
 0x46e   :  { %7945 = vmatpush1.bf16.msra.mxu0 %v9944_v42  ;;  %v10016_v42 = vld [vmem:[#allocation10 + $0x1a0] ss:$28 sps:$4 sm:$0xff]  }
 0x46f   :  { %7946 = vmatprep.subr.bf16.mxu0 %v9952_v30  ;;  %v10017_v30 = vld [vmem:[#allocation10 + $0x558] ss:$28 sps:$4 sm:$0xff]  }
 0x470   :  { %7918 = vmatpush1.bf16.msra.mxu1 %v9947_v7  ;;  %v10013_v7 = vld [vmem:[#allocation10 + $0x390] ss:$28 sps:$4 sm:$0xff]  }
 0x471   :  { %7919 = vmatprep.subr.bf16.mxu1 %v9955_v43  ;;  %v10020_v43 = vld [vmem:[#allocation10 + $0x3cc] ss:$28 sps:$4 sm:$0xff]  }
 0x472   :  { %7947 = vmatpush1.bf16.msra.mxu0 %v9950_v47  ;;  %v10021_v47 = vld [vmem:[#allocation10 + $0x398] ss:$28 sps:$4 sm:$0xff]  }
 0x473   :  { %7948 = vmatprep.subr.bf16.mxu0 %v9958_v46  ;;  %v10022_v46 = vld [vmem:[#allocation10 + $0x590] ss:$28 sps:$4 sm:$0xff]  }
 0x474   :  { %7920 = vmatpush1.bf16.msra.mxu1 %v9953_v48  ;;  %v10018_v48 = vld [vmem:[#allocation10 + $0x3c8] ss:$28 sps:$4 sm:$0xff]  }
 0x475   :  { %7921 = vmatprep.subr.bf16.mxu1 %v9961_v49  ;;  %v10025_v49 = vld [vmem:[#allocation10 + $0x404] ss:$28 sps:$4 sm:$0xff]  }
 0x476   :  { %7949 = vmatpush1.bf16.msra.mxu0 %v9956_v0  ;;  %v10026_v0 = vld [vmem:[#allocation10 + $0x3d0] ss:$28 sps:$4 sm:$0xff]  }
 0x477   :  { %7950 = vmatprep.subr.bf16.mxu0 %v9964_v51  ;;  %v10027_v51 = vld [vmem:[#allocation10 + $0x5c8] ss:$28 sps:$4 sm:$0xff]  }
 0x478   :  { %7922 = vmatpush1.bf16.msra.mxu1 %v9959_v52  ;;  %v10023_v52 = vld [vmem:[#allocation10 + $0x400] ss:$28 sps:$4 sm:$0xff]  }
 0x479   :  { %7923 = vmatprep.subr.bf16.mxu1 %v9967_v53  ;;  %v10030_v53 = vld [vmem:[#allocation10 + $0x43c] ss:$28 sps:$4 sm:$0xff]  }
 0x47a   :  { %7951 = vmatpush1.bf16.msra.mxu0 %v9962_v55  ;;  %v10031_v55 = vld [vmem:[#allocation10 + $0x408] ss:$28 sps:$4 sm:$0xff]  }
 0x47b   :  { %7952 = vmatprep.subr.bf16.mxu0 %v9970_v56  ;;  %v10032_v56 = vld [vmem:[#allocation10 + $0x600] ss:$28 sps:$4 sm:$0xff]  }
 0x47c   :  { %7924 = vmatpush1.bf16.msra.mxu1 %v9965_v57  ;;  %v10028_v57 = vld [vmem:[#allocation10 + $0x438] ss:$28 sps:$4 sm:$0xff]  }
 0x47d   :  { %7925 = vmatprep.subr.bf16.mxu1 %v9973_v58  ;;  %v10036_v58 = vld [vmem:[#allocation10 + $0x440] ss:$28 sps:$4 sm:$0xff]  }
 0x47e   :  { %7953 = vmatpush1.bf16.msra.mxu0 %v9968_v59  ;;  %v10037_v59 = vld [vmem:[#allocation10 + $0x638] ss:$28 sps:$4 sm:$0xff]  }
 0x47f   :  { %7954 = vmatprep.subr.bf16.mxu0 %v9976_v60  ;;  %v10040_v60 = vld [vmem:[#allocation10 + $0x4ac] ss:$28 sps:$4 sm:$0xff]  }
 0x480   :  { %7926 = vmatpush1.bf16.msra.mxu1 %v9971_v61  ;;  %v10041_v61 = vld [vmem:[#allocation10 + $0x478] ss:$28 sps:$4 sm:$0xff]  }
 0x481   :  { %9338 = vmatprep.subr.bf16.mxu1 %v9977_v62  ;;  %v10042_v62 = vld [vmem:[#allocation10 + $0x670] ss:$28 sps:$4 sm:$0xff]  }
 0x482   :  { %7955 = vmatpush1.bf16.msra.mxu0 %v9974_v45  ;;  %v10038_v45 = vld [vmem:[#allocation10 + $0x4a8] ss:$28 sps:$4 sm:$0xff]  }
 0x483   :  { %7928 = vmatmul.mubr.bf16.vlgmr.msra.gmra.mrb[20].mxu1 %v10757_v32  ;;  %7956 = vmatprep.subr.bf16.mxu0 %v9980_v1  ;;  %v10045_v1 = vld [vmem:[#allocation10 + $0x4e4] ss:$28 sps:$4 sm:$0xff]  }
 0x484   :  { %9339 = vmatpush3.bf16.msra.mxu1 %v9981_v3  ;;  %8142 = vmatprep.mubr.bf16.mxu1 %v10714_v54  ;;  %v9993_v54 = vld [vmem:[#allocation10 + $0x2b0] ss:$28 sps:$4 sm:$0xff]  }
 0x485   :  { %9340 = vmatprep.subr.bf16.mxu1 %v9982_v15  ;;  %v10046_v3 = vld [vmem:[#allocation10 + $0x4b0] ss:$28 sps:$4 sm:$0xff]   ;;  %v10047_v15 = vld [vmem:[#allocation10 + $0x6a8] ss:$28 sps:$4 sm:$0xff]  }
 0x486   :  { %7957 = vmatpush1.bf16.msra.mxu0 %v9978_v16  ;;  %v10043_v16 = vld [vmem:[#allocation10 + $0x4e0] ss:$28 sps:$4 sm:$0xff]  }
 0x487   :  { %7958 = vmatprep.subr.bf16.mxu0 %v9985_v18  ;;  %v10050_v18 = vld [vmem:[#allocation10 + $0x51c] ss:$28 sps:$4 sm:$0xff]  }
 0x488   :  { %9341 = vmatpush3.bf16.msra.mxu1 %v9986_v21  ;;  %v10051_v21 = vld [vmem:[#allocation10 + $0x4e8] ss:$28 sps:$4 sm:$0xff]  }
 0x489   :  { %9342 = vmatprep.subr.bf16.mxu1 %v9987_v22  ;;  %v10052_v22 = vld [vmem:[#allocation10 + $0x6e0] ss:$28 sps:$4 sm:$0xff]  }
 0x48a   :  { %7959 = vmatpush1.bf16.msra.mxu0 %v9983_v25  ;;  %v10048_v25 = vld [vmem:[#allocation10 + $0x518] ss:$28 sps:$4 sm:$0xff]  }
 0x48b   :  { %7960 = vmatprep.subr.bf16.mxu0 %v9990_v19  ;;  %v10055_v19 = vld [vmem:[#allocation10 + $0x554] ss:$28 sps:$4 sm:$0xff]  }
 0x48c   :  { %9343 = vmatpush3.bf16.msra.mxu1 %v9991_v28  ;;  %v10056_v28 = vld [vmem:[#allocation10 + $0x520] ss:$28 sps:$4 sm:$0xff]  }
 0x48d   :  { %9344 = vmatprep.subr.bf16.mxu1 %v9992_v31  ;;  %v10057_v31 = vld [vmem:[#allocation10 + $0x8d8] ss:$28 sps:$4 sm:$0xff]  }
 0x48e   :  { %7961 = vmatpush1.bf16.msra.mxu0 %v9988_v33  ;;  %v10053_v33 = vld [vmem:[#allocation10 + $0x550] ss:$28 sps:$4 sm:$0xff]  }
 0x48f   :  { %7962 = vmatprep.subr.bf16.mxu0 %v9995_v5  ;;  %v10060_v5 = vld [vmem:[#allocation10 + $0x58c] ss:$28 sps:$4 sm:$0xff]  }
 0x490   :  { %9345 = vmatpush3.bf16.msra.mxu1 %v9996_v34  ;;  %v10061_v34 = vld [vmem:[#allocation10 + $0x718] ss:$28 sps:$4 sm:$0xff]  }
 0x491   :  { %9346 = vmatprep.subr.bf16.mxu1 %v9997_v14  ;;  %v10062_v14 = vld [vmem:[#allocation10 + $0x910] ss:$28 sps:$4 sm:$0xff]  }
 0x492   :  { %7963 = vmatpush1.bf16.msra.mxu0 %v9993_v54  ;;  %v10058_v54 = vld [vmem:[#allocation10 + $0x588] ss:$28 sps:$4 sm:$0xff]  }
 0x493   :  { %7964 = vmatprep.subr.bf16.mxu0 %v10000_v39  ;;  %v10065_v39 = vld [vmem:[#allocation10 + $0x5c4] ss:$28 sps:$4 sm:$0xff]  }
 0x494   :  { %9347 = vmatpush3.bf16.msra.mxu1 %v10001_v12  ;;  %v10066_v12 = vld [vmem:[#allocation10 + $0x750] ss:$28 sps:$4 sm:$0xff]  }
 0x495   :  { %9348 = vmatprep.subr.bf16.mxu1 %v10002_v24  ;;  %v10067_v24 = vld [vmem:[#allocation10 + $0x948] ss:$28 sps:$4 sm:$0xff]  }
 0x496   :  { %7965 = vmatpush1.bf16.msra.mxu0 %v9998_v44  ;;  %v10063_v44 = vld [vmem:[#allocation10 + $0x5c0] ss:$28 sps:$4 sm:$0xff]  }
 0x497   :  { %7966 = vmatprep.subr.bf16.mxu0 %v10005_v20  ;;  %v10070_v20 = vld [vmem:[#allocation10 + $0x5fc] ss:$28 sps:$4 sm:$0xff]  }
 0x498   :  { %9349 = vmatpush3.bf16.msra.mxu1 %v10006_v36  ;;  %v10071_v36 = vld [vmem:[#allocation10 + $0x788] ss:$28 sps:$4 sm:$0xff]  }
 0x499   :  { %9350 = vmatprep.subr.bf16.mxu1 %v10007_v23  ;;  %v10072_v23 = vld [vmem:[#allocation10 + $0x980] ss:$28 sps:$4 sm:$0xff]  }
 0x49a   :  { %7967 = vmatpush1.bf16.msra.mxu0 %v10003_v37  ;;  %v10068_v37 = vld [vmem:[#allocation10 + $0x5f8] ss:$28 sps:$4 sm:$0xff]  }
 0x49b   :  { %7968 = vmatprep.subr.bf16.mxu0 %v10010_v38  ;;  %v10075_v38 = vld [vmem:[#allocation10 + $0x634] ss:$28 sps:$4 sm:$0xff]  }
 0x49c   :  { %9351 = vmatpush3.bf16.msra.mxu1 %v10011_v17  ;;  %v10076_v17 = vld [vmem:[#allocation10 + $0x7c0] ss:$28 sps:$4 sm:$0xff]  }
 0x49d   :  { %9352 = vmatprep.subr.bf16.mxu1 %v10012_v27  ;;  %v10077_v27 = vld [vmem:[#allocation10 + $0x9b8] ss:$28 sps:$4 sm:$0xff]  }
 0x49e   :  { %7969 = vmatpush1.bf16.msra.mxu0 %v10008_v40  ;;  %v10073_v40 = vld [vmem:[#allocation10 + $0x630] ss:$28 sps:$4 sm:$0xff]  }
 0x49f   :  { %7981 = vmatprep.subr.bf16.mxu0 %v10015_v41  ;;  %v10080_v41 = vld [vmem:[#allocation10 + $0x66c] ss:$28 sps:$4 sm:$0xff]  }
 0x4a0   :  { %9353 = vmatpush3.bf16.msra.mxu1 %v10016_v42  ;;  %v10081_v42 = vld [vmem:[#allocation10 + $0x7f8] ss:$28 sps:$4 sm:$0xff]  }
 0x4a1   :  { %7971 = vmatmul.mubr.bf16.vlgmr.msra.gmra.mrb[20].mxu0 %v10712_v50  ;;  %9360 = vmatprep.subr.bf16.mxu1 %v10017_v30  ;;  %v10082_v30 = vld [vmem:[#allocation10 + $0x9f0] ss:$28 sps:$4 sm:$0xff]  }
 0x4a2   :  { %7982 = vmatpush1.bf16.msra.mxu0 %v10013_v7  ;;  %8013 = vmatprep.mubr.bf16.mxu0 %v10729_v29  ;;  %v10078_v7 = vld [vmem:[#allocation10 + $0x668] ss:$28 sps:$4 sm:$0xff]  }
 0x4a3   :  { %8143 = vmatmul.mubr.bf16.vlgmr.msra.gmra.mrb[24].mxu1 %v10712_v50  ;;  %7983 = vmatprep.subr.bf16.mxu0 %v10020_v43  ;;  %v10035_v50 = vld [vmem:[#allocation10 + $0x474] ss:$28 sps:$4 sm:$0xff]   ;;  %v10085_v43 = vld [vmem:[#allocation10 + $0x6a4] ss:$28 sps:$4 sm:$0xff]  }
 0x4a4   :  { %9361 = vmatpush3.bf16.msra.mxu1 %v10021_v47  ;;  %8183 = vmatprep.mubr.bf16.mxu1 %v10729_v29  ;;  %v10033_v29 = vld [vmem:[#allocation10 + $0x470] ss:$28 sps:$4 sm:$0xff]  }
 0x4a5   :  { %9362 = vmatprep.subr.bf16.mxu1 %v10022_v46  ;;  %v10086_v47 = vld [vmem:[#allocation10 + $0x830] ss:$28 sps:$4 sm:$0xff]   ;;  %v10087_v46 = vld [vmem:[#allocation10 + $0xa28] ss:$28 sps:$4 sm:$0xff]  }
 0x4a6   :  { %7984 = vmatpush1.bf16.msra.mxu0 %v10018_v48  ;;  %v10083_v48 = vld [vmem:[#allocation10 + $0x6a0] ss:$28 sps:$4 sm:$0xff]  }
 0x4a7   :  { %7985 = vmatprep.subr.bf16.mxu0 %v10025_v49  ;;  %v10090_v49 = vld [vmem:[#allocation10 + $0x6dc] ss:$28 sps:$4 sm:$0xff]  }
 0x4a8   :  { %9363 = vmatpush3.bf16.msra.mxu1 %v10026_v0  ;;  %v10091_v0 = vld [vmem:[#allocation10 + $0x868] ss:$28 sps:$4 sm:$0xff]  }
 0x4a9   :  { %9364 = vmatprep.subr.bf16.mxu1 %v10027_v51  ;;  %v10092_v51 = vld [vmem:[#allocation10 + $0xa60] ss:$28 sps:$4 sm:$0xff]  }
 0x4aa   :  { %7986 = vmatpush1.bf16.msra.mxu0 %v10023_v52  ;;  %v10088_v52 = vld [vmem:[#allocation10 + $0x6d8] ss:$28 sps:$4 sm:$0xff]  }
 0x4ab   :  { %7987 = vmatprep.subr.bf16.mxu0 %v10030_v53  ;;  %v10095_v53 = vld [vmem:[#allocation10 + $0x714] ss:$28 sps:$4 sm:$0xff]  }
 0x4ac   :  { %9365 = vmatpush3.bf16.msra.mxu1 %v10031_v55  ;;  %v10096_v55 = vld [vmem:[#allocation10 + $0x8a0] ss:$28 sps:$4 sm:$0xff]  }
 0x4ad   :  { %9366 = vmatprep.subr.bf16.mxu1 %v10032_v56  ;;  %v10097_v56 = vld [vmem:[#allocation10 + $0xc58] ss:$28 sps:$4 sm:$0xff]  }
 0x4ae   :  { %7988 = vmatpush1.bf16.msra.mxu0 %v10028_v57  ;;  %v10093_v57 = vld [vmem:[#allocation10 + $0x710] ss:$28 sps:$4 sm:$0xff]  }
 0x4af   :  { %7989 = vmatprep.subr.bf16.mxu0 %v10035_v50  ;;  %v10100_v50 = vld [vmem:[#allocation10 + $0x74c] ss:$28 sps:$4 sm:$0xff]  }
 0x4b0   :  { %9367 = vmatpush3.bf16.msra.mxu1 %v10036_v58  ;;  %v10101_v58 = vld [vmem:[#allocation10 + $0xa98] ss:$28 sps:$4 sm:$0xff]  }
 0x4b1   :  { %9368 = vmatprep.subr.bf16.mxu1 %v10037_v59  ;;  %v10102_v59 = vld [vmem:[#allocation10 + $0xc90] ss:$28 sps:$4 sm:$0xff]  }
 0x4b2   :  { %7990 = vmatpush1.bf16.msra.mxu0 %v10033_v29  ;;  %v10098_v29 = vld [vmem:[#allocation10 + $0x748] ss:$28 sps:$4 sm:$0xff]  }
 0x4b3   :  { %7991 = vmatprep.subr.bf16.mxu0 %v10040_v60  ;;  %v10105_v60 = vld [vmem:[#allocation10 + $0x784] ss:$28 sps:$4 sm:$0xff]  }
 0x4b4   :  { %9369 = vmatpush3.bf16.msra.mxu1 %v10041_v61  ;;  %v10106_v61 = vld [vmem:[#allocation10 + $0xad0] ss:$28 sps:$4 sm:$0xff]  }
 0x4b5   :  { %9370 = vmatprep.subr.bf16.mxu1 %v10042_v62  ;;  %v10107_v62 = vld [vmem:[#allocation10 + $0xcc8] ss:$28 sps:$4 sm:$0xff]  }
 0x4b6   :  { %7992 = vmatpush1.bf16.msra.mxu0 %v10038_v45  ;;  %v10103_v45 = vld [vmem:[#allocation10 + $0x780] ss:$28 sps:$4 sm:$0xff]  }
 0x4b7   :  { %7993 = vmatprep.subr.bf16.mxu0 %v10045_v1  ;;  %v10111_v1 = vld [vmem:[#allocation10 + $0xb08] ss:$28 sps:$4 sm:$0xff]  }
 0x4b8   :  { %9371 = vmatpush3.bf16.msra.mxu1 %v10046_v3  ;;  %v10112_v3 = vld [vmem:[#allocation10 + $0xd00] ss:$28 sps:$4 sm:$0xff]  }
 0x4b9   :  { %9372 = vmatprep.subr.bf16.mxu1 %v10047_v15  ;;  %v10115_v15 = vld [vmem:[#allocation10 + $0x7f4] ss:$28 sps:$4 sm:$0xff]  }
 0x4ba   :  { %7994 = vmatpush1.bf16.msra.mxu0 %v10043_v16  ;;  %v10116_v16 = vld [vmem:[#allocation10 + $0xb40] ss:$28 sps:$4 sm:$0xff]  }
 0x4bb   :  { %7995 = vmatprep.subr.bf16.mxu0 %v10050_v18  ;;  %v10117_v18 = vld [vmem:[#allocation10 + $0xd38] ss:$28 sps:$4 sm:$0xff]  }
 0x4bc   :  { %9373 = vmatpush3.bf16.msra.mxu1 %v10051_v21  ;;  %v10113_v21 = vld [vmem:[#allocation10 + $0x7f0] ss:$28 sps:$4 sm:$0xff]  }
 0x4bd   :  { %9374 = vmatprep.subr.bf16.mxu1 %v10052_v22  ;;  %v10120_v22 = vld [vmem:[#allocation10 + $0x82c] ss:$28 sps:$4 sm:$0xff]  }
 0x4be   :  { %7996 = vmatpush1.bf16.msra.mxu0 %v10048_v25  ;;  %v10121_v25 = vld [vmem:[#allocation10 + $0xb78] ss:$28 sps:$4 sm:$0xff]  }
 0x4bf   :  { %7997 = vmatprep.subr.bf16.mxu0 %v10055_v19  ;;  %v10122_v19 = vld [vmem:[#allocation10 + $0xd70] ss:$28 sps:$4 sm:$0xff]  }
 0x4c0   :  { %9375 = vmatpush3.bf16.msra.mxu1 %v10056_v28  ;;  %v10118_v28 = vld [vmem:[#allocation10 + $0x828] ss:$28 sps:$4 sm:$0xff]  }
 0x4c1   :  { %9382 = vmatprep.subr.bf16.mxu1 %v10057_v31  ;;  %v10125_v31 = vld [vmem:[#allocation10 + $0x864] ss:$28 sps:$4 sm:$0xff]  }
 0x4c2   :  { %7998 = vmatpush1.bf16.msra.mxu0 %v10053_v33  ;;  %v10126_v33 = vld [vmem:[#allocation10 + $0xbb0] ss:$28 sps:$4 sm:$0xff]  }
 0x4c3   :  { %8184 = vmatmul.mubr.bf16.vlgmr.msra.gmra.mrb[28].mxu1 %v10727_v26  ;;  %7999 = vmatprep.subr.bf16.mxu0 %v10060_v5  ;;  %v10127_v5 = vld [vmem:[#allocation10 + $0xda8] ss:$28 sps:$4 sm:$0xff]  }
 0x4c4   :  { %9383 = vmatpush3.bf16.msra.mxu1 %v10061_v34  ;;  %8224 = vmatprep.mubr.bf16.mxu1 %v10745_v13  ;;  %v10123_v34 = vld [vmem:[#allocation10 + $0x860] ss:$28 sps:$4 sm:$0xff]  }
 0x4c5   :  { %9384 = vmatprep.subr.bf16.mxu1 %v10062_v14  ;;  %v10130_v14 = vld [vmem:[#allocation10 + $0x89c] ss:$28 sps:$4 sm:$0xff]  }
 0x4c6   :  { %8000 = vmatpush1.bf16.msra.mxu0 %v10058_v54  ;;  %v10131_v54 = vld [vmem:[#allocation10 + $0xbe8] ss:$28 sps:$4 sm:$0xff]  }
 0x4c7   :  { %8001 = vmatprep.subr.bf16.mxu0 %v10065_v39  ;;  %v10132_v39 = vld [vmem:[#allocation10 + $0xde0] ss:$28 sps:$4 sm:$0xff]  }
 0x4c8   :  { %9385 = vmatpush3.bf16.msra.mxu1 %v10066_v12  ;;  %v10128_v12 = vld [vmem:[#allocation10 + $0x898] ss:$28 sps:$4 sm:$0xff]  }
 0x4c9   :  { %9386 = vmatprep.subr.bf16.mxu1 %v10067_v24  ;;  %v10135_v24 = vld [vmem:[#allocation10 + $0x8d4] ss:$28 sps:$4 sm:$0xff]  }
 0x4ca   :  { %8002 = vmatpush1.bf16.msra.mxu0 %v10063_v44  ;;  %v10136_v44 = vld [vmem:[#allocation10 + $0xc20] ss:$28 sps:$4 sm:$0xff]  }
 0x4cb   :  { %8003 = vmatprep.subr.bf16.mxu0 %v10070_v20  ;;  %v10133_v20 = vld [vmem:[#allocation10 + $0x8d0] ss:$28 sps:$4 sm:$0xff]  }
 0x4cc   :  { %9387 = vmatpush3.bf16.msra.mxu1 %v10071_v36  ;;  %v10139_v36 = vld [vmem:[#allocation10 + $0x90c] ss:$28 sps:$4 sm:$0xff]  }
 0x4cd   :  { %9388 = vmatprep.subr.bf16.mxu1 %v10072_v23  ;;  %v10137_v23 = vld [vmem:[#allocation10 + $0x908] ss:$28 sps:$4 sm:$0xff]  }
 0x4ce   :  { %8004 = vmatpush1.bf16.msra.mxu0 %v10068_v37  ;;  %v10142_v37 = vld [vmem:[#allocation10 + $0x944] ss:$28 sps:$4 sm:$0xff]  }
 0x4cf   :  { %8005 = vmatprep.subr.bf16.mxu0 %v10075_v38  ;;  %v10140_v38 = vld [vmem:[#allocation10 + $0x940] ss:$28 sps:$4 sm:$0xff]  }
 0x4d0   :  { %9389 = vmatpush3.bf16.msra.mxu1 %v10076_v17  ;;  %v10145_v17 = vld [vmem:[#allocation10 + $0x97c] ss:$28 sps:$4 sm:$0xff]  }
 0x4d1   :  { %9390 = vmatprep.subr.bf16.mxu1 %v10077_v27  ;;  %v10143_v27 = vld [vmem:[#allocation10 + $0x978] ss:$28 sps:$4 sm:$0xff]  }
 0x4d2   :  { %8006 = vmatpush1.bf16.msra.mxu0 %v10073_v40  ;;  %v10148_v40 = vld [vmem:[#allocation10 + $0x9b4] ss:$28 sps:$4 sm:$0xff]  }
 0x4d3   :  { %8007 = vmatprep.subr.bf16.mxu0 %v10080_v41  ;;  %v10146_v41 = vld [vmem:[#allocation10 + $0x9b0] ss:$28 sps:$4 sm:$0xff]  }
 0x4d4   :  { %9391 = vmatpush3.bf16.msra.mxu1 %v10081_v42  ;;  %v10151_v42 = vld [vmem:[#allocation10 + $0x9ec] ss:$28 sps:$4 sm:$0xff]  }
 0x4d5   :  { %9392 = vmatprep.subr.bf16.mxu1 %v10082_v30  ;;  %v10149_v30 = vld [vmem:[#allocation10 + $0x9e8] ss:$28 sps:$4 sm:$0xff]  }
 0x4d6   :  { %8008 = vmatpush1.bf16.msra.mxu0 %v10078_v7  ;;  %v10154_v7 = vld [vmem:[#allocation10 + $0xa24] ss:$28 sps:$4 sm:$0xff]  }
 0x4d7   :  { %8009 = vmatprep.subr.bf16.mxu0 %v10085_v43  ;;  %v10152_v43 = vld [vmem:[#allocation10 + $0xa20] ss:$28 sps:$4 sm:$0xff]  }
 0x4d8   :  { %9393 = vmatpush3.bf16.msra.mxu1 %v10086_v47  ;;  %v10157_v47 = vld [vmem:[#allocation10 + $0xa5c] ss:$28 sps:$4 sm:$0xff]  }
 0x4d9   :  { %9394 = vmatprep.subr.bf16.mxu1 %v10087_v46  ;;  %v10155_v46 = vld [vmem:[#allocation10 + $0xa58] ss:$28 sps:$4 sm:$0xff]  }
 0x4da   :  { %8010 = vmatpush1.bf16.msra.mxu0 %v10083_v48  ;;  %v10160_v48 = vld [vmem:[#allocation10 + $0xa94] ss:$28 sps:$4 sm:$0xff]  }
 0x4db   :  { %8011 = vmatprep.subr.bf16.mxu0 %v10090_v49  ;;  %v10158_v49 = vld [vmem:[#allocation10 + $0xa90] ss:$28 sps:$4 sm:$0xff]  }
 0x4dc   :  { %9395 = vmatpush3.bf16.msra.mxu1 %v10091_v0  ;;  %v10163_v0 = vld [vmem:[#allocation10 + $0xacc] ss:$28 sps:$4 sm:$0xff]  }
 0x4dd   :  { %9396 = vmatprep.subr.bf16.mxu1 %v10092_v51  ;;  %v10161_v51 = vld [vmem:[#allocation10 + $0xac8] ss:$28 sps:$4 sm:$0xff]  }
 0x4de   :  { %8012 = vmatpush1.bf16.msra.mxu0 %v10088_v52  ;;  %v10166_v52 = vld [vmem:[#allocation10 + $0xb04] ss:$28 sps:$4 sm:$0xff]  }
 0x4df   :  { %8024 = vmatprep.subr.bf16.mxu0 %v10095_v53  ;;  %v10164_v53 = vld [vmem:[#allocation10 + $0xb00] ss:$28 sps:$4 sm:$0xff]  }
 0x4e0   :  { %9397 = vmatpush3.bf16.msra.mxu1 %v10096_v55  ;;  %v10169_v55 = vld [vmem:[#allocation10 + $0xb3c] ss:$28 sps:$4 sm:$0xff]  }
 0x4e1   :  { %8014 = vmatmul.mubr.bf16.vlgmr.msra.gmra.mrb[20].mxu0 %v10727_v26  ;;  %9404 = vmatprep.subr.bf16.mxu1 %v10097_v56  ;;  %v10110_v26 = vld [vmem:[#allocation10 + $0x7bc] ss:$28 sps:$4 sm:$0xff]  }
 0x4e2   :  { %8025 = vmatpush1.bf16.msra.mxu0 %v10093_v57  ;;  %8056 = vmatprep.mubr.bf16.mxu0 %v10745_v13  ;;  %v10108_v13 = vld [vmem:[#allocation10 + $0x7b8] ss:$28 sps:$4 sm:$0xff]  }
 0x4e3   :  { %8225 = vmatmul.mubr.bf16.vlgmr.msra.gmra.mrb[32].mxu1 %v10743_v4  ;;  %8026 = vmatprep.subr.bf16.mxu0 %v10100_v50  ;;  %v10167_v56 = vld [vmem:[#allocation10 + $0xb38] ss:$28 sps:$4 sm:$0xff]   ;;  %v10170_v50 = vld [vmem:[#allocation10 + $0xb70] ss:$28 sps:$4 sm:$0xff]  }
 0x4e4   :  { %9405 = vmatpush3.bf16.msra.mxu1 %v10101_v58  ;;  %8265 = vmatprep.mubr.bf16.mxu1 %v10759_v35  ;;  %v10172_v57 = vld [vmem:[#allocation10 + $0xb74] ss:$28 sps:$4 sm:$0xff]   ;;  %v10780_v58 = vld [vmem:[#allocation12] sm:$0xff] }
 0x4e5   :  { %9406 = vmatprep.subr.bf16.mxu1 %v10102_v59  ;;  %v10173_v59 = vld [vmem:[#allocation10 + $0xba8] ss:$28 sps:$4 sm:$0xff]  }
 0x4e6   :  { %8027 = vmatpush1.bf16.msra.mxu0 %v10098_v29  ;;  %v5262_v29 = vrot.slane %v10780_v58, %v10620_v9  ;;  %v10179_v9 = vld [vmem:[#allocation10 + $0xc18] ss:$28 sps:$4 sm:$0xff]  }
 0x4e7   :  { %8028 = vmatprep.subr.bf16.mxu0 %v10105_v60  ;;  %v10178_v60 = vld [vmem:[#allocation10 + $0xbe4] ss:$28 sps:$4 sm:$0xff]  }
 0x4e8   :  { %9407 = vmatpush3.bf16.msra.mxu1 %v10106_v61 }
 0x4e9   :  { %9408 = vmatprep.subr.bf16.mxu1 %v10107_v62 }
 0x4ea   :  { %8029 = vmatpush1.bf16.msra.mxu0 %v10103_v45 }
 0x4eb   :  { %8030 = vmatprep.subr.bf16.mxu0 %v10110_v26 }
 0x4ec   :  { %9409 = vmatpush3.bf16.msra.mxu1 %v10111_v1 }
 0x4ed   :  { %9410 = vmatprep.subr.bf16.mxu1 %v10112_v3  ;;  %v10176_v3 = vld [vmem:[#allocation10 + $0xbe0] ss:$28 sps:$4 sm:$0xff]  }
 0x4ee   :  { %8031 = vmatpush1.bf16.msra.mxu0 %v10108_v13 }
 0x4ef   :  { %8032 = vmatprep.subr.bf16.mxu0 %v10115_v15 }
 0x4f0   :  { %9411 = vmatpush3.bf16.msra.mxu1 %v10116_v16  ;;  %v10181_v16 = vld [vmem:[#allocation10 + $0xc1c] ss:$28 sps:$4 sm:$0xff]  }
 0x4f1   :  { %9412 = vmatprep.subr.bf16.mxu1 %v10117_v18  ;;  %v10184_v18 = vld [vmem:[#allocation10 + $0xc54] ss:$28 sps:$4 sm:$0xff]  }
 0x4f2   :  { %8033 = vmatpush1.bf16.msra.mxu0 %v10113_v21  ;;  %v10182_v21 = vld [vmem:[#allocation10 + $0xc50] ss:$28 sps:$4 sm:$0xff]  }
 0x4f3   :  { %8034 = vmatprep.subr.bf16.mxu0 %v10120_v22  ;;  %v10187_v22 = vld [vmem:[#allocation10 + $0xc8c] ss:$28 sps:$4 sm:$0xff]  }
 0x4f4   :  { %9413 = vmatpush3.bf16.msra.mxu1 %v10121_v25 }
 0x4f5   :  { %9414 = vmatprep.subr.bf16.mxu1 %v10122_v19 }
 0x4f6   :  { %8035 = vmatpush1.bf16.msra.mxu0 %v10118_v28  ;;  %v10185_v28 = vld [vmem:[#allocation10 + $0xc88] ss:$28 sps:$4 sm:$0xff]  }
 0x4f7   :  { %8036 = vmatprep.subr.bf16.mxu0 %v10125_v31 }
 0x4f8   :  { %9415 = vmatpush3.bf16.msra.mxu1 %v10126_v33  ;;  %v10190_v33 = vld [vmem:[#allocation10 + $0xcc4] ss:$28 sps:$4 sm:$0xff]  }
 0x4f9   :  { %9416 = vmatprep.subr.bf16.mxu1 %v10127_v5 }
 0x4fa   :  { %8037 = vmatpush1.bf16.msra.mxu0 %v10123_v34  ;;  %v10188_v34 = vld [vmem:[#allocation10 + $0xcc0] ss:$28 sps:$4 sm:$0xff]  }
 0x4fb   :  { %8038 = vmatprep.subr.bf16.mxu0 %v10130_v14  ;;  %v10193_v14 = vld [vmem:[#allocation10 + $0xcfc] ss:$28 sps:$4 sm:$0xff]  }
 0x4fc   :  { %9417 = vmatpush3.bf16.msra.mxu1 %v10131_v54  ;;  %v10191_v54 = vld [vmem:[#allocation10 + $0xcf8] ss:$28 sps:$4 sm:$0xff]  }
 0x4fd   :  { %9418 = vmatprep.subr.bf16.mxu1 %v10132_v39  ;;  %v10196_v39 = vld [vmem:[#allocation10 + $0xd34] ss:$28 sps:$4 sm:$0xff]  }
 0x4fe   :  { %8039 = vmatpush1.bf16.msra.mxu0 %v10128_v12  ;;  %v10194_v12 = vld [vmem:[#allocation10 + $0xd30] ss:$28 sps:$4 sm:$0xff]  }
 0x4ff   :  { %8040 = vmatprep.subr.bf16.mxu0 %v10135_v24  ;;  %v10199_v24 = vld [vmem:[#allocation10 + $0xd6c] ss:$28 sps:$4 sm:$0xff]  }
 0x500   :  { %9419 = vmatpush3.bf16.msra.mxu1 %v10136_v44  ;;  %v10197_v44 = vld [vmem:[#allocation10 + $0xd68] ss:$28 sps:$4 sm:$0xff]  }
 0x502   :  { %8041 = vmatpush1.bf16.msra.mxu0 %v10133_v20  ;;  %v5266_v20 = vrot.slane %v10780_v58, %v10617_v8  ;;  %v10203_v8 = vld [vmem:[#allocation10 + $0xdd8] ss:$28 sps:$4 sm:$0xff]  }
 0x503   :  { %8266 = vmatmul.mubr.bf16.vlgmr.msra.gmra.mrb[36].mxu1 %v10757_v32  ;;  %8042 = vmatprep.subr.bf16.mxu0 %v10139_v36  ;;  %v10202_v36 = vld [vmem:[#allocation10 + $0xda4] ss:$28 sps:$4 sm:$0xff]  }
 0x506   :  { %8043 = vmatpush1.bf16.msra.mxu0 %v10137_v23  ;;  %v5270_v23 = vrot.slane %v10780_v58, %v10623_v10 }
 0x507   :  { %8044 = vmatprep.subr.bf16.mxu0 %v10142_v37 }
 0x50a   :  { %8045 = vmatpush1.bf16.msra.mxu0 %v10140_v38  ;;  %v10200_v38 = vld [vmem:[#allocation10 + $0xda0] ss:$28 sps:$4 sm:$0xff]  }
 0x50b   :  { %8046 = vmatprep.subr.bf16.mxu0 %v10145_v17 }
 0x50e   :  { %8047 = vmatpush1.bf16.msra.mxu0 %v10143_v27 }
 0x50f   :  { %8048 = vmatprep.subr.bf16.mxu0 %v10148_v40  ;;  %v10205_v40 = vld [vmem:[#allocation10 + $0xddc] ss:$28 sps:$4 sm:$0xff]  }
 0x512   :  { %8049 = vmatpush1.bf16.msra.mxu0 %v10146_v41 }
 0x513   :  { %8050 = vmatprep.subr.bf16.mxu0 %v10151_v42 }
 0x516   :  { %8051 = vmatpush1.bf16.msra.mxu0 %v10149_v30 }
 0x517   :  { %8052 = vmatprep.subr.bf16.mxu0 %v10154_v7 }
 0x51a   :  { %8053 = vmatpush1.bf16.msra.mxu0 %v10152_v43 }
 0x51b   :  { %8054 = vmatprep.subr.bf16.mxu0 %v10157_v47 }
 0x51e   :  { %8055 = vmatpush1.bf16.msra.mxu0 %v10155_v46 }
 0x51f   :  { %8067 = vmatprep.subr.bf16.mxu0 %v10160_v48 }
 0x521   :  { %8057 = vmatmul.mubr.bf16.vlgmr.msra.gmra.mrb[20].mxu0 %v10743_v4  ;;  %v10175_v4 = vld [vmem:[#allocation10 + $0xbac] ss:$28 sps:$4 sm:$0xff]  }
 0x522   :  { %8068 = vmatpush1.bf16.msra.mxu0 %v10158_v49  ;;  %8099 = vmatprep.mubr.bf16.mxu0 %v10759_v35  ;;  %v5258_v35 = vrot.slane %v10780_v58, %v10612_v6 }
 0x523   :  { %8069 = vmatprep.subr.bf16.mxu0 %v10163_v0 }
 0x526   :  { %8070 = vmatpush1.bf16.msra.mxu0 %v10161_v51 }
 0x527   :  { %8071 = vmatprep.subr.bf16.mxu0 %v10166_v52 }
 0x52a   :  { %8072 = vmatpush1.bf16.msra.mxu0 %v10164_v53 }
 0x52b   :  { %8073 = vmatprep.subr.bf16.mxu0 %v10169_v55  ;;  %v5282_v55 = vrot.slane %v10780_v58, %v10653_v11 }
 0x52e   :  { %8074 = vmatpush1.bf16.msra.mxu0 %v10167_v56 }
 0x52f   :  { %8075 = vmatprep.subr.bf16.mxu0 %v10172_v57 }
 0x532   :  { %8076 = vmatpush1.bf16.msra.mxu0 %v10170_v50 }
 0x533   :  { %8077 = vmatprep.subr.bf16.mxu0 %v10175_v4 }
 0x534   :  { %v7757_v61 = vpop.f32.mrb[16].mxu0 }
 0x535   :  { %v9446_v62 = vadd.f32 %v7757_v61, %v5258_v35  ;;  %v7759_v45 = vpop.f32.mrb[17].mxu0 }
 0x536   :  { %v9447_v26 = vadd.f32 %v7759_v45, %v5262_v29  ;;  %8078 = vmatpush1.bf16.msra.mxu0 %v10173_v59  ;;  %v7761_v1 = vpop.f32.mrb[18].mxu0 }
 0x537   :  { %10206 = vtanh.f32 %v9446_v62  ;;  %v9448_v13 = vadd.f32 %v7761_v1, %v5258_v35  ;;  %v7763_v15 = vpop.f32.mrb[19].mxu0  ;;  %8079 = vmatprep.subr.bf16.mxu0 %v10178_v60 }
 0x538   :  { %10208 = vtanh.f32 %v9447_v26  ;;  %v9449_v6 = vadd.f32 %v7763_v15, %v5262_v29 }
 0x539   :  { %10210 = vtanh.f32 %v9448_v13 }
 0x53a   :  { %10212 = vtanh.f32 %v9449_v6  ;;  %8080 = vmatpush1.bf16.msra.mxu0 %v10176_v3 }
 0x53b   :  { %8081 = vmatprep.subr.bf16.mxu0 %v10181_v16 }
 0x53e   :  { %8082 = vmatpush1.bf16.msra.mxu0 %v10179_v9 }
 0x53f   :  { %8083 = vmatprep.subr.bf16.mxu0 %v10184_v18 }
 0x541   :  { %v10207_v25 = vpop.eup %10206 }
 0x542   :  { %v10209_v19 = vpop.eup %10208  ;;  %8288 = vst [vmem:[%s10848_s9] sm:$0xff] %v10207_v25  ;;  %8084 = vmatpush1.bf16.msra.mxu0 %v10182_v21 }
 0x543   :  { %v10211_v31 = vpop.eup %10210  ;;  %8289 = vst [vmem:[%s10848_s9 + $0x8] sm:$0xff] %v10209_v19  ;;  %8085 = vmatprep.subr.bf16.mxu0 %v10187_v22 }
 0x544   :  { %v10213_v5 = vpop.eup %10212  ;;  %8295 = vst [vmem:[%s10848_s9 + $0x38] sm:$0xff] %v10211_v31 }
 0x545   :  { %8296 = vst [vmem:[%s10848_s9 + $0x40] sm:$0xff] %v10213_v5  ;;  %v5274_v5 = vrot.slane %v10780_v58, %v10647_v63 }
 0x546   :  { %8086 = vmatpush1.bf16.msra.mxu0 %v10185_v28 }
 0x547   :  { %8087 = vmatprep.subr.bf16.mxu0 %v10190_v33 }
 0x54a   :  { %8088 = vmatpush1.bf16.msra.mxu0 %v10188_v34  ;;  %v5278_v34 = vrot.slane %v10780_v58, %v10650_v2 }
 0x54b   :  { %8089 = vmatprep.subr.bf16.mxu0 %v10193_v14 }
 0x54e   :  { %8090 = vmatpush1.bf16.msra.mxu0 %v10191_v54 }
 0x54f   :  { %8091 = vmatprep.subr.bf16.mxu0 %v10196_v39 }
 0x552   :  { %8092 = vmatpush1.bf16.msra.mxu0 %v10194_v12 }
 0x553   :  { %8093 = vmatprep.subr.bf16.mxu0 %v10199_v24 }
 0x556   :  { %8094 = vmatpush1.bf16.msra.mxu0 %v10197_v44  ;;  %v7929_v37 = vpop.f32.mrb[20].mxu1 }
 0x557   :  { %v9450_v17 = vadd.f32 %v7929_v37, %v5266_v20  ;;  %v7931_v27 = vpop.f32.mrb[21].mxu1  ;;  %8095 = vmatprep.subr.bf16.mxu0 %v10202_v36 }
 0x558   :  { %v9451_v41 = vadd.f32 %v7931_v27, %v5270_v23  ;;  %v7933_v42 = vpop.f32.mrb[22].mxu1 }
 0x559   :  { %10214 = vtanh.f32 %v9450_v17  ;;  %v9452_v30 = vadd.f32 %v7933_v42, %v5266_v20  ;;  %v7935_v7 = vpop.f32.mrb[23].mxu1 }
 0x55a   :  { %10216 = vtanh.f32 %v9451_v41  ;;  %v9453_v43 = vadd.f32 %v7935_v7, %v5270_v23  ;;  %8096 = vmatpush1.bf16.msra.mxu0 %v10200_v38 }
 0x55b   :  { %10218 = vtanh.f32 %v9452_v30  ;;  %8097 = vmatprep.subr.bf16.mxu0 %v10205_v40 }
 0x55c   :  { %10220 = vtanh.f32 %v9453_v43 }
 0x55e   :  { %8098 = vmatpush1.bf16.msra.mxu0 %v10203_v8 }
 0x561   :  { %8100 = vmatmul.mubr.bf16.vlgmr.msra.gmra.mrb[20].mxu0 %v10757_v32 }
 0x563   :  { %v10215_v10 = vpop.eup %10214 }
 0x564   :  { %v10217_v47 = vpop.eup %10216  ;;  %8290 = vst [vmem:[%s10848_s9 + $0x10] sm:$0xff] %v10215_v10 }
 0x565   :  { %v10219_v46 = vpop.eup %10218  ;;  %8291 = vst [vmem:[%s10848_s9 + $0x18] sm:$0xff] %v10217_v47 }
 0x566   :  { %v10221_v48 = vpop.eup %10220  ;;  %8297 = vst [vmem:[%s10848_s9 + $0x48] sm:$0xff] %v10219_v46 }
 0x567   :  { %8298 = vst [vmem:[%s10848_s9 + $0x50] sm:$0xff] %v10221_v48 }
 0x576   :  { %v9354_v32 = vpop.f32.mrb[24].mxu1 }
 0x577   :  { %v9355_v49 = vpop.f32.mrb[25].mxu1 }
 0x578   :  { %v9356_v0 = vadd.f32 %v9355_v49, %v9354_v32  ;;  %v9357_v51 = vpop.f32.mrb[26].mxu1 }
 0x579   :  { %v9358_v52 = vpop.f32.mrb[27].mxu1 }
 0x57a   :  { %v9359_v53 = vadd.f32 %v9358_v52, %v9357_v51  ;;  %v8145_v50 = vadd.f32 %v9356_v0, %v5282_v55 }
 0x57c   :  { %v8148_v29 = vadd.f32 %v9359_v53, %v5282_v55 }
 0x596   :  { %v9376_v56 = vpop.f32.mrb[28].mxu1 }
 0x597   :  { %v9377_v57 = vpop.f32.mrb[29].mxu1 }
 0x598   :  { %v9378_v4 = vadd.f32 %v9377_v57, %v9376_v56  ;;  %v9379_v35 = vpop.f32.mrb[30].mxu1 }
 0x599   :  { %v9380_v59 = vpop.f32.mrb[31].mxu1 }
 0x59a   :  { %v8186_v60 = vadd.f32 %v9378_v4, %v8145_v50  ;;  %v9381_v61 = vadd.f32 %v9380_v59, %v9379_v35 }
 0x59c   :  { %v8189_v62 = vadd.f32 %v9381_v61, %v8148_v29 }
 0x5b6   :  { %v9398_v45 = vpop.f32.mrb[32].mxu1 }
 0x5b7   :  { %v9399_v26 = vpop.f32.mrb[33].mxu1 }
 0x5b8   :  { %v9400_v1 = vadd.f32 %v9399_v26, %v9398_v45  ;;  %v9401_v3 = vpop.f32.mrb[34].mxu1 }
 0x5b9   :  { %v9402_v13 = vpop.f32.mrb[35].mxu1 }
 0x5ba   :  { %v8227_v15 = vadd.f32 %v9400_v1, %v8186_v60  ;;  %v9403_v16 = vadd.f32 %v9402_v13, %v9401_v3 }
 0x5bc   :  { %v8230_v6 = vadd.f32 %v9403_v16, %v8189_v62 }
 0x5d6   :  { %v9420_v9 = vpop.f32.mrb[36].mxu1 }
 0x5d7   :  { %v9421_v11 = vpop.f32.mrb[37].mxu1 }
 0x5d8   :  { %v9422_v18 = vadd.f32 %v9421_v11, %v9420_v9  ;;  %v9423_v21 = vpop.f32.mrb[38].mxu1 }
 0x5d9   :  { %v9424_v22 = vpop.f32.mrb[39].mxu1 }
 0x5da   :  { %v8268_v25 = vadd.f32 %v9422_v18, %v8227_v15  ;;  %v9425_v19 = vadd.f32 %v9424_v22, %v9423_v21 }
 0x5dc   :  { %10222 = vtanh.f32 %v8268_v25  ;;  %v8271_v28 = vadd.f32 %v9425_v19, %v8230_v6 }
 0x5de   :  { %10224 = vtanh.f32 %v8271_v28 }
 0x5e6   :  { %v10223_v31 = vpop.eup %10222 }
 0x5e7   :  { %8294 = vst [vmem:[%s10848_s9 + $0x30] sm:$0xff] %v10223_v31 }
 0x5e8   :  { %v10225_v33 = vpop.eup %10224 }
 0x5e9   :  { %8301 = vst [vmem:[%s10848_s9 + $0x68] sm:$0xff] %v10225_v33 }
 0x634   :  { %v8101_v14 = vpop.f32.mrb[20].mxu0 }
 0x635   :  { %v9454_v54 = vadd.f32 %v8101_v14, %v5274_v5  ;;  %v8103_v39 = vpop.f32.mrb[21].mxu0 }
 0x636   :  { %v9455_v12 = vadd.f32 %v8103_v39, %v5278_v34  ;;  %v8105_v24 = vpop.f32.mrb[22].mxu0 }
 0x637   :  { %10226 = vtanh.f32 %v9454_v54  ;;  %v9456_v44 = vadd.f32 %v8105_v24, %v5274_v5  ;;  %v8107_v20 = vpop.f32.mrb[23].mxu0 }
 0x638   :  { %10228 = vtanh.f32 %v9455_v12  ;;  %v9457_v36 = vadd.f32 %v8107_v20, %v5278_v34 }
 0x639   :  { %10230 = vtanh.f32 %v9456_v44 }
 0x63a   :  { %10232 = vtanh.f32 %v9457_v36 }
 0x641   :  { %v10227_v23 = vpop.eup %10226 }
 0x642   :  { %v10229_v37 = vpop.eup %10228  ;;  %8292 = vst [vmem:[%s10848_s9 + $0x20] sm:$0xff] %v10227_v23 }
 0x643   :  { %v10231_v63 = vpop.eup %10230  ;;  %8293 = vst [vmem:[%s10848_s9 + $0x28] sm:$0xff] %v10229_v37 }
 0x644   :  { %v10233_v2 = vpop.eup %10232  ;;  %8299 = vst [vmem:[%s10848_s9 + $0x58] sm:$0xff] %v10231_v63 }
 0x645   :  { %8300 = vst [vmem:[%s10848_s9 + $0x60] sm:$0xff] %v10233_v2 }
 0x646   :  { %8306 = vsyncpa [#allocation3], 1 }
 0x647   :  { %8307 = vsyncpa [#allocation5], 1 }
 0x648   :  { %8308 = vsyncpa [#allocation8], 1 }
 0x649   :  { %8309 = vsyncpa [#allocation11], 1 }

</bundles_post_ra>
